<compile_context>
chip_gen: v7x
topology: tpu7x:2x2x1
jax: 0.10.0
libtpu: 0.0.40
codegen_flags: <defaults>
</compile_context>

<pallas_src>
import functools

import jax
import jax.numpy as jnp
from jax.experimental import pallas as pl
from jax.experimental.pallas import tpu as pltpu

EPS = 1e-5


# ---------------------------------------------------------------------------
# Sizing helpers
# ---------------------------------------------------------------------------
def _vmem_limit_bytes():
    """Scoped-VMEM limit sized to the actual chip (v7x: 64 MiB physical)."""
    default = 64 * 1024 * 1024
    try:
        cap = getattr(pltpu.get_tpu_info(), "vmem_capacity_bytes", None)
    except Exception:
        cap = None
    if not cap:
        return default
    return max(32 * 1024 * 1024, min(96 * 1024 * 1024, int(cap) * 3 // 4))


def _pick_batch_block(n, per_image_bytes, budget_bytes):
    """Largest divisor of n that (a) keeps >= 2 grid steps (v7x has two
    TensorCores) and (b) fits double-buffered tiles inside the VMEM budget."""
    best = 1
    for b in range(1, n + 1):
        if n % b:
            continue
        if n > 1 and n // b < 2:
            continue
        if 2 * b * per_image_bytes > budget_bytes:
            continue
        best = b
    return best


# ---------------------------------------------------------------------------
# Kernel 1: conv3x3(stride) + fused 1x1 projection shortcut
#           + per-step BN partial statistics for both convs.
# ---------------------------------------------------------------------------
def _conv1_kernel(x_ref, w1_ref, ws_ref, y1_ref, ysc_ref, s1_ref, ssc_ref,
                  *scratch, B, Ho, Wo, stride, cdt):
    cin = x_ref.shape[-1]

    if stride == 1:
        (pad_ref,) = scratch
        # Re-zero only the 1-px halo ring every step (cheap; megacore-safe
        # because no pl.when(program_id == 0) init is needed), then write the
        # interior once.
        pad_ref[:, 0:1, :, :] = jnp.zeros((B, 1, Wo + 2, cin), cdt)
        pad_ref[:, Ho + 1:Ho + 2, :, :] = jnp.zeros((B, 1, Wo + 2, cin), cdt)
        pad_ref[:, :, 0:1, :] = jnp.zeros((B, Ho + 2, 1, cin), cdt)
        pad_ref[:, :, Wo + 1:Wo + 2, :] = jnp.zeros((B, Ho + 2, 1, cin), cdt)
        pad_ref[:, 1:1 + Ho, 1:1 + Wo, :] = x_ref[...]

        def tap(kh, kw):
            return pad_ref[:, kh:kh + Ho, kw:kw + Wo, :]

        xc = x_ref[...]                                     # (B, Ho, Wo, cin)
    else:
        # x_ref: (4, B, Hpp, Wpp, cin) = the four stride-2 phases of pad(x,1);
        # every tap is a contiguous static slice of one phase.
        def tap(kh, kw):
            p = (kh % 2) * 2 + (kw % 2)
            r0, c0 = kh // 2, kw // 2
            return x_ref[p, :, r0:r0 + Ho, c0:c0 + Wo, :]

        xc = x_ref[3, :, 0:Ho, 0:Wo, :]                     # centre pixels

    # Single K = 9*Cin MXU dot (im2col built once in VMEM).
    taps = jnp.concatenate([tap(kh, kw) for kh in range(3) for kw in range(3)],
                           axis=-1)                         # (B, Ho, Wo, 9cin)
    lhs = taps.reshape(B * Ho * Wo, 9 * cin)
    acc = jnp.dot(lhs, w1_ref[...], preferred_element_type=jnp.float32)
    acc_sc = jnp.dot(xc.reshape(B * Ho * Wo, cin), ws_ref[...],
                     preferred_element_type=jnp.float32)

    y1_ref[0] = acc.astype(y1_ref.dtype)
    ysc_ref[0] = acc_sc.astype(ysc_ref.dtype)
    s1_ref[0] = jnp.concatenate(
        [jnp.sum(acc, axis=0, keepdims=True),
         jnp.sum(acc * acc, axis=0, keepdims=True)], axis=0)
    ssc_ref[0] = jnp.concatenate(
        [jnp.sum(acc_sc, axis=0, keepdims=True),
         jnp.sum(acc_sc * acc_sc, axis=0, keepdims=True)], axis=0)


# ---------------------------------------------------------------------------
# Kernel 2: BN1 (precomputed affine) + ReLU + conv3x3(stride 1)
#           + per-step BN2 partial statistics.
# ---------------------------------------------------------------------------
def _bn1_relu_conv2_kernel(y1_ref, a1_ref, c1_ref, w2_ref, y2_ref, s2_ref,
                           pad_ref, *, B, Ho, Wo, cdt):
    width = y1_ref.shape[-1]
    y1 = y1_ref[...].astype(jnp.float32)                    # (B, Ho, Wo, W)
    y1n = jnp.maximum(y1 * a1_ref[...] + c1_ref[...], 0.0).astype(cdt)

    # Build the zero-padded normalized window in VMEM scratch (no padded slab
    # in HBM, no iota/where ring re-zeroing).
    pad_ref[:, 0:1, :, :] = jnp.zeros((B, 1, Wo + 2, width), cdt)
    pad_ref[:, Ho + 1:Ho + 2, :, :] = jnp.zeros((B, 1, Wo + 2, width), cdt)
    pad_ref[:, :, 0:1, :] = jnp.zeros((B, Ho + 2, 1, width), cdt)
    pad_ref[:, :, Wo + 1:Wo + 2, :] = jnp.zeros((B, Ho + 2, 1, width), cdt)
    pad_ref[:, 1:1 + Ho, 1:1 + Wo, :] = y1n

    taps = jnp.concatenate(
        [pad_ref[:, kh:kh + Ho, kw:kw + Wo, :]
         for kh in range(3) for kw in range(3)], axis=-1)
    acc = jnp.dot(taps.reshape(B * Ho * Wo, 9 * width), w2_ref[...],
                  preferred_element_type=jnp.float32)

    y2_ref[0] = acc.astype(y2_ref.dtype)
    s2_ref[0] = jnp.concatenate(
        [jnp.sum(acc, axis=0, keepdims=True),
         jnp.sum(acc * acc, axis=0, keepdims=True)], axis=0)


# ---------------------------------------------------------------------------
# Kernel 3: BN2 + BN_shortcut (precomputed, lane-tiled affines)
#           + residual add + ReLU on lane-dense (B, Ho, Wo*planes) tiles.
# ---------------------------------------------------------------------------
def _bn2_add_relu_kernel(y2_ref, ysc_ref, a2_ref, c2_ref, asc_ref, csc_ref,
                         out_ref):
    y2 = y2_ref[...].astype(jnp.float32)
    ysc = ysc_ref[...].astype(jnp.float32)
    out = jnp.maximum(y2 * a2_ref[...] + c2_ref[...]
                      + ysc * asc_ref[...] + csc_ref[...], 0.0)
    out_ref[...] = out.astype(out_ref.dtype)


# ---------------------------------------------------------------------------
# Wrapper-side glue
# ---------------------------------------------------------------------------
def _bn_affine(partials, gamma, beta, inv_count):
    """Fold per-step (sum, sum-of-squares) partials into BN scale/shift (f32)."""
    tot = jnp.sum(partials, axis=0)                          # (2, C)
    mean = tot[0] * inv_count
    var = tot[1] * inv_count - mean * mean
    a = jax.lax.rsqrt(var + EPS) * gamma.reshape(-1).astype(jnp.float32)
    c = beta.reshape(-1).astype(jnp.float32) - mean * a
    return a.reshape(1, -1), c.reshape(1, -1)


def basic_block_forward(x_nchw, params, stride, compute_dtype=jnp.bfloat16):
    """BasicBlock forward.  bf16 (default) feeds the MXU and halves HBM bytes
    of the intermediates; BN statistics and normalization stay f32."""
    # TODO(synk): identity-shortcut variant (stride == 1 and in_planes ==
    # planes) is not implemented; this path always applies the projection
    # shortcut (which is what the module builds whenever it exists).
    assert stride in (1, 2), "ResNet BasicBlock uses stride 1 or 2"
    cdt = compute_dtype
    x = jnp.transpose(x_nchw, (0, 2, 3, 1))                  # single NCHW->NHWC
    N, H, W, cin = x.shape
    width = params["w1"].shape[0]
    planes = params["w2"].shape[0]
    Ho = (H - 1) // stride + 1
    Wo = (W - 1) // stride + 1
    hw = Ho * Wo
    inv_count = 1.0 / float(N * hw)

    # Weights as (9*Cin, Cout): each conv is ONE big-K MXU dot.
    w1 = jnp.transpose(params["w1"], (2, 3, 1, 0)).reshape(9 * cin, width).astype(cdt)
    w2 = jnp.transpose(params["w2"], (2, 3, 1, 0)).reshape(9 * width, planes).astype(cdt)
    ws = params["ws"].reshape(planes, cin).T.astype(cdt)

    vmem_limit = _vmem_limit_bytes()
    cparams = pltpu.CompilerParams(dimension_semantics=("parallel",),
                                   vmem_limit_bytes=vmem_limit)

    # Multi-image batch block per grid step (amortize per-step overhead, bigger
    # MXU M), sized against VMEM and keeping >= 2 steps for v7x's two cores.
    item = jnp.dtype(cdt).itemsize
    per_image = (
        stride * stride * (Ho + 2) * (Wo + 2) * cin * item   # input tile
        + (Ho + 2) * (Wo + 2) * max(cin, width) * item       # pad scratch
        + hw * 9 * max(cin, width) * item                    # im2col operand
        + hw * (width + 2 * planes) * item                   # y1/ysc/y2 tiles
        + hw * (width + planes) * 4)                         # f32 accumulators
    B = _pick_batch_block(N, per_image, vmem_limit // 2)
    G = N // B
    M = B * hw

    if stride == 1:
        x_in = x.astype(cdt)
        x_spec = pl.BlockSpec((B, H, W, cin), lambda n: (n, 0, 0, 0))
        scratch1 = [pltpu.VMEM((B, Ho + 2, Wo + 2, cin), cdt)]
    else:
        Hpp, Wpp = Ho + 1, Wo + 1
        xp = jnp.pad(x, ((0, 0), (1, 2 * Hpp - H - 1), (1, 2 * Wpp - W - 1),
                         (0, 0)))
        x_in = jnp.stack([xp[:, ph::2, pw::2, :] for ph in range(2)
                          for pw in range(2)], axis=0).astype(cdt)
        x_spec = pl.BlockSpec((4, B, Hpp, Wpp, cin), lambda n: (0, n, 0, 0, 0))
        scratch1 = []

    # -- pass 1: conv1 + projection shortcut + per-step BN partials ----------
    k1 = functools.partial(_conv1_kernel, B=B, Ho=Ho, Wo=Wo, stride=stride,
                           cdt=cdt)
    y1, ysc, s1, ssc = pl.pallas_call(
        k1,
        grid=(G,),
        in_specs=[x_spec,
                  pl.BlockSpec((9 * cin, width), lambda n: (0, 0)),
                  pl.BlockSpec((cin, planes), lambda n: (0, 0))],
        out_specs=[pl.BlockSpec((1, M, width), lambda n: (n, 0, 0)),
                   pl.BlockSpec((1, M, planes), lambda n: (n, 0, 0)),
                   pl.BlockSpec((1, 2, width), lambda n: (n, 0, 0)),
                   pl.BlockSpec((1, 2, planes), lambda n: (n, 0, 0))],
        out_shape=(jax.ShapeDtypeStruct((G, M, width), cdt),
                   jax.ShapeDtypeStruct((G, M, planes), cdt),
                   jax.ShapeDtypeStruct((G, 2, width), jnp.float32),
                   jax.ShapeDtypeStruct((G, 2, planes), jnp.float32)),
        scratch_shapes=scratch1,
        compiler_params=cparams,
    )(x_in, w1, ws)

    # Global BN1 affine folded once (not per grid step).
    a1, c1 = _bn_affine(s1, params["g1"], params["b1"], inv_count)

    # -- pass 2: bn1 + relu + conv2 + per-step BN2 partials -------------------
    k2 = functools.partial(_bn1_relu_conv2_kernel, B=B, Ho=Ho, Wo=Wo, cdt=cdt)
    y2, s2 = pl.pallas_call(
        k2,
        grid=(G,),
        in_specs=[pl.BlockSpec((B, Ho, Wo, width), lambda n: (n, 0, 0, 0)),
                  pl.BlockSpec((1, width), lambda n: (0, 0)),
                  pl.BlockSpec((1, width), lambda n: (0, 0)),
                  pl.BlockSpec((9 * width, planes), lambda n: (0, 0))],
        out_specs=[pl.BlockSpec((1, M, planes), lambda n: (n, 0, 0)),
                   pl.BlockSpec((1, 2, planes), lambda n: (n, 0, 0))],
        out_shape=(jax.ShapeDtypeStruct((G, M, planes), cdt),
                   jax.ShapeDtypeStruct((G, 2, planes), jnp.float32)),
        scratch_shapes=[pltpu.VMEM((B, Ho + 2, Wo + 2, width), cdt)],
        compiler_params=cparams,
    )(y1.reshape(N, Ho, Wo, width), a1, c1, w2)

    # -- pass 3: bn2 + bn_shortcut + add + relu, lane-dense layout ------------
    a2, c2 = _bn_affine(s2, params["g2"], params["b2"], inv_count)
    asc, csc = _bn_affine(ssc, params["gs"], params["bs"], inv_count)
    WP = Wo * planes
    out = pl.pallas_call(
        _bn2_add_relu_kernel,
        grid=(G,),
        in_specs=[pl.BlockSpec((B, Ho, WP), lambda n: (n, 0, 0)),
                  pl.BlockSpec((B, Ho, WP), lambda n: (n, 0, 0)),
                  pl.BlockSpec((1, WP), lambda n: (0, 0)),
                  pl.BlockSpec((1, WP), lambda n: (0, 0)),
                  pl.BlockSpec((1, WP), lambda n: (0, 0)),
                  pl.BlockSpec((1, WP), lambda n: (0, 0))],
        out_specs=pl.BlockSpec((B, Ho, WP), lambda n: (n, 0, 0)),
        out_shape=jax.ShapeDtypeStruct((N, Ho, WP), x_nchw.dtype),
        compiler_params=cparams,
    )(y2.reshape(N, Ho, WP), ysc.reshape(N, Ho, WP),
      jnp.tile(a2, (1, Wo)), jnp.tile(c2, (1, Wo)),
      jnp.tile(asc, (1, Wo)), jnp.tile(csc, (1, Wo)))

    return jnp.transpose(out.reshape(N, Ho, Wo, planes), (0, 3, 1, 2))


# ---------------------------------------------------------------------------
# Pure-JAX reference for validation
# ---------------------------------------------------------------------------
def _ref_conv(x, w, stride, pad):
    return jax.lax.conv_general_dilated(
        x, w, window_strides=(stride, stride),
        padding=((pad, pad), (pad, pad)),
        dimension_numbers=("NCHW", "OIHW", "NCHW"))


def _ref_bn(x, gamma, beta):
    mean = x.mean(axis=(0, 2, 3), keepdims=True)
    var = ((x - mean) ** 2).mean(axis=(0, 2, 3), keepdims=True)
    g = gamma.reshape(1, -1, 1, 1)
    b = beta.reshape(1, -1, 1, 1)
    return (x - mean) * jax.lax.rsqrt(var + EPS) * g + b


def ref_forward(x, params, stride):
    out = jax.nn.relu(_ref_bn(_ref_conv(x, params["w1"], stride, 1),
                              params["g1"][0], params["b1"][0]))
    out = _ref_bn(_ref_conv(out, params["w2"], 1, 1),
                  params["g2"][0], params["b2"][0])
    sc = _ref_bn(_ref_conv(x, params["ws"], stride, 0),
                 params["gs"][0], params["bs"][0])
    return jax.nn.relu(out + sc)


# ---------------------------------------------------------------------------
if __name__ == "__main__":
    in_planes, planes, wider = 4, 8, 1
    width = planes * wider
    N, H, W = 2, 16, 16

    k = jax.random.split(jax.random.PRNGKey(0), 10)
    params = {
        "w1": 0.1 * jax.random.normal(k[0], (width, in_planes, 3, 3), jnp.float32),
        "g1": 1.0 + 0.1 * jax.random.normal(k[1], (1, width), jnp.float32),
        "b1": 0.1 * jax.random.normal(k[2], (1, width), jnp.float32),
        "w2": 0.1 * jax.random.normal(k[3], (planes, width, 3, 3), jnp.float32),
        "g2": 1.0 + 0.1 * jax.random.normal(k[4], (1, planes), jnp.float32),
        "b2": 0.1 * jax.random.normal(k[5], (1, planes), jnp.float32),
        "ws": 0.1 * jax.random.normal(k[6], (planes, in_planes, 1, 1), jnp.float32),
        "gs": 1.0 + 0.1 * jax.random.normal(k[7], (1, planes), jnp.float32),
        "bs": 0.1 * jax.random.normal(k[8], (1, planes), jnp.float32),
    }
    x = jax.random.normal(k[9], (N, in_planes, H, W), jnp.float32)

    fwd = jax.jit(basic_block_forward, static_argnums=(2, 3))

    # f32 compute path, stride 2 (downsampling projection block).
    out = jax.block_until_ready(fwd(x, params, 2, jnp.float32))
    ref = jax.block_until_ready(ref_forward(x, params, 2))
    assert out.shape == (N, planes, H // 2, W // 2), out.shape
    assert jnp.allclose(out, ref, atol=5e-4, rtol=5e-4), float(
        jnp.max(jnp.abs(out - ref)))

    # f32 compute path, stride 1 (projection shortcut since in_planes != planes).
    out1 = jax.block_until_ready(fwd(x, params, 1, jnp.float32))
    ref1 = jax.block_until_ready(ref_forward(x, params, 1))
    assert out1.shape == (N, planes, H, W), out1.shape
    assert jnp.allclose(out1, ref1, atol=5e-4, rtol=5e-4), float(
        jnp.max(jnp.abs(out1 - ref1)))

    # Default bf16 MXU path: bf16 operands + HBM intermediates, f32 BN stats.
    out_bf16 = jax.block_until_ready(fwd(x, params, 2, jnp.bfloat16))
    assert jnp.allclose(out_bf16, ref, atol=1e-1, rtol=1e-1), float(
        jnp.max(jnp.abs(out_bf16 - ref)))

    print("KERNEL_OK")
</pallas_src>

<mosaic_0001>
module attributes {stable_mosaic.version = 11 : i64} {
  func.func @_conv1_kernel(%arg0: i32, %arg1: memref<4x1x9x9x4xf32, #tpu.memory_space<vmem>>, %arg2: memref<36x8xf32, #tpu.memory_space<vmem>>, %arg3: memref<4x8xf32, #tpu.memory_space<vmem>>, %arg4: memref<1x64x8xf32, #tpu.memory_space<vmem>>, %arg5: memref<1x64x8xf32, #tpu.memory_space<vmem>>, %arg6: memref<1x2x8xf32, #tpu.memory_space<vmem>>, %arg7: memref<1x2x8xf32, #tpu.memory_space<vmem>>) attributes {dimension_semantics = [#tpu.dimension_semantics<parallel>], iteration_bounds = array<i64: 2>, scalar_prefetch = 0 : i64, scratch_operands = 0 : i64, tpu.core_type = #tpu.core_type<tc>, window_params = [{transform_indices = @transform_0, window_bounds = array<i64: 4, 1, 9, 9, 4>}, {pipeline_mode = #tpu.pipeline_mode<synchronous>, transform_indices = @transform_1, window_bounds = array<i64: 36, 8>}, {pipeline_mode = #tpu.pipeline_mode<synchronous>, transform_indices = @transform_2, window_bounds = array<i64: 4, 8>}, {transform_indices = @transform_3, window_bounds = array<i64: 1, 64, 8>}, {transform_indices = @transform_4, window_bounds = array<i64: 1, 64, 8>}, {transform_indices = @transform_5, window_bounds = array<i64: 1, 2, 8>}, {transform_indices = @transform_6, window_bounds = array<i64: 1, 2, 8>}]} {
    %c3 = arith.constant 3 : index
    %c0 = arith.constant 0 : index
    %c0_0 = arith.constant 0 : index
    %c0_1 = arith.constant 0 : index
    %c0_2 = arith.constant 0 : index
    %0 = vector.load %arg1[%c3, %c0, %c0_0, %c0_1, %c0_2] : memref<4x1x9x9x4xf32, #tpu.memory_space<vmem>>, vector<1x1x8x8x4xf32>
    %1 = vector.shape_cast %0 : vector<1x1x8x8x4xf32> to vector<1x8x8x4xf32>
    %c0_3 = arith.constant 0 : index
    %c0_4 = arith.constant 0 : index
    %c0_5 = arith.constant 0 : index
    %c0_6 = arith.constant 0 : index
    %c0_7 = arith.constant 0 : index
    %2 = vector.load %arg1[%c0_3, %c0_4, %c0_5, %c0_6, %c0_7] : memref<4x1x9x9x4xf32, #tpu.memory_space<vmem>>, vector<1x1x8x8x4xf32>
    %3 = vector.shape_cast %2 : vector<1x1x8x8x4xf32> to vector<1x8x8x4xf32>
    %c1 = arith.constant 1 : index
    %c0_8 = arith.constant 0 : index
    %c0_9 = arith.constant 0 : index
    %c0_10 = arith.constant 0 : index
    %c0_11 = arith.constant 0 : index
    %4 = vector.load %arg1[%c1, %c0_8, %c0_9, %c0_10, %c0_11] : memref<4x1x9x9x4xf32, #tpu.memory_space<vmem>>, vector<1x1x8x8x4xf32>
    %5 = vector.shape_cast %4 : vector<1x1x8x8x4xf32> to vector<1x8x8x4xf32>
    %c0_12 = arith.constant 0 : index
    %c0_13 = arith.constant 0 : index
    %c0_14 = arith.constant 0 : index
    %c1_15 = arith.constant 1 : index
    %c0_16 = arith.constant 0 : index
    %6 = vector.load %arg1[%c0_12, %c0_13, %c0_14, %c1_15, %c0_16] : memref<4x1x9x9x4xf32, #tpu.memory_space<vmem>>, vector<1x1x8x8x4xf32>
    %7 = vector.shape_cast %6 : vector<1x1x8x8x4xf32> to vector<1x8x8x4xf32>
    %c2 = arith.constant 2 : index
    %c0_17 = arith.constant 0 : index
    %c0_18 = arith.constant 0 : index
    %c0_19 = arith.constant 0 : index
    %c0_20 = arith.constant 0 : index
    %8 = vector.load %arg1[%c2, %c0_17, %c0_18, %c0_19, %c0_20] : memref<4x1x9x9x4xf32, #tpu.memory_space<vmem>>, vector<1x1x8x8x4xf32>
    %9 = vector.shape_cast %8 : vector<1x1x8x8x4xf32> to vector<1x8x8x4xf32>
    %c3_21 = arith.constant 3 : index
    %c0_22 = arith.constant 0 : index
    %c0_23 = arith.constant 0 : index
    %c0_24 = arith.constant 0 : index
    %c0_25 = arith.constant 0 : index
    %10 = vector.load %arg1[%c3_21, %c0_22, %c0_23, %c0_24, %c0_25] : memref<4x1x9x9x4xf32, #tpu.memory_space<vmem>>, vector<1x1x8x8x4xf32>
    %11 = vector.shape_cast %10 : vector<1x1x8x8x4xf32> to vector<1x8x8x4xf32>
    %c2_26 = arith.constant 2 : index
    %c0_27 = arith.constant 0 : index
    %c0_28 = arith.constant 0 : index
    %c1_29 = arith.constant 1 : index
    %c0_30 = arith.constant 0 : index
    %12 = vector.load %arg1[%c2_26, %c0_27, %c0_28, %c1_29, %c0_30] : memref<4x1x9x9x4xf32, #tpu.memory_space<vmem>>, vector<1x1x8x8x4xf32>
    %13 = vector.shape_cast %12 : vector<1x1x8x8x4xf32> to vector<1x8x8x4xf32>
    %c0_31 = arith.constant 0 : index
    %c0_32 = arith.constant 0 : index
    %c1_33 = arith.constant 1 : index
    %c0_34 = arith.constant 0 : index
    %c0_35 = arith.constant 0 : index
    %14 = vector.load %arg1[%c0_31, %c0_32, %c1_33, %c0_34, %c0_35] : memref<4x1x9x9x4xf32, #tpu.memory_space<vmem>>, vector<1x1x8x8x4xf32>
    %15 = vector.shape_cast %14 : vector<1x1x8x8x4xf32> to vector<1x8x8x4xf32>
    %c1_36 = arith.constant 1 : index
    %c0_37 = arith.constant 0 : index
    %c1_38 = arith.constant 1 : index
    %c0_39 = arith.constant 0 : index
    %c0_40 = arith.constant 0 : index
    %16 = vector.load %arg1[%c1_36, %c0_37, %c1_38, %c0_39, %c0_40] : memref<4x1x9x9x4xf32, #tpu.memory_space<vmem>>, vector<1x1x8x8x4xf32>
    %17 = vector.shape_cast %16 : vector<1x1x8x8x4xf32> to vector<1x8x8x4xf32>
    %c0_41 = arith.constant 0 : index
    %c0_42 = arith.constant 0 : index
    %c1_43 = arith.constant 1 : index
    %c1_44 = arith.constant 1 : index
    %c0_45 = arith.constant 0 : index
    %18 = vector.load %arg1[%c0_41, %c0_42, %c1_43, %c1_44, %c0_45] : memref<4x1x9x9x4xf32, #tpu.memory_space<vmem>>, vector<1x1x8x8x4xf32>
    %19 = vector.shape_cast %18 : vector<1x1x8x8x4xf32> to vector<1x8x8x4xf32>
    %20 = tpu.concatenate %3, %5, %7, %9, %11, %13, %15, %17, %19 in 3 : vector<1x8x8x4xf32>, vector<1x8x8x4xf32>, vector<1x8x8x4xf32>, vector<1x8x8x4xf32>, vector<1x8x8x4xf32>, vector<1x8x8x4xf32>, vector<1x8x8x4xf32>, vector<1x8x8x4xf32>, vector<1x8x8x4xf32> -> vector<1x8x8x36xf32>
    %21 = vector.shape_cast %20 : vector<1x8x8x36xf32> to vector<64x36xf32>
    %c0_46 = arith.constant 0 : index
    %c0_47 = arith.constant 0 : index
    %22 = vector.load %arg2[%c0_46, %c0_47] : memref<36x8xf32, #tpu.memory_space<vmem>>, vector<36x8xf32>
    %cst = arith.constant dense<0.000000e+00> : vector<64x8xf32>
    %23 = tpu.matmul %21, %22, %cst {dimension_numbers = #tpu.dot_dimension_numbers<[1], [0], [0], [1], [0, 0, 1, 1], [], []>} : vector<64x36xf32>, vector<36x8xf32>, vector<64x8xf32> -> vector<64x8xf32>
    %24 = vector.shape_cast %1 : vector<1x8x8x4xf32> to vector<64x4xf32>
    %c0_48 = arith.constant 0 : index
    %c0_49 = arith.constant 0 : index
    %25 = vector.load %arg3[%c0_48, %c0_49] : memref<4x8xf32, #tpu.memory_space<vmem>>, vector<4x8xf32>
    %cst_50 = arith.constant dense<0.000000e+00> : vector<64x8xf32>
    %26 = tpu.matmul %24, %25, %cst_50 {dimension_numbers = #tpu.dot_dimension_numbers<[1], [0], [0], [1], [0, 0, 1, 1], [], []>} : vector<64x4xf32>, vector<4x8xf32>, vector<64x8xf32> -> vector<64x8xf32>
    %c0_51 = arith.constant 0 : index
    %c0_52 = arith.constant 0 : index
    %c0_53 = arith.constant 0 : index
    %27 = vector.load %arg4[%c0_51, %c0_52, %c0_53] : memref<1x64x8xf32, #tpu.memory_space<vmem>>, vector<1x64x8xf32>
    %28 = vector.shape_cast %27 : vector<1x64x8xf32> to vector<64x8xf32>
    %29 = vector.shape_cast %23 : vector<64x8xf32> to vector<1x64x8xf32>
    tpu.vector_store %arg4[%c0_51, %c0_52, %c0_53], %29 {strides = array<i32>} : memref<1x64x8xf32, #tpu.memory_space<vmem>>, vector<1x64x8xf32>,
    %c0_54 = arith.constant 0 : index
    %c0_55 = arith.constant 0 : index
    %c0_56 = arith.constant 0 : index
    %30 = vector.load %arg5[%c0_54, %c0_55, %c0_56] : memref<1x64x8xf32, #tpu.memory_space<vmem>>, vector<1x64x8xf32>
    %31 = vector.shape_cast %30 : vector<1x64x8xf32> to vector<64x8xf32>
    %32 = vector.shape_cast %26 : vector<64x8xf32> to vector<1x64x8xf32>
    tpu.vector_store %arg5[%c0_54, %c0_55, %c0_56], %32 {strides = array<i32>} : memref<1x64x8xf32, #tpu.memory_space<vmem>>, vector<1x64x8xf32>,
    %cst_57 = arith.constant dense<0.000000e+00> : vector<8xf32>
    %33 = vector.multi_reduction <add>, %23, %cst_57 [0] : vector<64x8xf32> to vector<8xf32>
    %34 = vector.shape_cast %33 : vector<8xf32> to vector<1x8xf32>
    %35 = arith.mulf %23, %23 : vector<64x8xf32>
    %cst_58 = arith.constant dense<0.000000e+00> : vector<8xf32>
    %36 = vector.multi_reduction <add>, %35, %cst_58 [0] : vector<64x8xf32> to vector<8xf32>
    %37 = vector.shape_cast %36 : vector<8xf32> to vector<1x8xf32>
    %38 = tpu.concatenate %34, %37 in 0 : vector<1x8xf32>, vector<1x8xf32> -> vector<2x8xf32>
    %c0_59 = arith.constant 0 : index
    %c0_60 = arith.constant 0 : index
    %c0_61 = arith.constant 0 : index
    %39 = vector.load %arg6[%c0_59, %c0_60, %c0_61] : memref<1x2x8xf32, #tpu.memory_space<vmem>>, vector<1x2x8xf32>
    %40 = vector.shape_cast %39 : vector<1x2x8xf32> to vector<2x8xf32>
    %41 = vector.shape_cast %38 : vector<2x8xf32> to vector<1x2x8xf32>
    tpu.vector_store %arg6[%c0_59, %c0_60, %c0_61], %41 {strides = array<i32>} : memref<1x2x8xf32, #tpu.memory_space<vmem>>, vector<1x2x8xf32>,
    %cst_62 = arith.constant dense<0.000000e+00> : vector<8xf32>
    %42 = vector.multi_reduction <add>, %26, %cst_62 [0] : vector<64x8xf32> to vector<8xf32>
    %43 = vector.shape_cast %42 : vector<8xf32> to vector<1x8xf32>
    %44 = arith.mulf %26, %26 : vector<64x8xf32>
    %cst_63 = arith.constant dense<0.000000e+00> : vector<8xf32>
    %45 = vector.multi_reduction <add>, %44, %cst_63 [0] : vector<64x8xf32> to vector<8xf32>
    %46 = vector.shape_cast %45 : vector<8xf32> to vector<1x8xf32>
    %47 = tpu.concatenate %43, %46 in 0 : vector<1x8xf32>, vector<1x8xf32> -> vector<2x8xf32>
    %c0_64 = arith.constant 0 : index
    %c0_65 = arith.constant 0 : index
    %c0_66 = arith.constant 0 : index
    %48 = vector.load %arg7[%c0_64, %c0_65, %c0_66] : memref<1x2x8xf32, #tpu.memory_space<vmem>>, vector<1x2x8xf32>
    %49 = vector.shape_cast %48 : vector<1x2x8xf32> to vector<2x8xf32>
    %50 = vector.shape_cast %47 : vector<2x8xf32> to vector<1x2x8xf32>
    tpu.vector_store %arg7[%c0_64, %c0_65, %c0_66], %50 {strides = array<i32>} : memref<1x2x8xf32, #tpu.memory_space<vmem>>, vector<1x2x8xf32>,
    return
  }
  func.func @transform_0(%arg0: i32) -> (i32, i32, i32, i32, i32) {
    %c0_i32 = arith.constant 0 : i32
    %c0_i32_0 = arith.constant 0 : i32
    %c0_i32_1 = arith.constant 0 : i32
    %c0_i32_2 = arith.constant 0 : i32
    %c0_i32_3 = arith.constant 0 : i32
    return %c0_i32, %arg0, %c0_i32_0, %c0_i32_1, %c0_i32_2 : i32, i32, i32, i32, i32
  }
  func.func @transform_1(%arg0: i32) -> (i32, i32) {
    %c0_i32 = arith.constant 0 : i32
    %c0_i32_0 = arith.constant 0 : i32
    %c0_i32_1 = arith.constant 0 : i32
    return %c0_i32, %c0_i32_0 : i32, i32
  }
  func.func @transform_2(%arg0: i32) -> (i32, i32) {
    %c0_i32 = arith.constant 0 : i32
    %c0_i32_0 = arith.constant 0 : i32
    %c0_i32_1 = arith.constant 0 : i32
    return %c0_i32, %c0_i32_0 : i32, i32
  }
  func.func @transform_3(%arg0: i32) -> (i32, i32, i32) {
    %c0_i32 = arith.constant 0 : i32
    %c0_i32_0 = arith.constant 0 : i32
    %c0_i32_1 = arith.constant 0 : i32
    return %arg0, %c0_i32, %c0_i32_0 : i32, i32, i32
  }
  func.func @transform_4(%arg0: i32) -> (i32, i32, i32) {
    %c0_i32 = arith.constant 0 : i32
    %c0_i32_0 = arith.constant 0 : i32
    %c0_i32_1 = arith.constant 0 : i32
    return %arg0, %c0_i32, %c0_i32_0 : i32, i32, i32
  }
  func.func @transform_5(%arg0: i32) -> (i32, i32, i32) {
    %c0_i32 = arith.constant 0 : i32
    %c0_i32_0 = arith.constant 0 : i32
    %c0_i32_1 = arith.constant 0 : i32
    return %arg0, %c0_i32, %c0_i32_0 : i32, i32, i32
  }
  func.func @transform_6(%arg0: i32) -> (i32, i32, i32) {
    %c0_i32 = arith.constant 0 : i32
    %c0_i32_0 = arith.constant 0 : i32
    %c0_i32_1 = arith.constant 0 : i32
    return %arg0, %c0_i32, %c0_i32_0 : i32, i32, i32
  }
}

module attributes {stable_mosaic.version = 11 : i64} {
  func.func @_bn1_relu_conv2_kernel(%arg0: i32, %arg1: memref<1x8x8x8xf32, #tpu.memory_space<vmem>>, %arg2: memref<1x8xf32, #tpu.memory_space<vmem>>, %arg3: memref<1x8xf32, #tpu.memory_space<vmem>>, %arg4: memref<72x8xf32, #tpu.memory_space<vmem>>, %arg5: memref<1x64x8xf32, #tpu.memory_space<vmem>>, %arg6: memref<1x2x8xf32, #tpu.memory_space<vmem>>, %arg7: memref<1x10x10x8xf32, #tpu.memory_space<vmem>>) attributes {dimension_semantics = [#tpu.dimension_semantics<parallel>], iteration_bounds = array<i64: 2>, scalar_prefetch = 0 : i64, scratch_operands = 1 : i64, tpu.core_type = #tpu.core_type<tc>, window_params = [{transform_indices = @transform_0, window_bounds = array<i64: 1, 8, 8, 8>}, {pipeline_mode = #tpu.pipeline_mode<synchronous>, transform_indices = @transform_1, window_bounds = array<i64: 1, 8>}, {pipeline_mode = #tpu.pipeline_mode<synchronous>, transform_indices = @transform_2, window_bounds = array<i64: 1, 8>}, {pipeline_mode = #tpu.pipeline_mode<synchronous>, transform_indices = @transform_3, window_bounds = array<i64: 72, 8>}, {transform_indices = @transform_4, window_bounds = array<i64: 1, 64, 8>}, {transform_indices = @transform_5, window_bounds = array<i64: 1, 2, 8>}]} {
    %c0 = arith.constant 0 : index
    %c0_0 = arith.constant 0 : index
    %c0_1 = arith.constant 0 : index
    %c0_2 = arith.constant 0 : index
    %0 = vector.load %arg1[%c0, %c0_0, %c0_1, %c0_2] : memref<1x8x8x8xf32, #tpu.memory_space<vmem>>, vector<1x8x8x8xf32>
    %c0_3 = arith.constant 0 : index
    %c0_4 = arith.constant 0 : index
    %1 = vector.load %arg2[%c0_3, %c0_4] : memref<1x8xf32, #tpu.memory_space<vmem>>, vector<1x8xf32>
    %2 = vector.shape_cast %1 : vector<1x8xf32> to vector<1x1x1x8xf32>
    %3 = vector.broadcast %2 : vector<1x1x1x8xf32> to vector<1x8x8x8xf32>
    %4 = arith.mulf %0, %3 : vector<1x8x8x8xf32>
    %c0_5 = arith.constant 0 : index
    %c0_6 = arith.constant 0 : index
    %5 = vector.load %arg3[%c0_5, %c0_6] : memref<1x8xf32, #tpu.memory_space<vmem>>, vector<1x8xf32>
    %6 = vector.shape_cast %5 : vector<1x8xf32> to vector<1x1x1x8xf32>
    %7 = vector.broadcast %6 : vector<1x1x1x8xf32> to vector<1x8x8x8xf32>
    %8 = arith.addf %4, %7 : vector<1x8x8x8xf32>
    %cst = arith.constant 0.000000e+00 : f32
    %9 = vector.broadcast %cst : f32 to vector<1x8x8x8xf32>
    %10 = arith.maximumf %8, %9 : vector<1x8x8x8xf32>
    %cst_7 = arith.constant 0.000000e+00 : f32
    %11 = vector.broadcast %cst_7 : f32 to vector<1x1x10x8xf32>
    %c0_8 = arith.constant 0 : index
    %c0_9 = arith.constant 0 : index
    %c0_10 = arith.constant 0 : index
    %c0_11 = arith.constant 0 : index
    %12 = vector.load %arg7[%c0_8, %c0_9, %c0_10, %c0_11] : memref<1x10x10x8xf32, #tpu.memory_space<vmem>>, vector<1x1x10x8xf32>
    tpu.vector_store %arg7[%c0_8, %c0_9, %c0_10, %c0_11], %11 {strides = array<i32>} : memref<1x10x10x8xf32, #tpu.memory_space<vmem>>, vector<1x1x10x8xf32>,
    %cst_12 = arith.constant 0.000000e+00 : f32
    %13 = vector.broadcast %cst_12 : f32 to vector<1x1x10x8xf32>
    %c0_13 = arith.constant 0 : index
    %c9 = arith.constant 9 : index
    %c0_14 = arith.constant 0 : index
    %c0_15 = arith.constant 0 : index
    %14 = vector.load %arg7[%c0_13, %c9, %c0_14, %c0_15] : memref<1x10x10x8xf32, #tpu.memory_space<vmem>>, vector<1x1x10x8xf32>
    tpu.vector_store %arg7[%c0_13, %c9, %c0_14, %c0_15], %13 {strides = array<i32>} : memref<1x10x10x8xf32, #tpu.memory_space<vmem>>, vector<1x1x10x8xf32>,
    %cst_16 = arith.constant 0.000000e+00 : f32
    %15 = vector.broadcast %cst_16 : f32 to vector<1x10x1x8xf32>
    %c0_17 = arith.constant 0 : index
    %c0_18 = arith.constant 0 : index
    %c0_19 = arith.constant 0 : index
    %c0_20 = arith.constant 0 : index
    %16 = vector.load %arg7[%c0_17, %c0_18, %c0_19, %c0_20] : memref<1x10x10x8xf32, #tpu.memory_space<vmem>>, vector<1x10x1x8xf32>
    tpu.vector_store %arg7[%c0_17, %c0_18, %c0_19, %c0_20], %15 {strides = array<i32>} : memref<1x10x10x8xf32, #tpu.memory_space<vmem>>, vector<1x10x1x8xf32>,
    %cst_21 = arith.constant 0.000000e+00 : f32
    %17 = vector.broadcast %cst_21 : f32 to vector<1x10x1x8xf32>
    %c0_22 = arith.constant 0 : index
    %c0_23 = arith.constant 0 : index
    %c9_24 = arith.constant 9 : index
    %c0_25 = arith.constant 0 : index
    %18 = vector.load %arg7[%c0_22, %c0_23, %c9_24, %c0_25] : memref<1x10x10x8xf32, #tpu.memory_space<vmem>>, vector<1x10x1x8xf32>
    tpu.vector_store %arg7[%c0_22, %c0_23, %c9_24, %c0_25], %17 {strides = array<i32>} : memref<1x10x10x8xf32, #tpu.memory_space<vmem>>, vector<1x10x1x8xf32>,
    %c0_26 = arith.constant 0 : index
    %c1 = arith.constant 1 : index
    %c1_27 = arith.constant 1 : index
    %c0_28 = arith.constant 0 : index
    %19 = vector.load %arg7[%c0_26, %c1, %c1_27, %c0_28] : memref<1x10x10x8xf32, #tpu.memory_space<vmem>>, vector<1x8x8x8xf32>
    tpu.vector_store %arg7[%c0_26, %c1, %c1_27, %c0_28], %10 {strides = array<i32>} : memref<1x10x10x8xf32, #tpu.memory_space<vmem>>, vector<1x8x8x8xf32>,
    %c0_29 = arith.constant 0 : index
    %c0_30 = arith.constant 0 : index
    %c0_31 = arith.constant 0 : index
    %c0_32 = arith.constant 0 : index
    %20 = vector.load %arg7[%c0_29, %c0_30, %c0_31, %c0_32] : memref<1x10x10x8xf32, #tpu.memory_space<vmem>>, vector<1x8x8x8xf32>
    %c0_33 = arith.constant 0 : index
    %c0_34 = arith.constant 0 : index
    %c1_35 = arith.constant 1 : index
    %c0_36 = arith.constant 0 : index
    %21 = vector.load %arg7[%c0_33, %c0_34, %c1_35, %c0_36] : memref<1x10x10x8xf32, #tpu.memory_space<vmem>>, vector<1x8x8x8xf32>
    %c0_37 = arith.constant 0 : index
    %c0_38 = arith.constant 0 : index
    %c2 = arith.constant 2 : index
    %c0_39 = arith.constant 0 : index
    %22 = vector.load %arg7[%c0_37, %c0_38, %c2, %c0_39] : memref<1x10x10x8xf32, #tpu.memory_space<vmem>>, vector<1x8x8x8xf32>
    %c0_40 = arith.constant 0 : index
    %c1_41 = arith.constant 1 : index
    %c0_42 = arith.constant 0 : index
    %c0_43 = arith.constant 0 : index
    %23 = vector.load %arg7[%c0_40, %c1_41, %c0_42, %c0_43] : memref<1x10x10x8xf32, #tpu.memory_space<vmem>>, vector<1x8x8x8xf32>
    %c0_44 = arith.constant 0 : index
    %c1_45 = arith.constant 1 : index
    %c1_46 = arith.constant 1 : index
    %c0_47 = arith.constant 0 : index
    %24 = vector.load %arg7[%c0_44, %c1_45, %c1_46, %c0_47] : memref<1x10x10x8xf32, #tpu.memory_space<vmem>>, vector<1x8x8x8xf32>
    %c0_48 = arith.constant 0 : index
    %c1_49 = arith.constant 1 : index
    %c2_50 = arith.constant 2 : index
    %c0_51 = arith.constant 0 : index
    %25 = vector.load %arg7[%c0_48, %c1_49, %c2_50, %c0_51] : memref<1x10x10x8xf32, #tpu.memory_space<vmem>>, vector<1x8x8x8xf32>
    %c0_52 = arith.constant 0 : index
    %c2_53 = arith.constant 2 : index
    %c0_54 = arith.constant 0 : index
    %c0_55 = arith.constant 0 : index
    %26 = vector.load %arg7[%c0_52, %c2_53, %c0_54, %c0_55] : memref<1x10x10x8xf32, #tpu.memory_space<vmem>>, vector<1x8x8x8xf32>
    %c0_56 = arith.constant 0 : index
    %c2_57 = arith.constant 2 : index
    %c1_58 = arith.constant 1 : index
    %c0_59 = arith.constant 0 : index
    %27 = vector.load %arg7[%c0_56, %c2_57, %c1_58, %c0_59] : memref<1x10x10x8xf32, #tpu.memory_space<vmem>>, vector<1x8x8x8xf32>
    %c0_60 = arith.constant 0 : index
    %c2_61 = arith.constant 2 : index
    %c2_62 = arith.constant 2 : index
    %c0_63 = arith.constant 0 : index
    %28 = vector.load %arg7[%c0_60, %c2_61, %c2_62, %c0_63] : memref<1x10x10x8xf32, #tpu.memory_space<vmem>>, vector<1x8x8x8xf32>
    %29 = tpu.concatenate %20, %21, %22, %23, %24, %25, %26, %27, %28 in 3 : vector<1x8x8x8xf32>, vector<1x8x8x8xf32>, vector<1x8x8x8xf32>, vector<1x8x8x8xf32>, vector<1x8x8x8xf32>, vector<1x8x8x8xf32>, vector<1x8x8x8xf32>, vector<1x8x8x8xf32>, vector<1x8x8x8xf32> -> vector<1x8x8x72xf32>
    %30 = vector.shape_cast %29 : vector<1x8x8x72xf32> to vector<64x72xf32>
    %c0_64 = arith.constant 0 : index
    %c0_65 = arith.constant 0 : index
    %31 = vector.load %arg4[%c0_64, %c0_65] : memref<72x8xf32, #tpu.memory_space<vmem>>, vector<72x8xf32>
    %cst_66 = arith.constant dense<0.000000e+00> : vector<64x8xf32>
    %32 = tpu.matmul %30, %31, %cst_66 {dimension_numbers = #tpu.dot_dimension_numbers<[1], [0], [0], [1], [0, 0, 1, 1], [], []>} : vector<64x72xf32>, vector<72x8xf32>, vector<64x8xf32> -> vector<64x8xf32>
    %c0_67 = arith.constant 0 : index
    %c0_68 = arith.constant 0 : index
    %c0_69 = arith.constant 0 : index
    %33 = vector.load %arg5[%c0_67, %c0_68, %c0_69] : memref<1x64x8xf32, #tpu.memory_space<vmem>>, vector<1x64x8xf32>
    %34 = vector.shape_cast %33 : vector<1x64x8xf32> to vector<64x8xf32>
    %35 = vector.shape_cast %32 : vector<64x8xf32> to vector<1x64x8xf32>
    tpu.vector_store %arg5[%c0_67, %c0_68, %c0_69], %35 {strides = array<i32>} : memref<1x64x8xf32, #tpu.memory_space<vmem>>, vector<1x64x8xf32>,
    %cst_70 = arith.constant dense<0.000000e+00> : vector<8xf32>
    %36 = vector.multi_reduction <add>, %32, %cst_70 [0] : vector<64x8xf32> to vector<8xf32>
    %37 = vector.shape_cast %36 : vector<8xf32> to vector<1x8xf32>
    %38 = arith.mulf %32, %32 : vector<64x8xf32>
    %cst_71 = arith.constant dense<0.000000e+00> : vector<8xf32>
    %39 = vector.multi_reduction <add>, %38, %cst_71 [0] : vector<64x8xf32> to vector<8xf32>
    %40 = vector.shape_cast %39 : vector<8xf32> to vector<1x8xf32>
    %41 = tpu.concatenate %37, %40 in 0 : vector<1x8xf32>, vector<1x8xf32> -> vector<2x8xf32>
    %c0_72 = arith.constant 0 : index
    %c0_73 = arith.constant 0 : index
    %c0_74 = arith.constant 0 : index
    %42 = vector.load %arg6[%c0_72, %c0_73, %c0_74] : memref<1x2x8xf32, #tpu.memory_space<vmem>>, vector<1x2x8xf32>
    %43 = vector.shape_cast %42 : vector<1x2x8xf32> to vector<2x8xf32>
    %44 = vector.shape_cast %41 : vector<2x8xf32> to vector<1x2x8xf32>
    tpu.vector_store %arg6[%c0_72, %c0_73, %c0_74], %44 {strides = array<i32>} : memref<1x2x8xf32, #tpu.memory_space<vmem>>, vector<1x2x8xf32>,
    return
  }
  func.func @transform_0(%arg0: i32) -> (i32, i32, i32, i32) {
    %c0_i32 = arith.constant 0 : i32
    %c0_i32_0 = arith.constant 0 : i32
    %c0_i32_1 = arith.constant 0 : i32
    %c0_i32_2 = arith.constant 0 : i32
    return %arg0, %c0_i32, %c0_i32_0, %c0_i32_1 : i32, i32, i32, i32
  }
  func.func @transform_1(%arg0: i32) -> (i32, i32) {
    %c0_i32 = arith.constant 0 : i32
    %c0_i32_0 = arith.constant 0 : i32
    %c0_i32_1 = arith.constant 0 : i32
    return %c0_i32, %c0_i32_0 : i32, i32
  }
  func.func @transform_2(%arg0: i32) -> (i32, i32) {
    %c0_i32 = arith.constant 0 : i32
    %c0_i32_0 = arith.constant 0 : i32
    %c0_i32_1 = arith.constant 0 : i32
    return %c0_i32, %c0_i32_0 : i32, i32
  }
  func.func @transform_3(%arg0: i32) -> (i32, i32) {
    %c0_i32 = arith.constant 0 : i32
    %c0_i32_0 = arith.constant 0 : i32
    %c0_i32_1 = arith.constant 0 : i32
    return %c0_i32, %c0_i32_0 : i32, i32
  }
  func.func @transform_4(%arg0: i32) -> (i32, i32, i32) {
    %c0_i32 = arith.constant 0 : i32
    %c0_i32_0 = arith.constant 0 : i32
    %c0_i32_1 = arith.constant 0 : i32
    return %arg0, %c0_i32, %c0_i32_0 : i32, i32, i32
  }
  func.func @transform_5(%arg0: i32) -> (i32, i32, i32) {
    %c0_i32 = arith.constant 0 : i32
    %c0_i32_0 = arith.constant 0 : i32
    %c0_i32_1 = arith.constant 0 : i32
    return %arg0, %c0_i32, %c0_i32_0 : i32, i32, i32
  }
}

module attributes {stable_mosaic.version = 11 : i64} {
  func.func @_bn2_add_relu_kernel(%arg0: i32, %arg1: memref<1x8x64xf32, #tpu.memory_space<vmem>>, %arg2: memref<1x8x64xf32, #tpu.memory_space<vmem>>, %arg3: memref<1x64xf32, #tpu.memory_space<vmem>>, %arg4: memref<1x64xf32, #tpu.memory_space<vmem>>, %arg5: memref<1x64xf32, #tpu.memory_space<vmem>>, %arg6: memref<1x64xf32, #tpu.memory_space<vmem>>, %arg7: memref<1x8x64xf32, #tpu.memory_space<vmem>>) attributes {dimension_semantics = [#tpu.dimension_semantics<parallel>], iteration_bounds = array<i64: 2>, scalar_prefetch = 0 : i64, scratch_operands = 0 : i64, tpu.core_type = #tpu.core_type<tc>, window_params = [{transform_indices = @transform_0, window_bounds = array<i64: 1, 8, 64>}, {transform_indices = @transform_1, window_bounds = array<i64: 1, 8, 64>}, {pipeline_mode = #tpu.pipeline_mode<synchronous>, transform_indices = @transform_2, window_bounds = array<i64: 1, 64>}, {pipeline_mode = #tpu.pipeline_mode<synchronous>, transform_indices = @transform_3, window_bounds = array<i64: 1, 64>}, {pipeline_mode = #tpu.pipeline_mode<synchronous>, transform_indices = @transform_4, window_bounds = array<i64: 1, 64>}, {pipeline_mode = #tpu.pipeline_mode<synchronous>, transform_indices = @transform_5, window_bounds = array<i64: 1, 64>}, {transform_indices = @transform_6, window_bounds = array<i64: 1, 8, 64>}]} {
    %c0 = arith.constant 0 : index
    %c0_0 = arith.constant 0 : index
    %c0_1 = arith.constant 0 : index
    %0 = vector.load %arg1[%c0, %c0_0, %c0_1] : memref<1x8x64xf32, #tpu.memory_space<vmem>>, vector<1x8x64xf32>
    %c0_2 = arith.constant 0 : index
    %c0_3 = arith.constant 0 : index
    %c0_4 = arith.constant 0 : index
    %1 = vector.load %arg2[%c0_2, %c0_3, %c0_4] : memref<1x8x64xf32, #tpu.memory_space<vmem>>, vector<1x8x64xf32>
    %c0_5 = arith.constant 0 : index
    %c0_6 = arith.constant 0 : index
    %2 = vector.load %arg3[%c0_5, %c0_6] : memref<1x64xf32, #tpu.memory_space<vmem>>, vector<1x64xf32>
    %3 = vector.shape_cast %2 : vector<1x64xf32> to vector<1x1x64xf32>
    %4 = vector.broadcast %3 : vector<1x1x64xf32> to vector<1x8x64xf32>
    %5 = arith.mulf %0, %4 : vector<1x8x64xf32>
    %c0_7 = arith.constant 0 : index
    %c0_8 = arith.constant 0 : index
    %6 = vector.load %arg4[%c0_7, %c0_8] : memref<1x64xf32, #tpu.memory_space<vmem>>, vector<1x64xf32>
    %7 = vector.shape_cast %6 : vector<1x64xf32> to vector<1x1x64xf32>
    %8 = vector.broadcast %7 : vector<1x1x64xf32> to vector<1x8x64xf32>
    %9 = arith.addf %5, %8 : vector<1x8x64xf32>
    %c0_9 = arith.constant 0 : index
    %c0_10 = arith.constant 0 : index
    %10 = vector.load %arg5[%c0_9, %c0_10] : memref<1x64xf32, #tpu.memory_space<vmem>>, vector<1x64xf32>
    %11 = vector.shape_cast %10 : vector<1x64xf32> to vector<1x1x64xf32>
    %12 = vector.broadcast %11 : vector<1x1x64xf32> to vector<1x8x64xf32>
    %13 = arith.mulf %1, %12 : vector<1x8x64xf32>
    %14 = arith.addf %9, %13 : vector<1x8x64xf32>
    %c0_11 = arith.constant 0 : index
    %c0_12 = arith.constant 0 : index
    %15 = vector.load %arg6[%c0_11, %c0_12] : memref<1x64xf32, #tpu.memory_space<vmem>>, vector<1x64xf32>
    %16 = vector.shape_cast %15 : vector<1x64xf32> to vector<1x1x64xf32>
    %17 = vector.broadcast %16 : vector<1x1x64xf32> to vector<1x8x64xf32>
    %18 = arith.addf %14, %17 : vector<1x8x64xf32>
    %cst = arith.constant 0.000000e+00 : f32
    %19 = vector.broadcast %cst : f32 to vector<1x8x64xf32>
    %20 = arith.maximumf %18, %19 : vector<1x8x64xf32>
    %c0_13 = arith.constant 0 : index
    %c0_14 = arith.constant 0 : index
    %c0_15 = arith.constant 0 : index
    %21 = vector.load %arg7[%c0_13, %c0_14, %c0_15] : memref<1x8x64xf32, #tpu.memory_space<vmem>>, vector<1x8x64xf32>
    tpu.vector_store %arg7[%c0_13, %c0_14, %c0_15], %20 {strides = array<i32>} : memref<1x8x64xf32, #tpu.memory_space<vmem>>, vector<1x8x64xf32>,
    return
  }
  func.func @transform_0(%arg0: i32) -> (i32, i32, i32) {
    %c0_i32 = arith.constant 0 : i32
    %c0_i32_0 = arith.constant 0 : i32
    %c0_i32_1 = arith.constant 0 : i32
    return %arg0, %c0_i32, %c0_i32_0 : i32, i32, i32
  }
  func.func @transform_1(%arg0: i32) -> (i32, i32, i32) {
    %c0_i32 = arith.constant 0 : i32
    %c0_i32_0 = arith.constant 0 : i32
    %c0_i32_1 = arith.constant 0 : i32
    return %arg0, %c0_i32, %c0_i32_0 : i32, i32, i32
  }
  func.func @transform_2(%arg0: i32) -> (i32, i32) {
    %c0_i32 = arith.constant 0 : i32
    %c0_i32_0 = arith.constant 0 : i32
    %c0_i32_1 = arith.constant 0 : i32
    return %c0_i32, %c0_i32_0 : i32, i32
  }
  func.func @transform_3(%arg0: i32) -> (i32, i32) {
    %c0_i32 = arith.constant 0 : i32
    %c0_i32_0 = arith.constant 0 : i32
    %c0_i32_1 = arith.constant 0 : i32
    return %c0_i32, %c0_i32_0 : i32, i32
  }
  func.func @transform_4(%arg0: i32) -> (i32, i32) {
    %c0_i32 = arith.constant 0 : i32
    %c0_i32_0 = arith.constant 0 : i32
    %c0_i32_1 = arith.constant 0 : i32
    return %c0_i32, %c0_i32_0 : i32, i32
  }
  func.func @transform_5(%arg0: i32) -> (i32, i32) {
    %c0_i32 = arith.constant 0 : i32
    %c0_i32_0 = arith.constant 0 : i32
    %c0_i32_1 = arith.constant 0 : i32
    return %c0_i32, %c0_i32_0 : i32, i32
  }
  func.func @transform_6(%arg0: i32) -> (i32, i32, i32) {
    %c0_i32 = arith.constant 0 : i32
    %c0_i32_0 = arith.constant 0 : i32
    %c0_i32_1 = arith.constant 0 : i32
    return %arg0, %c0_i32, %c0_i32_0 : i32, i32, i32
  }
}

</mosaic_0001>

<bundles_post_ra>
// kernel: basic_block_forward.4
= control target key start
LH: loop header
LB: loop body
LE: loop exit
PB: predicated region body
PF: predicated region fallthrough
CT: control target
= control target key end

     0   :  { %11 = vsyncpa [#allocation4], 0  ;;  %s2165_s0 = inlined_call_operand.hbm [shape: f32[2,8,8,8], index: 0, kind: input, shape index: {}]   ;;  %s2166_s1 = inlined_call_operand.hbm [shape: f32[1,8], index: 1, kind: input, shape index: {}]   ;;  %s2167_s2 = inlined_call_operand.hbm [shape: f32[1,8], index: 2, kind: input, shape index: {}]   ;;  %s2168_s3 = inlined_call_operand.hbm [shape: f32[72,8], index: 3, kind: input, shape index: {}]   ;;  %s2169_s4 = inlined_call_operand.hbm [shape: f32[2,64,8], index: 4, kind: output, shape index: {0}]   ;;  %s2170_s5 = inlined_call_operand.hbm [shape: f32[2,2,8], index: 5, kind: output, shape index: {1}]  }
   0x1   :  { %13 = vsyncpa [#allocation4 + $0x1], 0 }
   0x2   :  { %14 = vsyncpa [#allocation7], 0 }
   0x3   :  { %15 = vsyncpa [#allocation10], 0 }
   0x4   :  { %16 = vsyncpa [#allocation5], 0 }
   0x5   :  { %18 = vsyncpa [#allocation5 + $0x1], 0 }
   0x6   :  { %19 = vsyncpa [#allocation13], 0 }
   0x7   :  { %21 = vsyncpa [#allocation13 + $0x1], 0  ;;  %s1615_s18 = smov 0   ;;  %s1617_s19 = smov 0  }
   0x8   :  { %s1619_s20 = smov 0   ;;  %s1621_s21 = smov 0  }
   0x9 LB: > { %s1636_s22 = sadd.s32 4294967295, %s1565_s21   ;;  %s1143_s23 = sadd.s32 4294967294, %s1565_s21   ;;  %s1565_s21 = sphi %s1621_s21, %s2193_s21   ;;  %s1561_s20 = sphi %s1619_s20, %s2192_s20   ;;  %s1557_s19 = sphi %s1617_s19, %s2191_s19   ;;  %s1553_s18 = sphi %s1615_s18, %s2190_s18  }
   0xa   : > { %p47_p0 = scmp.ne.s32.totalorder %s1557_s19, %s1553_s18  ;;  %p2171_p1 = scmp.eq.s32.totalorder %s1636_s22, 0 }
   0xb   : > { %p140_p3 = scmp.eq.s32.totalorder %s1143_s23, 1  ;;  %p1144_p5 = scmp.ge.s32.totalorder %s1565_s21, 1 }
   0xc   : > { %p1645_p4 = por %p2171_p1, %p47_p0  ;;  %p173_p7 = scmp.lt.s32.totalorder %s1565_s21, 3 }
   0xd   : > { %p1650_p6 = por %p140_p3, %p47_p0  ;;  %s1567_s27 = smov [#allocation6]  }
   0xe   : > { %s2174_s24 = scalar_select %p1645_p4, 1, 0 }
   0xf   : > { %s2175_s25 = scalar_select %p1650_p6, 1, 0 }
  0x10   : > { %p1655_p8 = pnand %p1144_p5, %p173_p7  ;;  %s186_s28 = sshll.u32 %s1567_s27, 4  ;;  %s187_s28 = int_to_ptr.vmem [resolvable:$true] %s186_s28 }
  0x11   : > { %s1568_s29 = smov [#allocation8]   ;;  %s1569_s7 = smov [#allocation9]  }
  0x12   : > { %s2176_s26 = scalar_select %p1655_p8, 1, 0 }
  0x13   : > { %p1269_p10 = pneg %p1655_p8  ;;  %s197_s30 = sshll.u32 %s1568_s29, 4  ;;  %s1668_s30 = int_to_ptr.vmem [resolvable:$true] %s197_s30 }
  0x14   : > { %s207_s8 = sshll.u32 %s1569_s7, 4  ;;  %s1345_s11 = scalar_lea.hbm %s2166_s1, 16  ;;  %s1670_s8 = int_to_ptr.vmem [resolvable:$true] %s207_s8 }
  0x15   : > { %p1664_p11 = pnand %p1269_p10, %p2171_p1  ;;  %p1346_p12 = scmp.ne.s32.totalorder %s2166_s1, %s1345_s11 }
  0x16   : > { %p1352_p5 = scmp.lt.u32.totalorder %s1345_s11, %s2166_s1 }
  0x17   : > { %p1680_p13 = pneg %p1664_p11 }
  0x19   : > { %p1348_p0 = pnand %p1680_p13, %p1346_p12 }
  0x1b   : > { %p1349_p3 = pneg %p1348_p0 }
  0x1d   : > { %p1354_p7 = pnand %p1352_p5, %p1349_p3 }
  0x1f   : > { %1357 = shalt.err (!%p1354_p7)
}
  0x20   : > { %s1358_s17 = scalar_lea.vmem %s187_s28, 16  ;;  %s1365_s23 = scalar_lea.vmem %s187_s28, 32 }
  0x21   : > { %p1359_p10 = scmp.ne.s32.totalorder %s187_s28, %s1358_s17  ;;  %p1366_p2 = scmp.lt.s32.totalorder %s187_s28, %s187_s28 }
  0x22   : > { %p1367_p6 = scmp.lt.s32.totalorder %s1365_s23, %s1358_s17 }
  0x23   : > { %p1361_p9 = pnand %p1359_p10, %p1680_p13 }
  0x24   : > { %p1368_p4 = por %p1367_p6, %p1366_p2 }
  0x25   : > { %p1362_p1 = pneg %p1361_p9 }
  0x27   : > { %p1369_p8 = pnand %p1368_p4, %p1362_p1 }
  0x29   : > { %1372 = shalt.err (!%p1369_p8)
}
  0x2a   : > { %1272 = dma.hbm_to_vmem [thread:$0]  (!%p1664_p11), %s2166_s1, 16, %s187_s28, [#allocation7]  }
  0x2b   : > { %s1373_s10 = scalar_lea.hbm %s2167_s2, 16 }
  0x2c   : > { %p1374_p9 = scmp.ne.s32.totalorder %s2167_s2, %s1373_s10  ;;  %p1380_p1 = scmp.lt.u32.totalorder %s1373_s10, %s2167_s2 }
  0x2e   : > { %p1376_p12 = pnand %p1374_p9, %p1680_p13 }
  0x30   : > { %p1377_p2 = pneg %p1376_p12 }
  0x32   : > { %p1382_p4 = pnand %p1380_p1, %p1377_p2 }
  0x34   : > { %1385 = shalt.err (!%p1382_p4)
}
  0x35   : > { %s1386_s28 = scalar_lea.vmem %s1668_s30, 16  ;;  %s1393_s16 = scalar_lea.vmem %s1668_s30, 32 }
  0x36   : > { %p1387_p6 = scmp.ne.s32.totalorder %s1668_s30, %s1386_s28  ;;  %p1394_p3 = scmp.lt.s32.totalorder %s1668_s30, %s1668_s30 }
  0x37   : > { %p1395_p5 = scmp.lt.s32.totalorder %s1393_s16, %s1386_s28 }
  0x38   : > { %p1389_p8 = pnand %p1387_p6, %p1680_p13 }
  0x39   : > { %p1396_p7 = por %p1395_p5, %p1394_p3 }
  0x3a   : > { %p1390_p0 = pneg %p1389_p8 }
  0x3c   : > { %p1397_p10 = pnand %p1396_p7, %p1390_p0 }
  0x3e   : > { %1400 = shalt.err (!%p1397_p10)
}
  0x3f   : > { %1275 = dma.hbm_to_vmem [thread:$0]  (!%p1664_p11), %s2167_s2, 16, %s1668_s30, [#allocation7]  }
  0x40   : > { %s1401_s7 = scalar_lea.hbm %s2168_s3, 1152 }
  0x41   : > { %p1402_p9 = scmp.ne.s32.totalorder %s2168_s3, %s1401_s7  ;;  %p1408_p1 = scmp.lt.u32.totalorder %s1401_s7, %s2168_s3 }
  0x43   : > { %p1404_p12 = pnand %p1402_p9, %p1680_p13 }
  0x45   : > { %p1405_p2 = pneg %p1404_p12 }
  0x47   : > { %p1410_p4 = pnand %p1408_p1, %p1405_p2 }
  0x49   : > { %1413 = shalt.err (!%p1410_p4)
}
  0x4a   : > { %s1414_s30 = scalar_lea.vmem %s1670_s8, 1152  ;;  %p1422_p3 = scmp.lt.s32.totalorder %s1670_s8, %s1670_s8 }
  0x4b   : > { %p1415_p6 = scmp.ne.s32.totalorder %s1670_s8, %s1414_s30  ;;  %p1423_p5 = scmp.lt.s32.totalorder %s1414_s30, %s1414_s30 }
  0x4d   : > { %p1417_p8 = pnand %p1415_p6, %p1680_p13  ;;  %p1424_p7 = por %p1423_p5, %p1422_p3 }
  0x4f   : > { %p1418_p0 = pneg %p1417_p8 }
  0x51   : > { %p1425_p10 = pnand %p1424_p7, %p1418_p0 }
  0x53   : > { %1428 = shalt.err (!%p1425_p10)
}
  0x54   : > { %s1570_s13 = smov 128   ;;  %s1571_s14 = smov 8  }
  0x55   : > { %1278 = dma.hbm_to_vmem [thread:$0]  (!%p1664_p11), %s2168_s3, 1152, %s1670_s8, [#allocation10], %s1570_s13, %s1570_s13, %s1571_s14  }
  0x56   : > { %s1747_s16 = sadd.s32 1, %s1565_s21   ;;  %s34_s23 = sadd.s32 1, %s1561_s20 }
  0x57   : > { %s31_s17 = ssub.s32 %s1565_s21, %s1747_s16  ;;  %p41_p9 = scmp.ne.s32.totalorder %s1561_s20, %s1557_s19 }
  0x58   : > { %p32_p13 = scmp.eq.s32.totalorder %s31_s17, 0  ;;  %p42_p12 = scmp.eq.s32.totalorder %s1565_s21, 0 }
  0x59   : > { %p1293_p2 = scmp.lt.s32.totalorder %s1565_s21, 2  ;;  %p2179_p4 = scmp.eq.s32.totalorder %s1636_s22, 1 }
  0x5a   : > { %s1757_s27 = scalar_select %p32_p13, %s1561_s20, %s34_s23  }
  0x5b   : > { %p43_p1 = por %p42_p12, %p41_p9  ;;  %p1761_p6 = por %p2179_p4, %p41_p9 }
  0x5c   : > { %s221_s29 = sand.u32 1, %s1561_s20   ;;  %s1176_s7 = sshll.u32 %s1565_s21, 10 }
  0x5d   : > { %s1149_s8 = sshll.u32 %s221_s29, 6  ;;  %s1770_s11 = scalar_lea.hbm %s2165_s0, %s1176_s7 }
  0x5e   : > { %s225_s12 = scalar_lea.vmem [#allocation3], %s1149_s8  ;;  %p1772_p11 = pnand %p1293_p2, %p43_p1 }
  0x5f   : > { %s232_s30 = sshll.u32 %s225_s12, 4  ;;  %s1778_s28 = scalar_lea.sflag [#allocation4], %s221_s29  ;;  %s1776_s30 = int_to_ptr.vmem [resolvable:$true] %s232_s30 }
  0x60   : > { %s1429_s17 = scalar_lea.hbm %s1770_s11, 1024  ;;  %p1431_p0 = pneg %p1772_p11 }
  0x61   : > { %p1430_p8 = scmp.ne.s32.totalorder %s1770_s11, %s1429_s17  ;;  %s1434_s8 = scalar_lea.hbm %s2165_s0, 2048 }
  0x62   : > { %p1435_p7 = scmp.lt.u32.totalorder %s1770_s11, %s2165_s0  ;;  %p1436_p10 = scmp.lt.u32.totalorder %s1434_s8, %s1429_s17 }
  0x63   : > { %p1432_p3 = pnand %p1431_p0, %p1430_p8  ;;  %p1438_p9 = scmp.lt.u32.totalorder %s1429_s17, %s1770_s11 }
  0x64   : > { %p1437_p13 = por %p1436_p10, %p1435_p7 }
  0x65   : > { %p1433_p5 = pneg %p1432_p3 }
  0x66   : > { %p1439_p12 = por %p1438_p9, %p1437_p13 }
  0x68   : > { %p1440_p2 = pnand %p1439_p12, %p1433_p5 }
  0x6a   : > { %1443 = shalt.err (!%p1440_p2)
}
  0x6b   : > { %s1444_s29 = scalar_lea.vmem %s1776_s30, 1024  ;;  %s1572_s12 = smov [#allocation3]  }
  0x6c   : > { %p1445_p1 = scmp.ne.s32.totalorder %s1776_s30, %s1444_s29  ;;  %s1449_s23 = sshll.u32 %s1572_s12, 4  ;;  %s1450_s23 = int_to_ptr.vmem [resolvable:$false] %s1449_s23 }
  0x6d   : > { %s1451_s7 = scalar_lea.vmem %s1450_s23, 2048  ;;  %p1452_p3 = scmp.lt.s32.totalorder %s1776_s30, %s1450_s23 }
  0x6e   : > { %p1447_p4 = pnand %p1445_p1, %p1431_p0  ;;  %p1453_p7 = scmp.lt.s32.totalorder %s1451_s7, %s1444_s29 }
  0x70   : > { %p1448_p8 = pneg %p1447_p4  ;;  %p1454_p10 = por %p1453_p7, %p1452_p3 }
  0x72   : > { %p1455_p13 = pnand %p1454_p10, %p1448_p8 }
  0x74   : > { %1458 = shalt.err (!%p1455_p13)
}
  0x75   : > { %1282 = dma.hbm_to_vmem [thread:$0]  (!%p1772_p11), %s1770_s11, 1024, %s1776_s30, %s1778_s28, %s1570_s13, %s1570_s13, %s1571_s14  }
  0x76   : > { %p2182_p0 = scmp.ne.s32.totalorder %s2176_s26, 0 }
  0x77   : > { %s1812_s17 = sand.u32 (!%p2182_p0), 1, %s1557_s19   ;;  %p2183_p5 = scmp.ne.s32.totalorder (!%p2182_p0), %s2174_s24, 0 }
  0x78   : > { %244 = sbr.rel (%p2182_p0) target bundleno = 653 (0x28d), region = 36  ;;  %s1153_s8 = sshll.u32 (!%p2182_p0), %s1812_s17, 6 }
  0x79   : > { %s247_s9 = scalar_lea.sflag (!%p2182_p0), [#allocation4], %s1812_s17  ;;  %s1818_s15 = scalar_lea.vmem (!%p2182_p0), [#allocation3], %s1153_s8 }
  0x7f   : > { %1532 = dma.done.wait (%p2183_p5), %s247_s9, 1024  }
  0x80   : > { %1534 = vsyncadd (%p2183_p5), %s247_s9, 4294966272  ;;  %p2184_p11 = scmp.eq.s32.totalorder %s1636_s22, 0 }
  0x82   : > { %1536 = dma.done.wait (%p2184_p11), [#allocation7], 32   ;;  %p2185_p9 = pmov %p2184_p11 }
  0x84   : > { %1538 = vsyncadd (%p2185_p9), [#allocation7], 4294967264  ;;  %p2186_p12 = pmov %p2185_p9 }
  0x85   : > { %p2187_p2 = pmov %p2185_p9 }
  0x86   : > { %1540 = dma.done.wait (%p2186_p12), [#allocation10], 1152  }
  0x87   : > { %1542 = vsyncadd (%p2187_p2), [#allocation10], 4294966144  ;;  %vm340_vm0 = vcmask 64512   ;;  %vm342_vm1 = vcmask 58368   ;;  %vm347_vm2 = vcmask 57344   ;;  %v1573_v0 = vmov 0.0  }
  0x88   : > { %341 = vst.msk [vmem:[#allocation2] sm:$0xff] %vm340_vm0, %v1573_v0  ;;  %345 = vst.msk [vmem:[#allocation2 + $0x90] sm:$0xff] %vm340_vm0, %v1573_v0  ;;  %v294_v1 = vld [vmem:[%s1818_s15] sm:$0xff]  ;;  %v295_v6 = vld [vmem:[%s1818_s15 + $0x8] sm:$0xff]  ;;  %s1574_s24 = smov 8   ;;  %s1575_s26 = smov 16  }
  0x89   : > { %343 = vst.msk [vmem:[#allocation2 + $0x8] sm:$0x3] %vm342_vm1, %v1573_v0  ;;  %346 = vst.msk [vmem:[#allocation2 + $0x98] sm:$0x3] %vm342_vm1, %v1573_v0  ;;  %v1159_v2 = vld [vmem:[#allocation6] ss:$0 sm:$0xff] }
  0x8a   : > { %349 = vst.msk [vmem:[#allocation2 + $0x10] sm:$0x1] %vm347_vm2, %v1573_v0  ;;  %350 = vst.msk [vmem:[#allocation2 + $0x20] sm:$0x1] %vm347_vm2, %v1573_v0  ;;  %v1160_v3 = vld [vmem:[#allocation8] ss:$0 sm:$0xff]  ;;  %v309_v5 = vmul.f32 %v1159_v2, %v294_v1  ;;  %v310_v9 = vmul.f32 %v1159_v2, %v295_v6 }
  0x8b   : > { %351 = vst.msk [vmem:[#allocation2 + $0x30] sm:$0x1] %vm347_vm2, %v1573_v0  ;;  %352 = vst.msk [vmem:[#allocation2 + $0x40] sm:$0x1] %vm347_vm2, %v1573_v0  ;;  %v296_v7 = vld [vmem:[%s1818_s15 + $0x10] sm:$0xff]  ;;  %v297_v11 = vld [vmem:[%s1818_s15 + $0x18] sm:$0xff] }
  0x8c   : > { %353 = vst.msk [vmem:[#allocation2 + $0x50] sm:$0x1] %vm347_vm2, %v1573_v0  ;;  %354 = vst.msk [vmem:[#allocation2 + $0x60] sm:$0x1] %vm347_vm2, %v1573_v0  ;;  %v311_v10 = vmul.f32 %v1159_v2, %v296_v7  ;;  %v298_v12 = vld [vmem:[%s1818_s15 + $0x20] sm:$0xff]  ;;  %v324_v13 = vadd.f32 %v1160_v3, %v309_v5  ;;  %v312_v14 = vmul.f32 %v1159_v2, %v297_v11  ;;  %v299_v16 = vld [vmem:[%s1818_s15 + $0x28] sm:$0xff] }
  0x8d   : > { %355 = vst.msk [vmem:[#allocation2 + $0x70] sm:$0x1] %vm347_vm2, %v1573_v0  ;;  %356 = vst.msk [vmem:[#allocation2 + $0x80] sm:$0x1] %vm347_vm2, %v1573_v0  ;;  %v313_v15 = vmul.f32 %v1159_v2, %v298_v12  ;;  %v300_v17 = vld [vmem:[%s1818_s15 + $0x30] sm:$0xff]  ;;  %v301_v18 = vld [vmem:[%s1818_s15 + $0x38] sm:$0xff]  ;;  %v325_v19 = vadd.f32 %v1160_v3, %v310_v9  ;;  %v314_v21 = vmul.f32 %v1159_v2, %v299_v16 }
  0x8e   : > { %359 = vst.msk [vmem:[#allocation2 + $0x19] sm:$0x1] %vm347_vm2, %v1573_v0  ;;  %360 = vst.msk [vmem:[#allocation2 + $0x29] sm:$0x1] %vm347_vm2, %v1573_v0  ;;  %v326_v20 = vadd.f32 %v1160_v3, %v311_v10  ;;  %v315_v22 = vmul.f32 %v1159_v2, %v300_v17  ;;  %v332_v23 = vmax.f32 %v324_v13, 0.0  ;;  %v327_v24 = vadd.f32 %v1160_v3, %v312_v14  ;;  %s1576_s13 = smov 24  }
  0x8f   : > { %361 = vst.msk [vmem:[#allocation2 + $0x39] sm:$0x1] %vm347_vm2, %v1573_v0  ;;  %362 = vst.msk [vmem:[#allocation2 + $0x49] sm:$0x1] %vm347_vm2, %v1573_v0  ;;  %v328_v25 = vadd.f32 %v1160_v3, %v313_v15  ;;  %v316_v26 = vmul.f32 %v1159_v2, %v301_v18  ;;  %v333_v27 = vmax.f32 %v325_v19, 0.0  ;;  %v329_v29 = vadd.f32 %v1160_v3, %v314_v21  ;;  %s1577_s14 = smov 32  }
  0x90   : > { %363 = vst.msk [vmem:[#allocation2 + $0x59] sm:$0x1] %vm347_vm2, %v1573_v0  ;;  %364 = vst.msk [vmem:[#allocation2 + $0x69] sm:$0x1] %vm347_vm2, %v1573_v0  ;;  %v385_v4 = vld [vmem:[#allocation2 + $0x1] sm:$0xff]  ;;  %v334_v28 = vmax.f32 %v326_v20, 0.0  ;;  %v330_v30 = vadd.f32 %v1160_v3, %v315_v22 }
  0x91   : > { %365 = vst.msk [vmem:[#allocation2 + $0x79] sm:$0x1] %vm347_vm2, %v1573_v0  ;;  %366 = vst.msk [vmem:[#allocation2 + $0x89] sm:$0x1] %vm347_vm2, %v1573_v0  ;;  %458 = vrot.lane.b32.xlu0 %v385_v4, %s1574_s24  ;;  %v335_v31 = vmax.f32 %v327_v24, 0.0  ;;  %v336_v32 = vmax.f32 %v328_v25, 0.0  ;;  %v331_v33 = vadd.f32 %v1160_v3, %v316_v26 }
  0x92   : > { %358 = vst.msk [vmem:[#allocation2 + $0x9] sm:$0x1] %vm347_vm2, %v1573_v0  ;;  %348 = vst.msk [vmem:[#allocation2] sm:$0x1] %vm347_vm2, %v1573_v0  ;;  %v337_v34 = vmax.f32 %v329_v29, 0.0  ;;  %v338_v35 = vmax.f32 %v330_v30, 0.0 }
  0x93   : > { %357 = vst.msk [vmem:[#allocation2 + $0x90] sm:$0x1] %vm347_vm2, %v1573_v0  ;;  %367 = vst.msk [vmem:[#allocation2 + $0x99] sm:$0x1] %vm347_vm2, %v1573_v0  ;;  %v339_v36 = vmax.f32 %v331_v33, 0.0  ;;  %v777_v42 = vld [vmem:[#allocation9] sm:$0xff] }
  0x94   : > { %369 = vst.msk [vmem:[#allocation2 + $0x11] sm:$0xff] %vm340_vm0, %v332_v23  ;;  %370 = vst.msk [vmem:[#allocation2 + $0x21] sm:$0xff] %vm340_vm0, %v333_v27  ;;  %v778_v43 = vld [vmem:[#allocation9 + $0x8] sm:$0xff]  ;;  %s1578_s11 = smov 40   ;;  %v779_v47 = vld [vmem:[#allocation9 + $0x10] sm:$0xff]  ;;  %s1579_s30 = smov 48  }
  0x95   : > { %371 = vst.msk [vmem:[#allocation2 + $0x31] sm:$0xff] %vm340_vm0, %v334_v28  ;;  %372 = vst.msk [vmem:[#allocation2 + $0x41] sm:$0xff] %vm340_vm0, %v335_v31  ;;  %v1225_v44 = vpack.c.bf16 %v778_v43, %v777_v42  ;;  %v780_v48 = vld [vmem:[#allocation9 + $0x18] sm:$0xff]  ;;  %v781_v50 = vld [vmem:[#allocation9 + $0x20] sm:$0xff]  ;;  %s1580_s28 = smov 56   ;;  %s1581_s10 = smov 64  }
  0x96   : > { %373 = vst.msk [vmem:[#allocation2 + $0x51] sm:$0xff] %vm340_vm0, %v336_v32  ;;  %374 = vst.msk [vmem:[#allocation2 + $0x61] sm:$0xff] %vm340_vm0, %v337_v34  ;;  %v1229_v49 = vpack.c.bf16 %v780_v48, %v779_v47  ;;  %v782_v51 = vld [vmem:[#allocation9 + $0x28] sm:$0xff]  ;;  %v783_v55 = vld [vmem:[#allocation9 + $0x30] sm:$0xff]  ;;  %vm714_vm3 = vcmask 130048   ;;  %vm723_vm4 = vcmask 195584  }
  0x97   : > { %375 = vst.msk [vmem:[#allocation2 + $0x71] sm:$0xff] %vm340_vm0, %v338_v35  ;;  %376 = vst.msk [vmem:[#allocation2 + $0x81] sm:$0xff] %vm340_vm0, %v339_v36  ;;  %1226 = vmatprep.subr.bf16.mxu0 %v1225_v44  ;;  %1241 = vmatprep.subr.bf16.mxu1 %v1225_v44  ;;  %v1233_v52 = vpack.c.bf16 %v782_v51, %v781_v50  ;;  %v784_v56 = vld [vmem:[#allocation9 + $0x38] sm:$0xff]  ;;  %v785_v58 = vld [vmem:[#allocation9 + $0x40] sm:$0xff]  ;;  %vm732_vm5 = vcmask 261120   ;;  %vm741_vm6 = vcmask 326656  }
  0x98   : > { %1228 = vmatpush3.bf16.msra.mxu0 %v1225_v44  ;;  %1246 = vmatpush3.bf16.msra.mxu1 %v1225_v44  ;;  %v1237_v57 = vpack.c.bf16 %v784_v56, %v783_v55  ;;  %v441_v13 = vld [vmem:[#allocation2 + $0x91] sm:$0xff]  ;;  %vm750_vm7 = vcmask 392192   ;;  %vm759_vm8 = vcmask 457728   ;;  %vm768_vm9 = vcmask 523264   ;;  %s2047_s29 = scalar_lea.vmem [#allocation11], %s1153_s8  ;;  %s1177_s23 = sshll.u32 %s1636_s22, 10 }
  0x99   : > { %v393_v8 = vld [vmem:[#allocation2 + $0x2] sm:$0xff]  ;;  %1230 = vmatprep.subr.bf16.mxu0 %v1229_v49  ;;  %1242 = vmatprep.subr.bf16.mxu1 %v1229_v49  ;;  %vm786_vm10 = vcmask 588800   ;;  %s996_s12 = sshll.u32 %s2047_s29, 4  ;;  %s2080_s9 = scalar_lea.hbm %s2169_s4, %s1177_s23  ;;  %s2075_s12 = int_to_ptr.vmem [resolvable:$true] %s996_s12 }
  0x9a   : > { %490 = vrot.lane.b32.xlu1 %v393_v8, %s1575_s26  ;;  %v433_v12 = vld [vmem:[#allocation2 + $0x90] sm:$0xff]  ;;  %v377_v29 = vld [vmem:[#allocation2] sm:$0xff]  ;;  %s978_s15 = scalar_lea.sflag [#allocation5], %s1812_s17 }
  0x9b   : > { %v394_v37 = vld [vmem:[#allocation2 + $0x12] sm:$0xff]  ;;  %v1876_v39 = vld [vmem:[#allocation2 + $0x20] sm:$0xff] }
  0x9c   : > { %v386_v38 = vld [vmem:[#allocation2 + $0x11] sm:$0xff]  ;;  %v387_v41 = vld [vmem:[#allocation2 + $0x21] sm:$0xff]  ;;  %1232 = vmatpush3.bf16.msra.mxu0 %v1229_v49  ;;  %1247 = vmatpush3.bf16.msra.mxu1 %v1229_v49 }
  0x9d   : > { %460 = vrot.lane.b32.xlu0 %v386_v38, %s1574_s24  ;;  %v1878_v40 = vld [vmem:[#allocation2 + $0x10] sm:$0xff]  ;;  %v395_v45 = vld [vmem:[#allocation2 + $0x22] sm:$0xff]  ;;  %1234 = vmatprep.subr.bf16.mxu0 %v1233_v52 }
  0x9e   : > { %492 = vrot.lane.b32.xlu1 %v394_v37, %s1575_s26  ;;  %v388_v46 = vld [vmem:[#allocation2 + $0x31] sm:$0xff]  ;;  %1243 = vmatprep.subr.bf16.mxu1 %v1233_v52  ;;  %v1901_v59 = vld [vmem:[#allocation2 + $0x40] sm:$0xff] }
  0x9f   : > { %v1893_v53 = vld [vmem:[#allocation2 + $0x30] sm:$0xff]  ;;  %v412_v60 = vld [vmem:[#allocation2 + $0x41] sm:$0xff] }
  0xa0   : > { %v396_v54 = vld [vmem:[#allocation2 + $0x32] sm:$0xff]  ;;  %1236 = vmatpush3.bf16.msra.mxu0 %v1233_v52  ;;  %1248 = vmatpush3.bf16.msra.mxu1 %v1233_v52  ;;  %v397_v61 = vld [vmem:[#allocation2 + $0x42] sm:$0xff] }
  0xa1   : > { %522 = vrot.lane.b32.xlu0 %v1878_v40, %s1576_s13  ;;  %1238 = vmatprep.subr.bf16.mxu0 %v1237_v57  ;;  %v390_v62 = vld [vmem:[#allocation2 + $0x51] sm:$0xff]  ;;  %v1925_v1 = vld [vmem:[#allocation2 + $0x60] sm:$0xff] }
  0xa2   : > { %524 = vrot.lane.b32.xlu1 %v1876_v39, %s1576_s13  ;;  %1244 = vmatprep.subr.bf16.mxu1 %v1237_v57  ;;  %v1917_v63 = vld [vmem:[#allocation2 + $0x50] sm:$0xff]  ;;  %v414_v2 = vld [vmem:[#allocation2 + $0x61] sm:$0xff] }
  0xa3   : > { %v398_v0 = vld [vmem:[#allocation2 + $0x52] sm:$0xff]  ;;  %v399_v3 = vld [vmem:[#allocation2 + $0x62] sm:$0xff] }
  0xa4   : > { %1240 = vmatpush3.bf16.msra.mxu0 %v1237_v57  ;;  %1249 = vmatpush3.bf16.msra.mxu1 %v1237_v57  ;;  %v392_v4 = vld [vmem:[#allocation2 + $0x71] sm:$0xff]  ;;  %v408_v7 = vld [vmem:[#allocation2 + $0x80] sm:$0xff] }
  0xa5   : > { %554 = vrot.lane.b32.xlu0 %v386_v38, %s1577_s14  ;;  %1211 = vmatprep.subr.mxu0 %v785_v58  ;;  %v1941_v5 = vld [vmem:[#allocation2 + $0x70] sm:$0xff]  ;;  %v416_v8 = vld [vmem:[#allocation2 + $0x81] sm:$0xff] }
  0xa6   : > { %462 = vrot.lane.b32.xlu1 %v387_v41, %s1574_s24  ;;  %1245 = vmatprep.subr.mxu1 %v785_v58  ;;  %v400_v6 = vld [vmem:[#allocation2 + $0x72] sm:$0xff]  ;;  %v424_v9 = vld [vmem:[#allocation2 + $0x82] sm:$0xff] }
  0xa7   : > { %v449_v16 = vld [vmem:[#allocation2 + $0x92] sm:$0xff] }
  0xa8   : > { %1212 = vmatpush3.msra.mxu0 %v785_v58  ;;  %1250 = vmatpush3.msra.mxu1 %v785_v58 }
  0xa9   : > { %556 = vrot.lane.b32.xlu0 %v387_v41, %s1577_s14 }
  0xaa   : > { %586 = vrot.lane.b32.xlu1 %v394_v37, %s1578_s11 }
  0xad   : > { %464 = vrot.lane.b32.xlu0 %v388_v46, %s1574_s24 }
  0xae   : > { %494 = vrot.lane.b32.xlu1 %v395_v45, %s1575_s26 }
  0xb1   : > { %588 = vrot.lane.b32.xlu0 %v395_v45, %s1578_s11 }
  0xb2   : > { %618 = vrot.lane.b32.xlu1 %v1876_v39, %s1579_s30 }
  0xb5   : > { %496 = vrot.lane.b32.xlu0 %v396_v54, %s1575_s26 }
  0xb6   : > { %526 = vrot.lane.b32.xlu1 %v1893_v53, %s1576_s13 }
  0xb9   : > { %620 = vrot.lane.b32.xlu0 %v1893_v53, %s1579_s30 }
  0xba   : > { %650 = vrot.lane.b32.xlu1 %v387_v41, %s1580_s28 }
  0xbd   : > { %528 = vrot.lane.b32.xlu0 %v1901_v59, %s1576_s13 }
  0xbe   : > { %558 = vrot.lane.b32.xlu1 %v388_v46, %s1577_s14 }
  0xc1   : > { %652 = vrot.lane.b32.xlu0 %v388_v46, %s1580_s28 }
  0xc2   : > { %682 = vrot.lane.b32.xlu1 %v395_v45, %s1581_s10 }
  0xc5   : > { %466 = vrot.lane.b32.xlu0 %v412_v60, %s1574_s24 }
  0xc6   : > { %560 = vrot.lane.b32.xlu1 %v412_v60, %s1577_s14 }
  0xc9   : > { %590 = vrot.lane.b32.xlu0 %v396_v54, %s1578_s11 }
  0xca   : > { %684 = vrot.lane.b32.xlu1 %v396_v54, %s1581_s10 }
  0xcd   : > { %468 = vrot.lane.b32.xlu0 %v390_v62, %s1574_s24 }
  0xce   : > { %498 = vrot.lane.b32.xlu1 %v397_v61, %s1575_s26 }
  0xd1   : > { %592 = vrot.lane.b32.xlu0 %v397_v61, %s1578_s11 }
  0xd2   : > { %622 = vrot.lane.b32.xlu1 %v1901_v59, %s1579_s30 }
  0xd5   : > { %500 = vrot.lane.b32.xlu0 %v398_v0, %s1575_s26 }
  0xd6   : > { %530 = vrot.lane.b32.xlu1 %v1917_v63, %s1576_s13 }
  0xd9   : > { %624 = vrot.lane.b32.xlu0 %v1917_v63, %s1579_s30 }
  0xda   : > { %654 = vrot.lane.b32.xlu1 %v412_v60, %s1580_s28 }
  0xdd   : > { %532 = vrot.lane.b32.xlu0 %v1925_v1, %s1576_s13 }
  0xde   : > { %562 = vrot.lane.b32.xlu1 %v390_v62, %s1577_s14 }
  0xe1   : > { %656 = vrot.lane.b32.xlu0 %v390_v62, %s1580_s28 }
  0xe2   : > { %686 = vrot.lane.b32.xlu1 %v397_v61, %s1581_s10 }
  0xe5   : > { %470 = vrot.lane.b32.xlu0 %v414_v2, %s1574_s24 }
  0xe6   : > { %564 = vrot.lane.b32.xlu1 %v414_v2, %s1577_s14 }
  0xe9   : > { %594 = vrot.lane.b32.xlu0 %v398_v0, %s1578_s11 }
  0xea   : > { %688 = vrot.lane.b32.xlu1 %v398_v0, %s1581_s10 }
  0xed   : > { %472 = vrot.lane.b32.xlu0 %v392_v4, %s1574_s24 }
  0xee   : > { %502 = vrot.lane.b32.xlu1 %v399_v3, %s1575_s26 }
  0xf1   : > { %596 = vrot.lane.b32.xlu0 %v399_v3, %s1578_s11 }
  0xf2   : > { %626 = vrot.lane.b32.xlu1 %v1925_v1, %s1579_s30 }
  0xf5   : > { %504 = vrot.lane.b32.xlu0 %v400_v6, %s1575_s26  ;;  %s1459_s26 = scalar_lea.vmem %s2075_s12, 1024 }
  0xf6   : > { %534 = vrot.lane.b32.xlu1 %v1941_v5, %s1576_s13  ;;  %p1460_p1 = scmp.ne.s32.totalorder %s2075_s12, %s1459_s26 }
  0xf8   : > { %p1461_p4 = pnand %p1460_p1, %p1761_p6 }
  0xf9   : > { %628 = vrot.lane.b32.xlu0 %v1941_v5, %s1579_s30 }
  0xfa   : > { %658 = vrot.lane.b32.xlu1 %v414_v2, %s1580_s28  ;;  %p1462_p8 = pneg %p1461_p4 }
  0xfd   : > { %536 = vrot.lane.b32.xlu0 %v408_v7, %s1576_s13  ;;  %s1582_s13 = smov [#allocation11]  }
  0xfe   : > { %566 = vrot.lane.b32.xlu1 %v392_v4, %s1577_s14 }
 0x101   : > { %660 = vrot.lane.b32.xlu0 %v392_v4, %s1580_s28 }
 0x102   : > { %690 = vrot.lane.b32.xlu1 %v399_v3, %s1581_s10 }
 0x103   : > { %v459_v11 = vpop.permute.xlu0 %458 }
 0x104   : > { %v706_v30 = vsel %vm340_vm0, %v377_v29, %v459_v11 }
 0x105   : > { %568 = vrot.lane.b32.xlu0 %v416_v8, %s1577_s14  ;;  %s1463_s14 = sshll.u32 %s1582_s13, 4  ;;  %s1464_s14 = int_to_ptr.vmem [resolvable:$false] %s1463_s14 }
 0x106   : > { %598 = vrot.lane.b32.xlu1 %v400_v6, %s1578_s11  ;;  %p1466_p3 = scmp.lt.s32.totalorder %s2075_s12, %s1464_s14 }
 0x109   : > { %692 = vrot.lane.b32.xlu0 %v400_v6, %s1581_s10 }
 0x10a   : > { %600 = vrot.lane.b32.xlu1 %v424_v9, %s1578_s11  ;;  %s1465_s11 = scalar_lea.vmem %s1464_s14, 2048 }
 0x10b   : > { %p1467_p7 = scmp.lt.s32.totalorder %s1465_s11, %s1459_s26 }
 0x10c   : > { %v491_v10 = vpop.permute.xlu1 %490 }
 0x10d   : > { %630 = vrot.lane.b32.xlu0 %v408_v7, %s1579_s30  ;;  %v715_v33 = vsel %vm714_vm3, %v706_v30, %v491_v10  ;;  %p1468_p10 = por %p1467_p7, %p1466_p3 }
 0x10e   : > { %632 = vrot.lane.b32.xlu1 %v433_v12, %s1579_s30 }
 0x10f   : > { %v461_v15 = vpop.permute.xlu0 %460  ;;  %p1469_p13 = pnand %p1468_p10, %p1462_p8 }
 0x110   : > { %v493_v14 = vpop.permute.xlu1 %492  ;;  %v707_v42 = vsel %vm340_vm0, %v1878_v40, %v461_v15 }
 0x111   : > { %662 = vrot.lane.b32.xlu0 %v416_v8, %s1580_s28  ;;  %v716_v47 = vsel %vm714_vm3, %v707_v42, %v493_v14 }
 0x112   : > { %664 = vrot.lane.b32.xlu1 %v441_v13, %s1580_s28 }
 0x113   : > { %v523_v18 = vpop.permute.xlu0 %522 }
 0x114   : > { %v525_v17 = vpop.permute.xlu1 %524  ;;  %v724_v34 = vsel %vm723_vm4, %v715_v33, %v523_v18 }
 0x115   : > { %694 = vrot.lane.b32.xlu0 %v424_v9, %s1581_s10  ;;  %v725_v48 = vsel %vm723_vm4, %v716_v47, %v525_v17 }
 0x116   : > { %696 = vrot.lane.b32.xlu1 %v449_v16, %s1581_s10 }
 0x117   : > { %v555_v20 = vpop.permute.xlu0 %554 }
 0x118   : > { %v463_v19 = vpop.permute.xlu1 %462  ;;  %v733_v37 = vsel %vm732_vm5, %v724_v34, %v555_v20 }
 0x119   : > { %v708_v6 = vsel %vm340_vm0, %v1876_v39, %v463_v19 }
 0x11b   : > { %v557_v22 = vpop.permute.xlu0 %556 }
 0x11c   : > { %v587_v21 = vpop.permute.xlu1 %586  ;;  %v734_v51 = vsel %vm732_vm5, %v725_v48, %v557_v22 }
 0x11d   : > { %v742_v38 = vsel %vm741_vm6, %v733_v37, %v587_v21 }
 0x11f   : > { %v1963_v24 = vpop.permute.xlu0 %464 }
 0x120   : > { %v495_v23 = vpop.permute.xlu1 %494  ;;  %v709_v39 = vsel %vm340_vm0, %v1893_v53, %v1963_v24 }
 0x121   : > { %v717_v7 = vsel %vm714_vm3, %v708_v6, %v495_v23 }
 0x123   : > { %v589_v26 = vpop.permute.xlu0 %588 }
 0x124   : > { %v619_v25 = vpop.permute.xlu1 %618  ;;  %v743_v52 = vsel %vm741_vm6, %v734_v51, %v589_v26 }
 0x125   : > { %v751_v41 = vsel %vm750_vm7, %v742_v38, %v619_v25 }
 0x127   : > { %v497_v28 = vpop.permute.xlu0 %496 }
 0x128   : > { %v527_v27 = vpop.permute.xlu1 %526  ;;  %v718_v18 = vsel %vm714_vm3, %v709_v39, %v497_v28 }
 0x129   : > { %v726_v8 = vsel %vm723_vm4, %v717_v7, %v527_v27 }
 0x12b   : > { %v621_v32 = vpop.permute.xlu0 %620 }
 0x12c   : > { %v651_v31 = vpop.permute.xlu1 %650  ;;  %v752_v40 = vsel %vm750_vm7, %v743_v52, %v621_v32 }
 0x12d   : > { %v760_v43 = vsel %vm759_vm8, %v751_v41, %v651_v31 }
 0x12f   : > { %v529_v36 = vpop.permute.xlu0 %528 }
 0x130   : > { %v559_v35 = vpop.permute.xlu1 %558  ;;  %v727_v19 = vsel %vm723_vm4, %v718_v18, %v529_v36 }
 0x131   : > { %v735_v11 = vsel %vm732_vm5, %v726_v8, %v559_v35 }
 0x133   : > { %v653_v45 = vpop.permute.xlu0 %652 }
 0x134   : > { %v683_v44 = vpop.permute.xlu1 %682  ;;  %v761_v54 = vsel %vm759_vm8, %v752_v40, %v653_v45 }
 0x135   : > { %v769_v46 = vsel %vm768_vm9, %v760_v43, %v683_v44 }
 0x136   : > { %1213 = vmatprep.mubr.msk.f32.mxu0 %vm786_vm10, %v769_v46 }
 0x137   : > { %v467_v50 = vpop.permute.xlu0 %466 }
 0x138   : > { %v561_v49 = vpop.permute.xlu1 %560  ;;  %v710_v36 = vsel %vm340_vm0, %v1901_v59, %v467_v50 }
 0x139   : > { %v736_v22 = vsel %vm732_vm5, %v727_v19, %v561_v49 }
 0x13b   : > { %v591_v56 = vpop.permute.xlu0 %590 }
 0x13c   : > { %v685_v55 = vpop.permute.xlu1 %684  ;;  %v744_v12 = vsel %vm741_vm6, %v735_v11, %v591_v56 }
 0x13d   : > { %v770_v57 = vsel %vm768_vm9, %v761_v54, %v685_v55 }
 0x13e   : > { %1214 = vmatmul.mubr.msk.f32.vlgmr.msra.gmra.mrb[0].mxu0 %vm786_vm10, %v770_v57 }
 0x13f   : > { %v469_v60 = vpop.permute.xlu0 %468 }
 0x140   : > { %v499_v58 = vpop.permute.xlu1 %498  ;;  %v711_v59 = vsel %vm340_vm0, %v1917_v63, %v469_v60 }
 0x141   : > { %v719_v37 = vsel %vm714_vm3, %v710_v36, %v499_v58 }
 0x143   : > { %v593_v62 = vpop.permute.xlu0 %592 }
 0x144   : > { %v623_v61 = vpop.permute.xlu1 %622  ;;  %v745_v23 = vsel %vm741_vm6, %v736_v22, %v593_v62 }
 0x145   : > { %v753_v13 = vsel %vm750_vm7, %v744_v12, %v623_v61 }
 0x147   : > { %v501_v2 = vpop.permute.xlu0 %500 }
 0x148   : > { %v531_v0 = vpop.permute.xlu1 %530  ;;  %v720_v50 = vsel %vm714_vm3, %v711_v59, %v501_v2 }
 0x149   : > { %v728_v38 = vsel %vm723_vm4, %v719_v37, %v531_v0 }
 0x14b   : > { %v625_v4 = vpop.permute.xlu0 %624 }
 0x14c   : > { %v655_v3 = vpop.permute.xlu1 %654  ;;  %v754_v25 = vsel %vm750_vm7, %v745_v23, %v625_v4 }
 0x14d   : > { %v762_v14 = vsel %vm759_vm8, %v753_v13, %v655_v3 }
 0x14f   : > { %v533_v10 = vpop.permute.xlu0 %532 }
 0x150   : > { %v563_v9 = vpop.permute.xlu1 %562  ;;  %v729_v51 = vsel %vm723_vm4, %v720_v50, %v533_v10 }
 0x151   : > { %v737_v43 = vsel %vm732_vm5, %v728_v38, %v563_v9 }
 0x153   : > { %v657_v16 = vpop.permute.xlu0 %656 }
 0x154   : > { %v687_v15 = vpop.permute.xlu1 %686  ;;  %v763_v26 = vsel %vm759_vm8, %v754_v25, %v657_v16 }
 0x155   : > { %v771_v17 = vsel %vm768_vm9, %v762_v14, %v687_v15 }
 0x156   : > { %1216 = vmatprep.mubr.msk.f32.mxu0 %vm786_vm10, %v771_v17 }
 0x157   : > { %v471_v21 = vpop.permute.xlu0 %470 }
 0x158   : > { %v565_v20 = vpop.permute.xlu1 %564  ;;  %v712_v0 = vsel %vm340_vm0, %v1925_v1, %v471_v21 }
 0x159   : > { %v738_v54 = vsel %vm732_vm5, %v729_v51, %v565_v20 }
 0x15b   : > { %v595_v29 = vpop.permute.xlu0 %594 }
 0x15c   : > { %v689_v27 = vpop.permute.xlu1 %688  ;;  %v746_v44 = vsel %vm741_vm6, %v737_v43, %v595_v29 }
 0x15d   : > { %v772_v53 = vsel %vm768_vm9, %v763_v26, %v689_v27 }
 0x15e   : > { %1217 = vmatmul.mubr.msk.f32.gmra.mrb[2].mxu0 %vm786_vm10, %v772_v53 }
 0x15f   : > { %v473_v28 = vpop.permute.xlu0 %472 }
 0x160   : > { %v503_v24 = vpop.permute.xlu1 %502  ;;  %v713_v2 = vsel %vm340_vm0, %v1941_v5, %v473_v28 }
 0x161   : > { %v721_v3 = vsel %vm714_vm3, %v712_v0, %v503_v24 }
 0x163   : > { %v597_v31 = vpop.permute.xlu0 %596 }
 0x164   : > { %v627_v30 = vpop.permute.xlu1 %626  ;;  %v747_v55 = vsel %vm741_vm6, %v738_v54, %v597_v31 }
 0x165   : > { %v755_v45 = vsel %vm750_vm7, %v746_v44, %v627_v30 }
 0x167   : > { %v505_v33 = vpop.permute.xlu0 %504 }
 0x168   : > { %v535_v32 = vpop.permute.xlu1 %534  ;;  %v722_v4 = vsel %vm714_vm3, %v713_v2, %v505_v33 }
 0x169   : > { %v730_v6 = vsel %vm723_vm4, %v721_v3, %v535_v32 }
 0x16b   : > { %v629_v35 = vpop.permute.xlu0 %628 }
 0x16c   : > { %v659_v34 = vpop.permute.xlu1 %658  ;;  %v756_v56 = vsel %vm750_vm7, %v747_v55, %v629_v35 }
 0x16d   : > { %v764_v46 = vsel %vm759_vm8, %v755_v45, %v659_v34 }
 0x16f   : > { %v537_v42 = vpop.permute.xlu0 %536 }
 0x170   : > { %v567_v41 = vpop.permute.xlu1 %566  ;;  %v731_v7 = vsel %vm723_vm4, %v722_v4, %v537_v42 }
 0x171   : > { %v739_v10 = vsel %vm732_vm5, %v730_v6, %v567_v41 }
 0x173   : > { %v661_v48 = vpop.permute.xlu0 %660 }
 0x174   : > { %v691_v47 = vpop.permute.xlu1 %690  ;;  %v765_v57 = vsel %vm759_vm8, %v756_v56, %v661_v48 }
 0x175   : > { %v773_v49 = vsel %vm768_vm9, %v764_v46, %v691_v47 }
 0x176   : > { %1219 = vmatprep.mubr.msk.f32.mxu1 %vm786_vm10, %v773_v49 }
 0x177   : > { %v569_v40 = vpop.permute.xlu0 %568 }
 0x178   : > { %v599_v52 = vpop.permute.xlu1 %598  ;;  %v740_v11 = vsel %vm732_vm5, %v731_v7, %v569_v40 }
 0x179   : > { %v748_v1 = vsel %vm741_vm6, %v739_v10, %v599_v52 }
 0x17b   : > { %v693_v61 = vpop.permute.xlu0 %692 }
 0x17c   : > { %v601_v58 = vpop.permute.xlu1 %600  ;;  %v774_v63 = vsel %vm768_vm9, %v765_v57, %v693_v61 }
 0x17d   : > { %1220 = vmatmul.mubr.msk.f32.vlgmr.msra.gmra.mrb[0].mxu1 %vm786_vm10, %v774_v63  ;;  %v749_v12 = vsel %vm741_vm6, %v740_v11, %v601_v58 }
 0x17f   : > { %v631_v62 = vpop.permute.xlu0 %630 }
 0x180   : > { %v633_v60 = vpop.permute.xlu1 %632  ;;  %v757_v13 = vsel %vm750_vm7, %v748_v1, %v631_v62 }
 0x181   : > { %v758_v5 = vsel %vm750_vm7, %v749_v12, %v633_v60 }
 0x183   : > { %v663_v9 = vpop.permute.xlu0 %662 }
 0x184   : > { %v665_v8 = vpop.permute.xlu1 %664  ;;  %v766_v15 = vsel %vm759_vm8, %v757_v13, %v663_v9 }
 0x185   : > { %v767_v14 = vsel %vm759_vm8, %v758_v5, %v665_v8 }
 0x187   : > { %v695_v17 = vpop.permute.xlu0 %694 }
 0x188   : > { %v697_v16 = vpop.permute.xlu1 %696  ;;  %v775_v18 = vsel %vm768_vm9, %v766_v15, %v695_v17 }
 0x189   : > { %v776_v39 = vsel %vm768_vm9, %v767_v14, %v697_v16  ;;  %1222 = vmatprep.mubr.msk.f32.mxu1 %vm786_vm10, %v775_v18 }
 0x18a   : > { %1223 = vmatmul.mubr.msk.f32.gmra.mrb[2].mxu1 %vm786_vm10, %v776_v39 }
 0x211   : > { %v1215_v19 = vpop.f32.mrb[0].mxu0 }
 0x212   : > { %917 = vst.msk [vmem:[%s2047_s29 + $0x8] sm:$0xff] %vm340_vm0, %v1215_v19  ;;  %v925_v20 = vsel %vm340_vm0, %v1215_v19, 0.0  ;;  %v946_v21 = vmul.f32 %v1215_v19, %v1215_v19  ;;  %v877_v22 = vpop.f32.mrb[1].mxu0 }
 0x213   : > { %916 = vst.msk [vmem:[%s2047_s29] sm:$0xff] %vm340_vm0, %v877_v22  ;;  %v924_v23 = vsel %vm340_vm0, %v877_v22, 0.0  ;;  %v945_v25 = vmul.f32 %v877_v22, %v877_v22 }
 0x214   : > { %v954_v26 = vsel %vm340_vm0, %v946_v21, 0.0  ;;  %v926_v27 = vadd.f32 %v925_v20, %v924_v23 }
 0x215   : > { %v953_v29 = vsel %vm340_vm0, %v945_v25, 0.0 }
 0x216   : > { %v955_v53 = vadd.f32 %v954_v26, %v953_v29 }
 0x231   : > { %v1218_v24 = vpop.f32.mrb[2].mxu0 }
 0x232   : > { %919 = vst.msk [vmem:[%s2047_s29 + $0x18] sm:$0xff] %vm340_vm0, %v1218_v24  ;;  %v887_v28 = vpop.f32.mrb[3].mxu0  ;;  %v948_v30 = vmul.f32 %v1218_v24, %v1218_v24  ;;  %v929_v34 = vsel %vm340_vm0, %v1218_v24, 0.0 }
 0x233   : > { %918 = vst.msk [vmem:[%s2047_s29 + $0x10] sm:$0xff] %vm340_vm0, %v887_v28  ;;  %v927_v31 = vsel %vm340_vm0, %v887_v28, 0.0  ;;  %v947_v32 = vmul.f32 %v887_v28, %v887_v28 }
 0x234   : > { %v928_v33 = vadd.f32 %v927_v31, %v926_v27  ;;  %v958_v38 = vsel %vm340_vm0, %v948_v30, 0.0 }
 0x235   : > { %v956_v35 = vsel %vm340_vm0, %v947_v32, 0.0 }
 0x236   : > { %v930_v36 = vadd.f32 %v929_v34, %v928_v33  ;;  %v957_v37 = vadd.f32 %v956_v35, %v955_v53 }
 0x238   : > { %v959_v41 = vadd.f32 %v958_v38, %v957_v37 }
 0x250   : > { %v1221_v42 = vpop.f32.mrb[0].mxu1 }
 0x251   : > { %921 = vst.msk [vmem:[%s2047_s29 + $0x28] sm:$0xff] %vm340_vm0, %v1221_v42  ;;  %v897_v43 = vpop.f32.mrb[1].mxu1  ;;  %v950_v44 = vmul.f32 %v1221_v42, %v1221_v42  ;;  %v933_v48 = vsel %vm340_vm0, %v1221_v42, 0.0 }
 0x252   : > { %920 = vst.msk [vmem:[%s2047_s29 + $0x20] sm:$0xff] %vm340_vm0, %v897_v43  ;;  %v931_v45 = vsel %vm340_vm0, %v897_v43, 0.0  ;;  %v949_v46 = vmul.f32 %v897_v43, %v897_v43 }
 0x253   : > { %v932_v47 = vadd.f32 %v931_v45, %v930_v36  ;;  %v962_v51 = vsel %vm340_vm0, %v950_v44, 0.0 }
 0x254   : > { %v960_v49 = vsel %vm340_vm0, %v949_v46, 0.0 }
 0x255   : > { %v961_v59 = vadd.f32 %v960_v49, %v959_v41  ;;  %v934_v50 = vadd.f32 %v933_v48, %v932_v47 }
 0x257   : > { %v963_v52 = vadd.f32 %v962_v51, %v961_v59 }
 0x25d   : > { %v1224_v40 = vpop.f32.mrb[2].mxu1 }
 0x25e   : > { %923 = vst.msk [vmem:[%s2047_s29 + $0x38] sm:$0xff] %vm340_vm0, %v1224_v40  ;;  %v907_v54 = vpop.f32.mrb[3].mxu1  ;;  %v952_v55 = vmul.f32 %v1224_v40, %v1224_v40 }
 0x25f   : > { %922 = vst.msk [vmem:[%s2047_s29 + $0x30] sm:$0xff] %vm340_vm0, %v907_v54  ;;  %v935_v56 = vsel %vm340_vm0, %v907_v54, 0.0  ;;  %v951_v57 = vmul.f32 %v907_v54, %v907_v54 }
 0x260   : > { %v936_v58 = vadd.f32 %v935_v56, %v934_v50 }
 0x261   : > { %1472 = shalt.err (!%p1469_p13)
}
 0x262   : > { %s1473_s30 = scalar_lea.hbm %s2080_s9, 1024  ;;  %s1477_s29 = scalar_lea.hbm %s2169_s4, 2048 }
 0x263   : > { %p1474_p0 = scmp.ne.s32.totalorder %s2080_s9, %s1473_s30  ;;  %p1478_p9 = scmp.lt.u32.totalorder %s2080_s9, %s2169_s4 }
 0x264   : > { %p1479_p12 = scmp.lt.u32.totalorder %s1477_s29, %s1473_s30  ;;  %p1481_p1 = scmp.lt.u32.totalorder %s1473_s30, %s2080_s9 }
 0x265   : > { %p1475_p5 = pnand %p1474_p0, %p1761_p6 }
 0x266   : > { %p1480_p2 = por %p1479_p12, %p1478_p9 }
 0x267   : > { %p1476_p11 = pneg %p1475_p5 }
 0x268   : > { %p1482_p4 = por %p1481_p1, %p1480_p2 }
 0x26a   : > { %p1483_p8 = pnand %p1482_p4, %p1476_p11 }
 0x26c   : > { %1486 = shalt.err (!%p1483_p8)
}
 0x26d   : > { %s1583_s8 = smov 128   ;;  %v937_v61 = vsel %vm340_vm0, %v1224_v40, 0.0  ;;  %v964_v63 = vsel %vm340_vm0, %v951_v57, 0.0  ;;  %v966_v0 = vsel %vm340_vm0, %v952_v55, 0.0  ;;  %s1158_s26 = sshll.u32 %s1812_s17, 1  ;;  %vm974_vm11 = vcmask 1040384  }
 0x26e   : > { %1265 = dma.vmem_to_hbm [thread:$0]  (%p1761_p6), %s2075_s12, 1024, %s2080_s9, %s978_s15, %s1583_s8, %s1583_s8, %s1574_s24   ;;  %v938_v60 = vadd.f32 %v937_v61, %v936_v58  ;;  %v965_v62 = vadd.f32 %v964_v63, %v963_v52 }
 0x26f   : > { %s1173_s24 = sshll.u32 %s1636_s22, 5  ;;  %s293_s12 = scalar_lea.vmem [#allocation12], %s1158_s26 }
 0x270   : > { %v939_v2 = vrot.slane %v938_v60, 4  ;;  %v967_v3 = vadd.f32 %v966_v0, %v965_v62  ;;  %s1012_s9 = sshll.u32 %s293_s12, 4  ;;  %s2120_s14 = scalar_lea.hbm %s2170_s5, %s1173_s24  ;;  %s2122_s9 = int_to_ptr.vmem [resolvable:$true] %s1012_s9 }
 0x271   : > { %s983_s11 = scalar_lea.sflag [#allocation13], %s1812_s17  ;;  %s1487_s22 = scalar_lea.vmem %s2122_s9, 32 }
 0x272   : > { %v940_v4 = vadd.f32 %v939_v2, %v938_v60  ;;  %v968_v6 = vrot.slane %v967_v3, 4  ;;  %p1488_p3 = scmp.ne.s32.totalorder %s2122_s9, %s1487_s22  ;;  %s1584_s30 = smov [#allocation12]  }
 0x273   : > { %s1491_s28 = sshll.u32 %s1584_s30, 4  ;;  %s1492_s28 = int_to_ptr.vmem [resolvable:$false] %s1491_s28 }
 0x274   : > { %v941_v7 = vrot.slane %v940_v4, 2  ;;  %v969_v8 = vadd.f32 %v968_v6, %v967_v3  ;;  %p1489_p7 = pnand %p1488_p3, %p1761_p6  ;;  %s1493_s10 = scalar_lea.vmem %s1492_s28, 64 }
 0x275   : > { %p1494_p13 = scmp.lt.s32.totalorder %s2122_s9, %s1492_s28  ;;  %p1495_p0 = scmp.lt.s32.totalorder %s1493_s10, %s1487_s22 }
 0x276   : > { %v942_v9 = vadd.f32 %v941_v7, %v940_v4  ;;  %v970_v10 = vrot.slane %v969_v8, 2  ;;  %p1490_p10 = pneg %p1489_p7 }
 0x277   : > { %p1496_p5 = por %p1495_p0, %p1494_p13 }
 0x278   : > { %v943_v11 = vrot.slane %v942_v9, 1  ;;  %v971_v1 = vadd.f32 %v970_v10, %v969_v8 }
 0x279   : > { %p1497_p11 = pnand %p1496_p5, %p1490_p10 }
 0x27a   : > { %v972_v12 = vrot.slane %v971_v1, 1  ;;  %v944_v5 = vadd.f32 %v943_v11, %v942_v9 }
 0x27c   : > { %v973_v13 = vadd.f32 %v972_v12, %v971_v1 }
 0x27e   : > { %v975_v14 = vsel %vm974_vm11, %v944_v5, %v973_v13 }
 0x27f   : > { %976 = vst.msk [vmem:[%s293_s12] sm:$0x3] %vm342_vm1, %v975_v14 }
 0x280   : > { %1500 = shalt.err (!%p1497_p11)
}
 0x281   : > { %s1501_s17 = scalar_lea.hbm %s2120_s14, 32  ;;  %s1505_s7 = scalar_lea.hbm %s2170_s5, 64 }
 0x282   : > { %p1502_p9 = scmp.ne.s32.totalorder %s2120_s14, %s1501_s17  ;;  %p1506_p1 = scmp.lt.u32.totalorder %s2120_s14, %s2170_s5 }
 0x283   : > { %p1507_p4 = scmp.lt.u32.totalorder %s1505_s7, %s1501_s17  ;;  %p1509_p3 = scmp.lt.u32.totalorder %s1501_s17, %s2120_s14 }
 0x284   : > { %p1503_p12 = pnand %p1502_p9, %p1761_p6 }
 0x285   : > { %p1508_p8 = por %p1507_p4, %p1506_p1 }
 0x286   : > { %p1504_p2 = pneg %p1503_p12 }
 0x287   : > { %p1510_p7 = por %p1509_p3, %p1508_p8 }
 0x289   : > { %p1511_p10 = pnand %p1510_p7, %p1504_p2 }
 0x28b   : > { %1514 = shalt.err (!%p1511_p10)
}
 0x28c   : > { %1266 = dma.vmem_to_hbm [thread:$0]  (%p1761_p6), %s2122_s9, 32, %s2120_s14, %s983_s11  }
 0x28d PF: > { %s1024_s24 = sand.u32 1, %s1553_s18   ;;  %p2188_p13 = scmp.ne.s32.totalorder %s2175_s25, 0 }
 0x28e   : > { %p2189_p0 = scmp.ge.s32.totalorder %s1565_s21, 2  ;;  %s1025_s12 = scalar_lea.sflag [#allocation5], %s1024_s24 }
 0x290   : > { %p1284_p5 = pnand %p2189_p0, %p2188_p13 }
 0x292   : > { %1544 = dma.done.wait (!%p1284_p5), %s1025_s12, 1024  }
 0x293   : > { %1546 = vsyncadd (!%p1284_p5), %s1025_s12, 4294966272  ;;  %s1034_s15 = scalar_lea.sflag [#allocation13], %s1024_s24 }
 0x294   : > { %1548 = dma.done.wait (!%p1284_p5), %s1034_s15, 32  }
 0x295   : > { %1550 = vsyncadd (!%p1284_p5), %s1034_s15, 4294967264  ;;  %p24_p6 = scmp.ge.s32.totalorder %s1747_s16, 4   ;;  %s2190_s18 = smov %s1557_s19 }
 0x296   : > { %s2191_s19 = smov %s1561_s20  ;;  %s2192_s20 = smov %s1757_s27 }
 0x297   : > { %s2193_s21 = smov %s1747_s16  ;;  %26 = sbr.rel (!%p24_p6) target bundleno = 9 (0x9), region = 113 }
 0x29e   :  { %1039 = vsyncpa [#allocation4], 1 }
 0x29f   :  { %1041 = vsyncpa [#allocation4 + $0x1], 1 }
 0x2a0   :  { %1042 = vsyncpa [#allocation7], 1 }
 0x2a1   :  { %1043 = vsyncpa [#allocation10], 1 }
 0x2a2   :  { %1044 = vsyncpa [#allocation5], 1 }
 0x2a3   :  { %1046 = vsyncpa [#allocation5 + $0x1], 1 }
 0x2a4   :  { %1047 = vsyncpa [#allocation13], 1 }
 0x2a5   :  { %1049 = vsyncpa [#allocation13 + $0x1], 1 }

// kernel: basic_block_forward.3
= control target key start
LH: loop header
LB: loop body
LE: loop exit
PB: predicated region body
PF: predicated region fallthrough
CT: control target
= control target key end

     0   :  { %12 = vsyncpa [#allocation3], 0  ;;  %s2585_s0 = inlined_call_operand.hbm [shape: f32[4,2,9,9,4], index: 0, kind: input, shape index: {}]   ;;  %s2586_s1 = inlined_call_operand.hbm [shape: f32[36,8], index: 1, kind: input, shape index: {}]   ;;  %s2587_s2 = inlined_call_operand.hbm [shape: f32[4,8], index: 2, kind: input, shape index: {}]   ;;  %s2588_s3 = inlined_call_operand.hbm [shape: f32[2,64,8], index: 3, kind: output, shape index: {0}]   ;;  %s2589_s4 = inlined_call_operand.hbm [shape: f32[2,64,8], index: 4, kind: output, shape index: {1}]   ;;  %s2590_s5 = inlined_call_operand.hbm [shape: f32[2,2,8], index: 5, kind: output, shape index: {2}]   ;;  %s2591_s6 = inlined_call_operand.hbm [shape: f32[2,2,8], index: 6, kind: output, shape index: {3}]  }
   0x1   :  { %14 = vsyncpa [#allocation3 + $0x1], 0 }
   0x2   :  { %15 = vsyncpa [#allocation6], 0 }
   0x3   :  { %16 = vsyncpa [#allocation4], 0 }
   0x4   :  { %18 = vsyncpa [#allocation4 + $0x1], 0 }
   0x5   :  { %19 = vsyncpa [#allocation10], 0 }
   0x6   :  { %21 = vsyncpa [#allocation10 + $0x1], 0 }
   0x7   :  { %22 = vsyncpa [#allocation13], 0 }
   0x8   :  { %24 = vsyncpa [#allocation13 + $0x1], 0  ;;  %s1948_s21 = smov 0   ;;  %s1950_s22 = smov 0  }
   0x9   :  { %s1952_s23 = smov 0   ;;  %s1954_s24 = smov 0  }
   0xa LB: > { %s1969_s25 = sadd.s32 4294967295, %s1888_s24   ;;  %s2597_s26 = sadd.s32 4294967294, %s1888_s24   ;;  %s1888_s24 = sphi %s1954_s24, %s2622_s24   ;;  %s1884_s23 = sphi %s1952_s23, %s2626_s23   ;;  %s1880_s22 = sphi %s1950_s22, %s2625_s22   ;;  %s1876_s21 = sphi %s1948_s21, %s2624_s21  }
   0xb   : > { %s1973_s27 = sadd.s32 1, %s1888_s24   ;;  %s37_s28 = sadd.s32 1, %s1884_s23 }
   0xc   : > { %2603 = sst [smem:[#allocation22_spill]] %s1973_s27  ;;  %s34_s29 = ssub.s32 %s1888_s24, %s1973_s27 }
   0xd   : > { %p44_p0 = scmp.ne.s32.totalorder %s1884_s23, %s1880_s22  ;;  %p35_p1 = scmp.eq.s32.totalorder %s34_s29, 0 }
   0xe   : > { %p45_p2 = scmp.eq.s32.totalorder %s1888_s24, 0  ;;  %p50_p3 = scmp.ne.s32.totalorder %s1880_s22, %s1876_s21 }
   0xf   : > { %p2592_p4 = scmp.eq.s32.totalorder %s1969_s25, 0  ;;  %p116_p7 = scmp.eq.s32.totalorder %s1969_s25, 1 }
  0x10   : > { %s1985_s30 = scalar_select %p35_p1, %s1884_s23, %s37_s28  }
  0x11   : > { %p1987_p5 = por %p45_p2, %p44_p0  ;;  %p1993_p6 = por %p2592_p4, %p50_p3 }
  0x12   : > { %2604 = sst [smem:[#allocation23_spill]] %s1985_s30  ;;  %p122_p8 = scmp.eq.s32.totalorder %s2597_s26, 1 }
  0x13   : > { %s2605_s7 = scalar_select %p1987_p5, 1, 0 }
  0x14   : > { %s2606_s8 = scalar_select %p1993_p6, 1, 0 }
  0x15   : > { %p1398_p9 = scmp.ge.s32.totalorder %s1888_s24, 1  ;;  %p207_p10 = scmp.lt.s32.totalorder %s1888_s24, 3 }
  0x16   : > { %p2002_p11 = por %p116_p7, %p44_p0  ;;  %p2006_p12 = por %p122_p8, %p50_p3 }
  0x17   : > { %p2010_p13 = pnand %p1398_p9, %p207_p10  ;;  %s1890_s12 = smov [#allocation5]  }
  0x18   : > { %s2607_s9 = scalar_select %p2002_p11, 1, 0 }
  0x19   : > { %s2608_s10 = scalar_select %p2006_p12, 1, 0 }
  0x1a   : > { %s2609_s11 = scalar_select %p2010_p13, 1, 0 }
  0x1b   : > { %p1594_p1 = pneg %p2010_p13  ;;  %s219_s13 = sshll.u32 %s1890_s12, 4  ;;  %s220_s13 = int_to_ptr.vmem [resolvable:$true] %s219_s13 }
  0x1c   : > { %s1891_s15 = smov [#allocation7]   ;;  %s1670_s19 = scalar_lea.hbm %s2586_s1, 640 }
  0x1d   : > { %p2018_p2 = pnand %p1594_p1, %p2592_p4  ;;  %s233_s16 = sshll.u32 %s1891_s15, 4  ;;  %s2022_s16 = int_to_ptr.vmem [resolvable:$true] %s233_s16 }
  0x1e   : > { %p1671_p0 = scmp.ne.s32.totalorder %s2586_s1, %s1670_s19  ;;  %p1677_p9 = scmp.lt.u32.totalorder %s1670_s19, %s2586_s1 }
  0x1f   : > { %p1672_p3 = pneg %p2018_p2 }
  0x21   : > { %p1673_p7 = pnand %p1672_p3, %p1671_p0 }
  0x23   : > { %p1674_p8 = pneg %p1673_p7 }
  0x25   : > { %p1679_p10 = pnand %p1677_p9, %p1674_p8 }
  0x27   : > { %1682 = shalt.err (!%p1679_p10)
}
  0x28   : > { %s1683_s15 = scalar_lea.vmem %s220_s13, 640  ;;  %p1691_p11 = scmp.lt.s32.totalorder %s220_s13, %s220_s13 }
  0x29   : > { %p1684_p1 = scmp.ne.s32.totalorder %s220_s13, %s1683_s15  ;;  %p1692_p6 = scmp.lt.s32.totalorder %s1683_s15, %s1683_s15 }
  0x2b   : > { %p1686_p4 = pnand %p1684_p1, %p1672_p3  ;;  %p1693_p13 = por %p1692_p6, %p1691_p11 }
  0x2d   : > { %p1687_p12 = pneg %p1686_p4 }
  0x2f   : > { %p1694_p5 = pnand %p1693_p13, %p1687_p12 }
  0x31   : > { %1697 = shalt.err (!%p1694_p5)
}
  0x32   : > { %s1892_s17 = smov 128   ;;  %s1893_s18 = smov 8  }
  0x33   : > { %1597 = dma.hbm_to_vmem [thread:$0]  (!%p2018_p2), %s2586_s1, 640, %s220_s13, [#allocation6], %s1892_s17, %s1892_s17, %s1893_s18  }
  0x34   : > { %s1698_s12 = scalar_lea.hbm %s2587_s2, 64 }
  0x35   : > { %p1699_p4 = scmp.ne.s32.totalorder %s2587_s2, %s1698_s12  ;;  %p1705_p11 = scmp.lt.u32.totalorder %s1698_s12, %s2587_s2 }
  0x37   : > { %p1701_p5 = pnand %p1699_p4, %p1672_p3 }
  0x39   : > { %p1702_p6 = pneg %p1701_p5 }
  0x3b   : > { %p1707_p12 = pnand %p1705_p11, %p1702_p6 }
  0x3d   : > { %1710 = shalt.err (!%p1707_p12)
}
  0x3e   : > { %s1711_s13 = scalar_lea.vmem %s2022_s16, 64  ;;  %p1719_p8 = scmp.lt.s32.totalorder %s2022_s16, %s2022_s16 }
  0x3f   : > { %p1712_p13 = scmp.ne.s32.totalorder %s2022_s16, %s1711_s13  ;;  %p1720_p9 = scmp.lt.s32.totalorder %s1711_s13, %s1711_s13 }
  0x41   : > { %p1714_p0 = pnand %p1712_p13, %p1672_p3  ;;  %p1721_p10 = por %p1720_p9, %p1719_p8 }
  0x43   : > { %p1715_p7 = pneg %p1714_p0 }
  0x45   : > { %p1722_p1 = pnand %p1721_p10, %p1715_p7 }
  0x47   : > { %1725 = shalt.err (!%p1722_p1)
}
  0x48   : > { %1600 = dma.hbm_to_vmem [thread:$0]  (!%p2018_p2), %s2587_s2, 64, %s2022_s16, [#allocation6]  }
  0x49   : > { %p1401_p4 = scmp.ge.s32.totalorder %s1888_s24, 2 }
  0x4b   : > { %240 = sbr.rel (%p1401_p4) target bundleno = 98 (0x62), region = 24 }
  0x52   : > { %s244_s30 = sand.u32 1, %s1884_s23   ;;  %s1567_s17 = smul.u32 2304, %s1888_s24 }
  0x53   : > { %s1566_s14 = smul.u32 576, %s244_s30  ;;  %s1894_s18 = smov 4608  }
  0x54   : > { %p2611_p3 = scmp.ne.s32.totalorder %s2605_s7, 0  ;;  %s254_s28 = scalar_lea.hbm %s2585_s0, %s1567_s17 }
  0x55   : > { %s248_s12 = scalar_lea.vmem [#allocation2], %s1566_s14  ;;  %s1895_s13 = smov 2304  }
  0x56   : > { %1574 = sst [smem:[#allocation15]] (%p2611_p3), %s1894_s18  ;;  %s267_s15 = sshll.u32 %s248_s12, 4  ;;  %s268_s15 = int_to_ptr.vmem [resolvable:$true] %s267_s15 }
  0x57   : > { %s1573_s16 = scalar_select %p2611_p3, [#allocation0], [#allocation16] }
  0x58   : > { %1575 = sst [smem:[#allocation15 + $0x1]] (%p2611_p3), %s1895_s13  ;;  %s1896_s26 = smov 18  }
  0x59   : > { %s259_s29 = sld [smem:[%s1573_s16]]   ;;  %s1897_s27 = smov 128  }
  0x5a   : > { %1576 = sst [smem:[#allocation15 + $0x2]] (%p2611_p3), %s1896_s26  ;;  %s1898_s18 = smov 8  }
  0x5b   : > { %1577 = sst [smem:[#allocation15 + $0x3]] (%p2611_p3), %s1897_s27  ;;  %s245_s14 = scalar_lea.sflag [#allocation3], %s244_s30 }
  0x5c   : > { %1578 = sst [smem:[#allocation15 + $0x4]] (%p2611_p3), %s1897_s27  ;;  %s1899_s19 = smov [#allocation14]  }
  0x5d   : > { %1579 = sst [smem:[#allocation15 + $0x5]] (%p2611_p3), %s1898_s18 }
  0x5f   : > { %s1403_s17 = sshll.u32 %s259_s29, 26 }
  0x60   : > { %s1404_s16 = sadd.s32 134217728, %s1403_s17 }
  0x61   : > { %1580 = dma.general (%p2611_p3), %s254_s28, 9216, %s268_s15, %s245_s14, %s1899_s19, [#allocation15], %s1404_s16, 0  }
  0x62 PF: > { %p2612_p2 = scmp.ne.s32.totalorder %s2609_s11, 0 }
  0x63   : > { %s2098_s20 = sand.u32 (!%p2612_p2), 1, %s1880_s22   ;;  %p2613_p5 = scmp.ne.s32.totalorder (!%p2612_p2), %s2606_s8, 0 }
  0x64   : > { %292 = sbr.rel (%p2612_p2) target bundleno = 612 (0x264), region = 32  ;;  %s295_s13 = scalar_lea.sflag (!%p2612_p2), [#allocation3], %s2098_s20 }
  0x65   : > { %s1568_s12 = smul.u32 (!%p2612_p2), 576, %s2098_s20 }
  0x67   : > { %s2102_s26 = scalar_lea.vmem (!%p2612_p2), [#allocation2], %s1568_s12 }
  0x6b   : > { %1855 = dma.done.wait (%p2613_p5), %s295_s13, 9216  }
  0x6c   : > { %1857 = vsyncadd (%p2613_p5), %s295_s13, 4294958080  ;;  %p2614_p6 = scmp.eq.s32.totalorder %s1969_s25, 0 }
  0x6e   : > { %1859 = dma.done.wait (%p2614_p6), [#allocation6], 704   ;;  %p2615_p11 = pmov %p2614_p6 }
  0x6f   : > { %v376_v0 = vld [vmem:[%s2102_s26 + $0x1] sm:$0xff]  ;;  %v1420_v1 = vld [vmem:[%s2102_s26 + $0x90] sm:$0xff]  ;;  %s1900_s7 = smov 8   ;;  %s1901_s8 = smov 4   ;;  %vm683_vm0 = vcmask 31744   ;;  %v758_v20 = vld [vmem:[#allocation5 + $0x18] sm:$0xff] }
  0x70   : > { %1861 = vsyncadd (%p2615_p11), [#allocation6], 4294966592  ;;  %467 = vrot.lane.b32.xlu1 %v376_v0, %s1900_s7  ;;  %435 = vrot.lane.b32.xlu0 %v1420_v1, %s1901_s8  ;;  %v377_v2 = vld [vmem:[%s2102_s26 + $0x11] sm:$0xff]  ;;  %v1421_v3 = vld [vmem:[%s2102_s26 + $0xa0] sm:$0xff]  ;;  %s1902_s11 = smov 12   ;;  %s1903_s30 = smov 16  }
  0x71   : > { %v1412_v4 = vld [vmem:[%s2102_s26 + $0x1b0] sm:$0xff]  ;;  %v1428_v6 = vld [vmem:[%s2102_s26 + $0x120] sm:$0xff]  ;;  %s1904_s28 = smov 20   ;;  %v756_v15 = vld [vmem:[#allocation5 + $0x8] sm:$0xff]  ;;  %s1905_s29 = smov 24   ;;  %vm785_vm1 = vcmask 1043456  }
  0x72   : > { %1546 = vmatprep.mubr.msk.f32.mxu1 %vm683_vm0, %v1412_v4  ;;  %v1429_v5 = vld [vmem:[%s2102_s26 + $0x130] sm:$0xff]  ;;  %v1436_v8 = vld [vmem:[%s2102_s26 + $0x121] sm:$0xff]  ;;  %s1906_s15 = smov 28   ;;  %s1907_s27 = smov 32   ;;  %vm692_vm2 = vcmask 64512   ;;  %vm701_vm3 = vcmask 97280  }
  0x73   : > { %v1422_v7 = vld [vmem:[%s2102_s26 + $0xb0] sm:$0xff]  ;;  %v2131_v9 = vld [vmem:[%s2102_s26 + $0x1c0] sm:$0xff]  ;;  %v894_v45 = vld [vmem:[#allocation7] sm:$0xf]  ;;  %vm710_vm4 = vcmask 130048   ;;  %vm719_vm5 = vcmask 162816  }
  0x74   : > { %469 = vrot.lane.b32.xlu1 %v377_v2, %s1900_s7  ;;  %437 = vrot.lane.b32.xlu0 %v1421_v3, %s1901_s8  ;;  %v378_v10 = vld [vmem:[%s2102_s26 + $0x21] sm:$0xff]  ;;  %v2141_v12 = vld [vmem:[%s2102_s26 + $0x10] sm:$0xff]  ;;  %vm728_vm6 = vcmask 195584   ;;  %vm737_vm7 = vcmask 228352   ;;  %vm746_vm8 = vcmask 261120   ;;  %vm760_vm9 = vcmask 293888  }
  0x75   : > { %v1423_v11 = vld [vmem:[%s2102_s26 + $0xc0] sm:$0xff]  ;;  %v1437_v13 = vld [vmem:[%s2102_s26 + $0x131] sm:$0xff]  ;;  %1544 = vmatprep.subr.msk.mxu1 %vm785_vm1, %v894_v45  ;;  %s2602_s18 = sshll.u32 %s2098_s20, 6  ;;  %s2600_s16 = sshll.u32 %s2098_s20, 1  ;;  %vm1085_vm10 = vcmask 1040384   ;;  %vm1087_vm11 = vcmask 58368  }
  0x76   : > { %v755_v14 = vld [vmem:[#allocation5] sm:$0xff]  ;;  %v379_v18 = vld [vmem:[%s2102_s26 + $0x31] sm:$0xff]  ;;  %1545 = vmatpush3.msk.msra.mxu1 %vm785_vm1, %v894_v45  ;;  %s2349_s17 = scalar_lea.vmem [#allocation9], %s2602_s18  ;;  %s2387_s14 = scalar_lea.vmem [#allocation12], %s2600_s16 }
  0x77   : > { %v1558_v16 = vpack.c.bf16 %v756_v15, %v755_v14  ;;  %v1430_v17 = vld [vmem:[%s2102_s26 + $0x140] sm:$0xff]  ;;  %v757_v19 = vld [vmem:[#allocation5 + $0x10] sm:$0xff]  ;;  %1547 = vmatmul.mubr.msk.f32.vlgmr.msra.gmra.mrb[0].mxu1 %vm683_vm0, %v2131_v9  ;;  %s1186_s19 = sshll.u32 %s2349_s17, 4  ;;  %s1146_s12 = sand.u32 1, %s1969_s25   ;;  %s2392_s19 = int_to_ptr.vmem [resolvable:$true] %s1186_s19 }
  0x78   : > { %501 = vrot.lane.b32.xlu1 %v1429_v5, %s1902_s11  ;;  %499 = vrot.lane.b32.xlu0 %v1428_v6, %s1902_s11  ;;  %v1562_v21 = vpack.c.bf16 %v758_v20, %v757_v19  ;;  %v2152_v22 = vld [vmem:[%s2102_s26 + $0x20] sm:$0xff]  ;;  %v1414_v24 = vld [vmem:[%s2102_s26 + $0x1d0] sm:$0xff]  ;;  %s2601_s13 = sshll.u32 %s1969_s25, 10  ;;  %p2616_p13 = scmp.ne.s32.totalorder %s2607_s9, 0 }
  0x79   : > { %1559 = vmatprep.subr.bf16.mxu0 %v1558_v16  ;;  %v759_v23 = vld [vmem:[#allocation5 + $0x20] sm:$0xf]  ;;  %v1431_v25 = vld [vmem:[%s2102_s26 + $0x150] sm:$0xff]  ;;  %1549 = vmatprep.mubr.msk.f32.mxu1 %vm683_vm0, %v1414_v24 }
  0x7a   : > { %1561 = vmatpush3.bf16.msra.mxu0 %v1558_v16  ;;  %v1415_v26 = vld [vmem:[%s2102_s26 + $0x1e0] sm:$0xff]  ;;  %v1424_v27 = vld [vmem:[%s2102_s26 + $0xd0] sm:$0xff] }
  0x7b   : > { %1563 = vmatprep.subr.bf16.mxu0 %v1562_v21  ;;  %v1438_v28 = vld [vmem:[%s2102_s26 + $0x141] sm:$0xff]  ;;  %v2177_v31 = vld [vmem:[%s2102_s26 + $0x30] sm:$0xff]  ;;  %1550 = vmatmul.mubr.msk.f32.gmra.mrb[2].mxu1 %vm683_vm0, %v1415_v26 }
  0x7c   : > { %439 = vrot.lane.b32.xlu1 %v1422_v7, %s1901_s8  ;;  %531 = vrot.lane.b32.xlu0 %v1412_v4, %s1903_s30  ;;  %v380_v29 = vld [vmem:[%s2102_s26 + $0x41] sm:$0xff]  ;;  %v1439_v32 = vld [vmem:[%s2102_s26 + $0x151] sm:$0xff] }
  0x7d   : > { %v1425_v30 = vld [vmem:[%s2102_s26 + $0xe0] sm:$0xff]  ;;  %v381_v34 = vld [vmem:[%s2102_s26 + $0x51] sm:$0xff] }
  0x7e   : > { %1565 = vmatpush3.bf16.msra.mxu0 %v1562_v21  ;;  %v1432_v33 = vld [vmem:[%s2102_s26 + $0x160] sm:$0xff]  ;;  %v1416_v36 = vld [vmem:[%s2102_s26 + $0x1f0] sm:$0xff] }
  0x7f   : > { %1530 = vmatprep.subr.msk.mxu0 %vm785_vm1, %v759_v23  ;;  %v2188_v35 = vld [vmem:[%s2102_s26 + $0x40] sm:$0xff]  ;;  %v1433_v37 = vld [vmem:[%s2102_s26 + $0x170] sm:$0xff]  ;;  %1552 = vmatprep.mubr.msk.f32.mxu1 %vm683_vm0, %v1416_v36 }
  0x80   : > { %563 = vrot.lane.b32.xlu1 %v1436_v8, %s1904_s28  ;;  %533 = vrot.lane.b32.xlu0 %v2131_v9, %s1903_s30  ;;  %v1417_v38 = vld [vmem:[%s2102_s26 + $0x200] sm:$0xff]  ;;  %v1426_v39 = vld [vmem:[%s2102_s26 + $0xf0] sm:$0xff] }
  0x81   : > { %v1440_v40 = vld [vmem:[%s2102_s26 + $0x161] sm:$0xff]  ;;  %v2211_v43 = vld [vmem:[%s2102_s26 + $0x50] sm:$0xff]  ;;  %1553 = vmatmul.mubr.msk.f32.gmra.mrb[4].mxu1 %vm683_vm0, %v1417_v38 }
  0x82   : > { %1531 = vmatpush3.msk.msra.mxu0 %vm785_vm1, %v759_v23  ;;  %v382_v41 = vld [vmem:[%s2102_s26 + $0x61] sm:$0xff]  ;;  %v1441_v44 = vld [vmem:[%s2102_s26 + $0x171] sm:$0xff] }
  0x83   : > { %v1427_v42 = vld [vmem:[%s2102_s26 + $0x100] sm:$0xff]  ;;  %v383_v47 = vld [vmem:[%s2102_s26 + $0x71] sm:$0xff] }
  0x84   : > { %471 = vrot.lane.b32.xlu1 %v378_v10, %s1900_s7  ;;  %441 = vrot.lane.b32.xlu0 %v1423_v11, %s1901_s8  ;;  %v1434_v46 = vld [vmem:[%s2102_s26 + $0x180] sm:$0xff]  ;;  %v1418_v49 = vld [vmem:[%s2102_s26 + $0x210] sm:$0xff] }
  0x85   : > { %v2226_v48 = vld [vmem:[%s2102_s26 + $0x60] sm:$0xff]  ;;  %v1435_v50 = vld [vmem:[%s2102_s26 + $0x190] sm:$0xff]  ;;  %1555 = vmatprep.mubr.msk.f32.mxu1 %vm683_vm0, %v1418_v49 }
  0x86   : > { %v1419_v51 = vld [vmem:[%s2102_s26 + $0x220] sm:$0xff]  ;;  %v1443_v53 = vld [vmem:[%s2102_s26 + $0x191] sm:$0xff] }
  0x87   : > { %1556 = vmatmul.mubr.msk.f32.gmra.mrb[6].mxu1 %vm683_vm0, %v1419_v51  ;;  %v1442_v52 = vld [vmem:[%s2102_s26 + $0x181] sm:$0xff]  ;;  %v2252_v55 = vld [vmem:[%s2102_s26 + $0x70] sm:$0xff] }
  0x88   : > { %595 = vrot.lane.b32.xlu1 %v2141_v12, %s1905_s29  ;;  %565 = vrot.lane.b32.xlu0 %v1437_v13, %s1904_s28  ;;  %v1451_v54 = vld [vmem:[%s2102_s26 + $0x80] sm:$0xff]  ;;  %v1459_v58 = vld [vmem:[%s2102_s26 + $0x110] sm:$0xff] }
  0x89   : > { %v1467_v61 = vld [vmem:[%s2102_s26 + $0x81] sm:$0xff] }
  0x8c   : > { %503 = vrot.lane.b32.xlu1 %v1430_v17, %s1902_s11  ;;  %473 = vrot.lane.b32.xlu0 %v379_v18, %s1900_s7 }
  0x90   : > { %627 = vrot.lane.b32.xlu1 %v1421_v3, %s1906_s15  ;;  %597 = vrot.lane.b32.xlu0 %v2152_v22, %s1905_s29 }
  0x94   : > { %535 = vrot.lane.b32.xlu1 %v1414_v24, %s1903_s30  ;;  %505 = vrot.lane.b32.xlu0 %v1431_v25, %s1902_s11 }
  0x98   : > { %659 = vrot.lane.b32.xlu1 %v377_v2, %s1907_s27  ;;  %629 = vrot.lane.b32.xlu0 %v1422_v7, %s1906_s15 }
  0x9c   : > { %537 = vrot.lane.b32.xlu1 %v1415_v26, %s1903_s30  ;;  %443 = vrot.lane.b32.xlu0 %v1424_v27, %s1901_s8 }
  0xa0   : > { %661 = vrot.lane.b32.xlu1 %v378_v10, %s1907_s27  ;;  %567 = vrot.lane.b32.xlu0 %v1438_v28, %s1904_s28  ;;  %v359_v10 = vld [vmem:[%s2102_s26] sm:$0xff] }
  0xa4   : > { %475 = vrot.lane.b32.xlu1 %v380_v29, %s1900_s7  ;;  %445 = vrot.lane.b32.xlu0 %v1425_v30, %s1901_s8 }
  0xa8   : > { %599 = vrot.lane.b32.xlu1 %v2177_v31, %s1905_s29  ;;  %569 = vrot.lane.b32.xlu0 %v1439_v32, %s1904_s28 }
  0xac   : > { %507 = vrot.lane.b32.xlu1 %v1432_v33, %s1902_s11  ;;  %477 = vrot.lane.b32.xlu0 %v381_v34, %s1900_s7 }
  0xb0   : > { %631 = vrot.lane.b32.xlu1 %v1423_v11, %s1906_s15  ;;  %601 = vrot.lane.b32.xlu0 %v2188_v35, %s1905_s29 }
  0xb4   : > { %539 = vrot.lane.b32.xlu1 %v1416_v36, %s1903_s30  ;;  %509 = vrot.lane.b32.xlu0 %v1433_v37, %s1902_s11 }
  0xb8   : > { %663 = vrot.lane.b32.xlu1 %v379_v18, %s1907_s27  ;;  %633 = vrot.lane.b32.xlu0 %v1424_v27, %s1906_s15 }
  0xbc   : > { %541 = vrot.lane.b32.xlu1 %v1417_v38, %s1903_s30  ;;  %447 = vrot.lane.b32.xlu0 %v1426_v39, %s1901_s8 }
  0xc0   : > { %665 = vrot.lane.b32.xlu1 %v380_v29, %s1907_s27  ;;  %571 = vrot.lane.b32.xlu0 %v1440_v40, %s1904_s28 }
  0xc4   : > { %479 = vrot.lane.b32.xlu1 %v382_v41, %s1900_s7  ;;  %449 = vrot.lane.b32.xlu0 %v1427_v42, %s1901_s8 }
  0xc8   : > { %603 = vrot.lane.b32.xlu1 %v2211_v43, %s1905_s29  ;;  %573 = vrot.lane.b32.xlu0 %v1441_v44, %s1904_s28 }
  0xcc   : > { %511 = vrot.lane.b32.xlu1 %v1434_v46, %s1902_s11  ;;  %481 = vrot.lane.b32.xlu0 %v383_v47, %s1900_s7 }
  0xd0   : > { %635 = vrot.lane.b32.xlu1 %v1425_v30, %s1906_s15  ;;  %605 = vrot.lane.b32.xlu0 %v2226_v48, %s1905_s29 }
  0xd4   : > { %543 = vrot.lane.b32.xlu1 %v1418_v49, %s1903_s30  ;;  %513 = vrot.lane.b32.xlu0 %v1435_v50, %s1902_s11  ;;  %s2401_s11 = scalar_lea.hbm %s2589_s4, %s2601_s13 }
  0xd8   : > { %667 = vrot.lane.b32.xlu1 %v381_v34, %s1907_s27  ;;  %637 = vrot.lane.b32.xlu0 %v1426_v39, %s1906_s15 }
  0xdc   : > { %575 = vrot.lane.b32.xlu1 %v1442_v52, %s1904_s28  ;;  %545 = vrot.lane.b32.xlu0 %v1419_v51, %s1903_s30  ;;  %s2403_s30 = scalar_lea.sflag [#allocation10], %s1146_s12 }
  0xe0   : > { %577 = vrot.lane.b32.xlu1 %v1443_v53, %s1904_s28  ;;  %669 = vrot.lane.b32.xlu0 %v382_v41, %s1907_s27  ;;  %s1726_s28 = scalar_lea.vmem %s2392_s19, 1024 }
  0xe1   : > { %p1727_p12 = scmp.ne.s32.totalorder %s2392_s19, %s1726_s28 }
  0xe2   : > { %v468_v56 = vpop.permute.xlu1 %467  ;;  %v436_v57 = vpop.permute.xlu0 %435 }
  0xe3   : > { %v684_v11 = vsel %vm683_vm0, %v359_v10, %v436_v57  ;;  %p1728_p0 = pnand %p1727_p12, %p2616_p13 }
  0xe4   : > { %609 = vrot.lane.b32.xlu1 %v1451_v54, %s1905_s29  ;;  %607 = vrot.lane.b32.xlu0 %v2252_v55, %s1905_s29  ;;  %v693_v15 = vsel %vm692_vm2, %v684_v11, %v468_v56  ;;  %s1908_s29 = smov [#allocation9]  }
  0xe5   : > { %p1729_p7 = pneg %p1728_p0 }
  0xe6   : > { %v470_v59 = vpop.permute.xlu1 %469  ;;  %v438_v60 = vpop.permute.xlu0 %437 }
  0xe7   : > { %v685_v23 = vsel %vm683_vm0, %v2141_v12, %v438_v60 }
  0xe8   : > { %641 = vrot.lane.b32.xlu1 %v1459_v58, %s1906_s15  ;;  %639 = vrot.lane.b32.xlu0 %v1427_v42, %s1906_s15  ;;  %v694_v28 = vsel %vm692_vm2, %v685_v23, %v470_v59  ;;  %s1730_s15 = sshll.u32 %s1908_s29, 4  ;;  %s1731_s15 = int_to_ptr.vmem [resolvable:$false] %s1730_s15 }
  0xe9   : > { %p1733_p8 = scmp.lt.s32.totalorder %s2392_s19, %s1731_s15 }
  0xea   : > { %v502_v62 = vpop.permute.xlu1 %501  ;;  %v500_v63 = vpop.permute.xlu0 %499 }
  0xeb   : > { %v702_v16 = vsel %vm701_vm3, %v693_v15, %v500_v63  ;;  %v703_v29 = vsel %vm701_vm3, %v694_v28, %v502_v62 }
  0xec   : > { %673 = vrot.lane.b32.xlu1 %v1467_v61, %s1907_s27  ;;  %671 = vrot.lane.b32.xlu0 %v383_v47, %s1907_s27  ;;  %s1732_s27 = scalar_lea.vmem %s1731_s15, 2048 }
  0xed   : > { %p1734_p9 = scmp.lt.s32.totalorder %s1732_s27, %s1726_s28 }
  0xee   : > { %v440_v0 = vpop.permute.xlu1 %439  ;;  %v532_v1 = vpop.permute.xlu0 %531 }
  0xef   : > { %v711_v19 = vsel %vm710_vm4, %v702_v16, %v532_v1  ;;  %v686_v50 = vsel %vm683_vm0, %v2152_v22, %v440_v0  ;;  %p1735_p10 = por %p1734_p9, %p1733_p8 }
  0xf1   : > { %p1736_p1 = pnand %p1735_p10, %p1729_p7 }
  0xf2   : > { %v564_v2 = vpop.permute.xlu1 %563  ;;  %v534_v3 = vpop.permute.xlu0 %533 }
  0xf3   : > { %v720_v20 = vsel %vm719_vm5, %v711_v19, %v564_v2  ;;  %v712_v33 = vsel %vm710_vm4, %v703_v29, %v534_v3 }
  0xf6   : > { %v472_v4 = vpop.permute.xlu1 %471  ;;  %v2263_v5 = vpop.permute.xlu0 %441 }
  0xf7   : > { %v695_v51 = vsel %vm692_vm2, %v686_v50, %v472_v4  ;;  %v687_v22 = vsel %vm683_vm0, %v2177_v31, %v2263_v5 }
  0xfa   : > { %v596_v6 = vpop.permute.xlu1 %595  ;;  %v566_v7 = vpop.permute.xlu0 %565 }
  0xfb   : > { %v729_v21 = vsel %vm728_vm6, %v720_v20, %v596_v6  ;;  %v721_v34 = vsel %vm719_vm5, %v712_v33, %v566_v7 }
  0xfe   : > { %v504_v8 = vpop.permute.xlu1 %503  ;;  %v474_v9 = vpop.permute.xlu0 %473 }
  0xff   : > { %v704_v52 = vsel %vm701_vm3, %v695_v51, %v504_v8  ;;  %v696_v63 = vsel %vm692_vm2, %v687_v22, %v474_v9 }
 0x102   : > { %v628_v13 = vpop.permute.xlu1 %627  ;;  %v598_v14 = vpop.permute.xlu0 %597 }
 0x103   : > { %v738_v24 = vsel %vm737_vm7, %v729_v21, %v628_v13  ;;  %v730_v12 = vsel %vm728_vm6, %v721_v34, %v598_v14 }
 0x106   : > { %v536_v17 = vpop.permute.xlu1 %535  ;;  %v506_v18 = vpop.permute.xlu0 %505 }
 0x107   : > { %v713_v56 = vsel %vm710_vm4, %v704_v52, %v536_v17  ;;  %v705_v0 = vsel %vm701_vm3, %v696_v63, %v506_v18 }
 0x10a   : > { %v660_v25 = vpop.permute.xlu1 %659  ;;  %v630_v26 = vpop.permute.xlu0 %629 }
 0x10b   : > { %v747_v27 = vsel %vm746_vm8, %v738_v24, %v660_v25  ;;  %v739_v36 = vsel %vm737_vm7, %v730_v12, %v630_v26 }
 0x10c   : > { %1532 = vmatprep.mubr.msk.f32.mxu0 %vm760_vm9, %v747_v27 }
 0x10e   : > { %v538_v30 = vpop.permute.xlu1 %537  ;;  %v444_v32 = vpop.permute.xlu0 %443 }
 0x10f   : > { %v714_v3 = vsel %vm710_vm4, %v705_v0, %v538_v30  ;;  %v688_v18 = vsel %vm683_vm0, %v2188_v35, %v444_v32 }
 0x112   : > { %v662_v37 = vpop.permute.xlu1 %661  ;;  %v568_v38 = vpop.permute.xlu0 %567 }
 0x113   : > { %v748_v39 = vsel %vm746_vm8, %v739_v36, %v662_v37  ;;  %v722_v57 = vsel %vm719_vm5, %v713_v56, %v568_v38 }
 0x114   : > { %1533 = vmatmul.mubr.msk.f32.vlgmr.msra.gmra.mrb[0].mxu0 %vm760_vm9, %v748_v39 }
 0x116   : > { %v476_v40 = vpop.permute.xlu1 %475  ;;  %v446_v41 = vpop.permute.xlu0 %445 }
 0x117   : > { %v697_v19 = vsel %vm692_vm2, %v688_v18, %v476_v40  ;;  %v689_v35 = vsel %vm683_vm0, %v2211_v43, %v446_v41 }
 0x11a   : > { %v600_v42 = vpop.permute.xlu1 %599  ;;  %v570_v44 = vpop.permute.xlu0 %569 }
 0x11b   : > { %v731_v58 = vsel %vm728_vm6, %v722_v57, %v600_v42  ;;  %v723_v4 = vsel %vm719_vm5, %v714_v3, %v570_v44 }
 0x11e   : > { %v508_v45 = vpop.permute.xlu1 %507  ;;  %v478_v46 = vpop.permute.xlu0 %477 }
 0x11f   : > { %v706_v20 = vsel %vm701_vm3, %v697_v19, %v508_v45  ;;  %v698_v32 = vsel %vm692_vm2, %v689_v35, %v478_v46 }
 0x122   : > { %v632_v47 = vpop.permute.xlu1 %631  ;;  %v602_v49 = vpop.permute.xlu0 %601 }
 0x123   : > { %v740_v59 = vsel %vm737_vm7, %v731_v58, %v632_v47  ;;  %v732_v6 = vsel %vm728_vm6, %v723_v4, %v602_v49 }
 0x126   : > { %v540_v53 = vpop.permute.xlu1 %539  ;;  %v510_v54 = vpop.permute.xlu0 %509 }
 0x127   : > { %v715_v24 = vsel %vm710_vm4, %v706_v20, %v540_v53  ;;  %v707_v33 = vsel %vm701_vm3, %v698_v32, %v510_v54 }
 0x12a   : > { %v664_v60 = vpop.permute.xlu1 %663  ;;  %v634_v61 = vpop.permute.xlu0 %633 }
 0x12b   : > { %v749_v62 = vsel %vm746_vm8, %v740_v59, %v664_v60  ;;  %v741_v7 = vsel %vm737_vm7, %v732_v6, %v634_v61 }
 0x12c   : > { %1535 = vmatprep.mubr.msk.f32.mxu0 %vm760_vm9, %v749_v62 }
 0x12e   : > { %v542_v1 = vpop.permute.xlu1 %541  ;;  %v448_v2 = vpop.permute.xlu0 %447 }
 0x12f   : > { %v716_v36 = vsel %vm710_vm4, %v707_v33, %v542_v1  ;;  %v690_v45 = vsel %vm683_vm0, %v2226_v48, %v448_v2 }
 0x132   : > { %v666_v8 = vpop.permute.xlu1 %665  ;;  %v572_v10 = vpop.permute.xlu0 %571 }
 0x133   : > { %v750_v31 = vsel %vm746_vm8, %v741_v7, %v666_v8  ;;  %v724_v25 = vsel %vm719_vm5, %v715_v24, %v572_v10 }
 0x134   : > { %1536 = vmatmul.mubr.msk.f32.gmra.mrb[2].mxu0 %vm760_vm9, %v750_v31 }
 0x136   : > { %v480_v5 = vpop.permute.xlu1 %479  ;;  %v450_v9 = vpop.permute.xlu0 %449 }
 0x137   : > { %v691_v46 = vsel %vm683_vm0, %v2252_v55, %v450_v9  ;;  %v699_v47 = vsel %vm692_vm2, %v690_v45, %v480_v5 }
 0x13a   : > { %v604_v11 = vpop.permute.xlu1 %603  ;;  %v574_v13 = vpop.permute.xlu0 %573 }
 0x13b   : > { %v733_v26 = vsel %vm728_vm6, %v724_v25, %v604_v11  ;;  %v725_v37 = vsel %vm719_vm5, %v716_v36, %v574_v13 }
 0x13e   : > { %v512_v14 = vpop.permute.xlu1 %511  ;;  %v482_v15 = vpop.permute.xlu0 %481 }
 0x13f   : > { %v700_v49 = vsel %vm692_vm2, %v691_v46, %v482_v15  ;;  %v708_v50 = vsel %vm701_vm3, %v699_v47, %v512_v14 }
 0x142   : > { %v636_v16 = vpop.permute.xlu1 %635  ;;  %v606_v17 = vpop.permute.xlu0 %605 }
 0x143   : > { %v742_v27 = vsel %vm737_vm7, %v733_v26, %v636_v16  ;;  %v734_v38 = vsel %vm728_vm6, %v725_v37, %v606_v17 }
 0x146   : > { %v544_v21 = vpop.permute.xlu1 %543  ;;  %v514_v23 = vpop.permute.xlu0 %513 }
 0x147   : > { %v709_v51 = vsel %vm701_vm3, %v700_v49, %v514_v23  ;;  %v717_v54 = vsel %vm710_vm4, %v708_v50, %v544_v21 }
 0x14a   : > { %v668_v28 = vpop.permute.xlu1 %667  ;;  %v638_v29 = vpop.permute.xlu0 %637 }
 0x14b   : > { %v751_v30 = vsel %vm746_vm8, %v742_v27, %v668_v28  ;;  %v743_v39 = vsel %vm737_vm7, %v734_v38, %v638_v29  ;;  %v1548_v0 = vpop.f32.mrb[0].mxu1 }
 0x14c   : > { %1538 = vmatprep.mubr.msk.f32.mxu0 %vm760_vm9, %v751_v30  ;;  %1028 = vst.msk [vmem:[%s2349_s17 + $0x8] sm:$0xff] %vm692_vm2, %v1548_v0  ;;  %v1090_v1 = vsel %vm692_vm2, %v1548_v0, 0.0  ;;  %v1111_v2 = vmul.f32 %v1548_v0, %v1548_v0  ;;  %v980_v3 = vpop.f32.mrb[1].mxu1 }
 0x14d   : > { %1027 = vst.msk [vmem:[%s2349_s17] sm:$0xff] %vm692_vm2, %v980_v3  ;;  %v1089_v4 = vsel %vm692_vm2, %v980_v3, 0.0  ;;  %v1110_v6 = vmul.f32 %v980_v3, %v980_v3 }
 0x14e   : > { %v576_v34 = vpop.permute.xlu1 %575  ;;  %v546_v12 = vpop.permute.xlu0 %545  ;;  %v1119_v7 = vsel %vm692_vm2, %v1111_v2, 0.0  ;;  %v1091_v8 = vadd.f32 %v1090_v1, %v1089_v4 }
 0x14f   : > { %v718_v56 = vsel %vm710_vm4, %v709_v51, %v546_v12  ;;  %v726_v48 = vsel %vm719_vm5, %v717_v54, %v576_v34  ;;  %v1118_v10 = vsel %vm692_vm2, %v1110_v6, 0.0  ;;  %v1551_v31 = vpop.f32.mrb[2].mxu1 }
 0x150   : > { %v1120_v5 = vadd.f32 %v1119_v7, %v1118_v10  ;;  %1030 = vst.msk [vmem:[%s2349_s17 + $0x18] sm:$0xff] %vm692_vm2, %v1551_v31  ;;  %v1113_v9 = vmul.f32 %v1551_v31, %v1551_v31  ;;  %v990_v11 = vpop.f32.mrb[3].mxu1  ;;  %v1094_v13 = vsel %vm692_vm2, %v1551_v31, 0.0 }
 0x151   : > { %1029 = vst.msk [vmem:[%s2349_s17 + $0x10] sm:$0xff] %vm692_vm2, %v990_v11  ;;  %v1092_v14 = vsel %vm692_vm2, %v990_v11, 0.0  ;;  %v1112_v15 = vmul.f32 %v990_v11, %v990_v11 }
 0x152   : > { %v578_v40 = vpop.permute.xlu1 %577  ;;  %v670_v42 = vpop.permute.xlu0 %669  ;;  %v1093_v16 = vadd.f32 %v1092_v14, %v1091_v8  ;;  %v1123_v17 = vsel %vm692_vm2, %v1113_v9, 0.0 }
 0x153   : > { %v752_v43 = vsel %vm746_vm8, %v743_v39, %v670_v42  ;;  %v727_v55 = vsel %vm719_vm5, %v718_v56, %v578_v40  ;;  %v1121_v18 = vsel %vm692_vm2, %v1112_v15, 0.0 }
 0x154   : > { %1539 = vmatmul.mubr.msk.f32.gmra.mrb[4].mxu0 %vm760_vm9, %v752_v43  ;;  %v1554_v19 = vpop.f32.mrb[4].mxu1  ;;  %v1122_v20 = vadd.f32 %v1121_v18, %v1120_v5  ;;  %v1095_v24 = vadd.f32 %v1094_v13, %v1093_v16 }
 0x155   : > { %1032 = vst.msk [vmem:[%s2349_s17 + $0x28] sm:$0xff] %vm692_vm2, %v1554_v19  ;;  %v1115_v21 = vmul.f32 %v1554_v19, %v1554_v19  ;;  %v1000_v23 = vpop.f32.mrb[5].mxu1  ;;  %v1098_v27 = vsel %vm692_vm2, %v1554_v19, 0.0 }
 0x156   : > { %v610_v41 = vpop.permute.xlu1 %609  ;;  %v608_v44 = vpop.permute.xlu0 %607  ;;  %1031 = vst.msk [vmem:[%s2349_s17 + $0x20] sm:$0xff] %vm692_vm2, %v1000_v23  ;;  %v1096_v25 = vsel %vm692_vm2, %v1000_v23, 0.0  ;;  %v1114_v26 = vmul.f32 %v1000_v23, %v1000_v23  ;;  %v1124_v29 = vadd.f32 %v1123_v17, %v1122_v20 }
 0x157   : > { %v736_v57 = vsel %vm728_vm6, %v727_v55, %v610_v41  ;;  %v735_v58 = vsel %vm728_vm6, %v726_v48, %v608_v44  ;;  %v1097_v28 = vadd.f32 %v1096_v25, %v1095_v24  ;;  %v1127_v30 = vsel %vm692_vm2, %v1115_v21, 0.0 }
 0x158   : > { %v1125_v35 = vsel %vm692_vm2, %v1114_v26, 0.0 }
 0x159   : > { %v1126_v33 = vadd.f32 %v1125_v35, %v1124_v29  ;;  %v1099_v36 = vadd.f32 %v1098_v27, %v1097_v28 }
 0x15a   : > { %v642_v52 = vpop.permute.xlu1 %641  ;;  %v640_v53 = vpop.permute.xlu0 %639 }
 0x15b   : > { %v745_v59 = vsel %vm737_vm7, %v736_v57, %v642_v52  ;;  %v744_v60 = vsel %vm737_vm7, %v735_v58, %v640_v53  ;;  %v1557_v32 = vpop.f32.mrb[6].mxu1  ;;  %v1128_v40 = vadd.f32 %v1127_v30, %v1126_v33 }
 0x15c   : > { %1034 = vst.msk [vmem:[%s2349_s17 + $0x38] sm:$0xff] %vm692_vm2, %v1557_v32  ;;  %v1010_v34 = vpop.f32.mrb[7].mxu1  ;;  %v1117_v12 = vmul.f32 %v1557_v32, %v1557_v32  ;;  %v1102_v38 = vsel %vm692_vm2, %v1557_v32, 0.0 }
 0x15d   : > { %1033 = vst.msk [vmem:[%s2349_s17 + $0x30] sm:$0xff] %vm692_vm2, %v1010_v34  ;;  %v1100_v37 = vsel %vm692_vm2, %v1010_v34, 0.0  ;;  %v1116_v39 = vmul.f32 %v1010_v34, %v1010_v34 }
 0x15e   : > { %v674_v61 = vpop.permute.xlu1 %673  ;;  %v672_v62 = vpop.permute.xlu0 %671  ;;  %v1101_v42 = vadd.f32 %v1100_v37, %v1099_v36  ;;  %v1131_v43 = vsel %vm692_vm2, %v1117_v12, 0.0 }
 0x15f   : > { %v754_v22 = vsel %vm746_vm8, %v745_v59, %v674_v61  ;;  %v753_v63 = vsel %vm746_vm8, %v744_v60, %v672_v62  ;;  %v1129_v41 = vsel %vm692_vm2, %v1116_v39, 0.0 }
 0x160   : > { %1541 = vmatprep.mubr.msk.f32.mxu0 %vm760_vm9, %v753_v63  ;;  %v1103_v44 = vadd.f32 %v1102_v38, %v1101_v42  ;;  %v1130_v45 = vadd.f32 %v1129_v41, %v1128_v40 }
 0x161   : > { %1542 = vmatmul.mubr.msk.f32.gmra.mrb[6].mxu0 %vm760_vm9, %v754_v22 }
 0x162   : > { %v1104_v46 = vrot.slane %v1103_v44, 4  ;;  %v1132_v47 = vadd.f32 %v1131_v43, %v1130_v45 }
 0x164   : > { %v1105_v49 = vadd.f32 %v1104_v46, %v1103_v44  ;;  %v1133_v50 = vrot.slane %v1132_v47, 4 }
 0x166   : > { %v1106_v51 = vrot.slane %v1105_v49, 2  ;;  %v1134_v52 = vadd.f32 %v1133_v50, %v1132_v47 }
 0x168   : > { %v1107_v53 = vadd.f32 %v1106_v51, %v1105_v49  ;;  %v1135_v54 = vrot.slane %v1134_v52, 2 }
 0x16a   : > { %v1108_v56 = vrot.slane %v1107_v53, 1  ;;  %v1136_v48 = vadd.f32 %v1135_v54, %v1134_v52 }
 0x16c   : > { %v1109_v55 = vadd.f32 %v1108_v56, %v1107_v53  ;;  %v1137_v57 = vrot.slane %v1136_v48, 1 }
 0x16e   : > { %v1138_v58 = vadd.f32 %v1137_v57, %v1136_v48 }
 0x170   : > { %v1139_v59 = vsel %vm1085_vm10, %v1109_v55, %v1138_v58 }
 0x171   : > { %1140 = vst.msk [vmem:[%s2387_s14] sm:$0x3] %vm1087_vm11, %v1139_v59 }
 0x172   : > { %1739 = shalt.err (!%p1736_p1)
}
 0x173   : > { %s1740_s17 = scalar_lea.hbm %s2401_s11, 1024  ;;  %s1744_s8 = scalar_lea.hbm %s2589_s4, 2048 }
 0x174   : > { %p1741_p3 = scmp.ne.s32.totalorder %s2401_s11, %s1740_s17  ;;  %p1745_p6 = scmp.lt.u32.totalorder %s2401_s11, %s2589_s4 }
 0x175   : > { %p1746_p11 = scmp.lt.u32.totalorder %s1744_s8, %s1740_s17  ;;  %p1748_p0 = scmp.lt.u32.totalorder %s1740_s17, %s2401_s11 }
 0x176   : > { %p1742_p2 = pnand %p1741_p3, %p2616_p13 }
 0x177   : > { %p1747_p12 = por %p1746_p11, %p1745_p6 }
 0x178   : > { %p1743_p5 = pneg %p1742_p2 }
 0x179   : > { %p1749_p7 = por %p1748_p0, %p1747_p12 }
 0x17b   : > { %p1750_p8 = pnand %p1749_p7, %p1743_p5 }
 0x17d   : > { %1753 = shalt.err (!%p1750_p8)
}
 0x17e   : > { %s1909_s28 = smov 128   ;;  %s1494_s27 = sshll.u32 %s1969_s25, 5 }
 0x17f   : > { %1587 = dma.vmem_to_hbm [thread:$0]  (%p2616_p13), %s2392_s19, 1024, %s2401_s11, %s2403_s30, %s1909_s28, %s1909_s28, %s1900_s7  }
 0x180   : > { %s2436_s26 = scalar_lea.hbm %s2591_s6, %s1494_s27  ;;  %s1215_s8 = sshll.u32 %s2387_s14, 4  ;;  %s1216_s8 = int_to_ptr.vmem [resolvable:$true] %s1215_s8 }
 0x181   : > { %s1157_s29 = scalar_lea.sflag [#allocation13], %s2098_s20  ;;  %s1754_s15 = scalar_lea.vmem %s1216_s8, 32 }
 0x182   : > { %p1755_p9 = scmp.ne.s32.totalorder %s1216_s8, %s1754_s15  ;;  %s1910_s16 = smov [#allocation12]  }
 0x183   : > { %s1758_s13 = sshll.u32 %s1910_s16, 4  ;;  %s1759_s13 = int_to_ptr.vmem [resolvable:$false] %s1758_s13 }
 0x184   : > { %p1756_p10 = pnand %p1755_p9, %p2616_p13  ;;  %s1760_s18 = scalar_lea.vmem %s1759_s13, 64 }
 0x185   : > { %p1761_p3 = scmp.lt.s32.totalorder %s1216_s8, %s1759_s13  ;;  %p1762_p2 = scmp.lt.s32.totalorder %s1760_s18, %s1754_s15 }
 0x186   : > { %p1757_p1 = pneg %p1756_p10 }
 0x187   : > { %p1763_p5 = por %p1762_p2, %p1761_p3 }
 0x189   : > { %p1764_p6 = pnand %p1763_p5, %p1757_p1 }
 0x18b   : > { %1767 = shalt.err (!%p1764_p6)
}
 0x18c   : > { %s1768_s14 = scalar_lea.hbm %s2436_s26, 32  ;;  %s1772_s16 = scalar_lea.hbm %s2591_s6, 64 }
 0x18d   : > { %p1769_p11 = scmp.ne.s32.totalorder %s2436_s26, %s1768_s14  ;;  %p1773_p7 = scmp.lt.u32.totalorder %s2436_s26, %s2591_s6 }
 0x18e   : > { %p1774_p8 = scmp.lt.u32.totalorder %s1772_s16, %s1768_s14  ;;  %p1776_p10 = scmp.lt.u32.totalorder %s1768_s14, %s2436_s26 }
 0x18f   : > { %p1770_p12 = pnand %p1769_p11, %p2616_p13 }
 0x190   : > { %p1775_p9 = por %p1774_p8, %p1773_p7 }
 0x191   : > { %p1771_p0 = pneg %p1770_p12 }
 0x192   : > { %p1777_p1 = por %p1776_p10, %p1775_p9 }
 0x194   : > { %p1778_p3 = pnand %p1777_p1, %p1771_p0 }
 0x196   : > { %1781 = shalt.err (!%p1778_p3)
}
 0x197   : > { %1589 = dma.vmem_to_hbm [thread:$0]  (%p2616_p13), %s1216_s8, 32, %s2436_s26, %s1157_s29  }
 0x198   : > { %s2617_s18 = sshll.u32 %s2098_s20, 6  ;;  %s2618_s8 = sshll.u32 %s1969_s25, 10 }
 0x199   : > { %s2459_s12 = scalar_lea.vmem [#allocation8], %s2617_s18  ;;  %s2493_s14 = scalar_lea.hbm %s2588_s3, %s2618_s8 }
 0x19a   : > { %s1170_s26 = sshll.u32 %s2459_s12, 4  ;;  %s1142_s19 = scalar_lea.sflag [#allocation4], %s2098_s20  ;;  %s2486_s26 = int_to_ptr.vmem [resolvable:$true] %s1170_s26 }
 0x19b   : > { %s1782_s11 = scalar_lea.vmem %s2486_s26, 1024  ;;  %s1911_s16 = smov [#allocation8]  }
 0x19c   : > { %p1783_p2 = scmp.ne.s32.totalorder %s2486_s26, %s1782_s11  ;;  %s1786_s17 = sshll.u32 %s1911_s16, 4  ;;  %s1787_s17 = int_to_ptr.vmem [resolvable:$false] %s1786_s17 }
 0x19d   : > { %s1788_s13 = scalar_lea.vmem %s1787_s17, 2048  ;;  %p1789_p11 = scmp.lt.s32.totalorder %s2486_s26, %s1787_s17 }
 0x19e   : > { %p1784_p5 = pnand %p1783_p2, %p2616_p13  ;;  %p1790_p12 = scmp.lt.s32.totalorder %s1788_s13, %s1782_s11 }
 0x1a0   : > { %p1785_p6 = pneg %p1784_p5  ;;  %p1791_p0 = por %p1790_p12, %p1789_p11 }
 0x1a2   : > { %p1792_p7 = pnand %p1791_p0, %p1785_p6 }
 0x1e7   : > { %v1534_v60 = vpop.f32.mrb[0].mxu0 }
 0x1e8   : > { %1020 = vst.msk [vmem:[%s2459_s12 + $0x8] sm:$0xff] %vm692_vm2, %v1534_v60  ;;  %v1036_v61 = vsel %vm692_vm2, %v1534_v60, 0.0  ;;  %v1057_v62 = vmul.f32 %v1534_v60, %v1534_v60  ;;  %v855_v22 = vpop.f32.mrb[1].mxu0 }
 0x1e9   : > { %1019 = vst.msk [vmem:[%s2459_s12] sm:$0xff] %vm692_vm2, %v855_v22  ;;  %v1035_v63 = vsel %vm692_vm2, %v855_v22, 0.0  ;;  %v1056_v0 = vmul.f32 %v855_v22, %v855_v22 }
 0x1ea   : > { %v1065_v1 = vsel %vm692_vm2, %v1057_v62, 0.0  ;;  %v1037_v2 = vadd.f32 %v1036_v61, %v1035_v63 }
 0x1eb   : > { %v1064_v3 = vsel %vm692_vm2, %v1056_v0, 0.0 }
 0x1ec   : > { %v1066_v4 = vadd.f32 %v1065_v1, %v1064_v3 }
 0x207   : > { %v1537_v6 = vpop.f32.mrb[2].mxu0 }
 0x208   : > { %1022 = vst.msk [vmem:[%s2459_s12 + $0x18] sm:$0xff] %vm692_vm2, %v1537_v6  ;;  %v865_v7 = vpop.f32.mrb[3].mxu0  ;;  %v1059_v8 = vmul.f32 %v1537_v6, %v1537_v6  ;;  %v1040_v9 = vsel %vm692_vm2, %v1537_v6, 0.0 }
 0x209   : > { %1021 = vst.msk [vmem:[%s2459_s12 + $0x10] sm:$0xff] %vm692_vm2, %v865_v7  ;;  %v1038_v10 = vsel %vm692_vm2, %v865_v7, 0.0  ;;  %v1058_v31 = vmul.f32 %v865_v7, %v865_v7 }
 0x20a   : > { %v1039_v5 = vadd.f32 %v1038_v10, %v1037_v2  ;;  %v1069_v15 = vsel %vm692_vm2, %v1059_v8, 0.0 }
 0x20b   : > { %v1067_v11 = vsel %vm692_vm2, %v1058_v31, 0.0 }
 0x20c   : > { %v1068_v13 = vadd.f32 %v1067_v11, %v1066_v4  ;;  %v1041_v14 = vadd.f32 %v1040_v9, %v1039_v5 }
 0x20e   : > { %v1070_v16 = vadd.f32 %v1069_v15, %v1068_v13 }
 0x227   : > { %v1540_v17 = vpop.f32.mrb[4].mxu0 }
 0x228   : > { %1024 = vst.msk [vmem:[%s2459_s12 + $0x28] sm:$0xff] %vm692_vm2, %v1540_v17  ;;  %v875_v18 = vpop.f32.mrb[5].mxu0  ;;  %v1061_v19 = vmul.f32 %v1540_v17, %v1540_v17  ;;  %v1044_v24 = vsel %vm692_vm2, %v1540_v17, 0.0 }
 0x229   : > { %1023 = vst.msk [vmem:[%s2459_s12 + $0x20] sm:$0xff] %vm692_vm2, %v875_v18  ;;  %v1042_v20 = vsel %vm692_vm2, %v875_v18, 0.0  ;;  %v1060_v21 = vmul.f32 %v875_v18, %v875_v18 }
 0x22a   : > { %v1043_v23 = vadd.f32 %v1042_v20, %v1041_v14  ;;  %v1073_v28 = vsel %vm692_vm2, %v1061_v19, 0.0 }
 0x22b   : > { %v1071_v25 = vsel %vm692_vm2, %v1060_v21, 0.0 }
 0x22c   : > { %v1072_v26 = vadd.f32 %v1071_v25, %v1070_v16  ;;  %v1045_v27 = vadd.f32 %v1044_v24, %v1043_v23 }
 0x22e   : > { %v1074_v29 = vadd.f32 %v1073_v28, %v1072_v26 }
 0x234   : > { %v1543_v30 = vpop.f32.mrb[6].mxu0 }
 0x235   : > { %1026 = vst.msk [vmem:[%s2459_s12 + $0x38] sm:$0xff] %vm692_vm2, %v1543_v30  ;;  %v885_v35 = vpop.f32.mrb[7].mxu0  ;;  %v1063_v32 = vmul.f32 %v1543_v30, %v1543_v30 }
 0x236   : > { %1025 = vst.msk [vmem:[%s2459_s12 + $0x30] sm:$0xff] %vm692_vm2, %v885_v35  ;;  %v1046_v33 = vsel %vm692_vm2, %v885_v35, 0.0  ;;  %v1062_v34 = vmul.f32 %v885_v35, %v885_v35 }
 0x237   : > { %v1047_v12 = vadd.f32 %v1046_v33, %v1045_v27 }
 0x238   : > { %1795 = shalt.err (!%p1792_p7)
}
 0x239   : > { %s1796_s18 = scalar_lea.hbm %s2493_s14, 1024  ;;  %s1800_s29 = scalar_lea.hbm %s2588_s3, 2048 }
 0x23a   : > { %p1797_p8 = scmp.ne.s32.totalorder %s2493_s14, %s1796_s18  ;;  %p1801_p1 = scmp.lt.u32.totalorder %s2493_s14, %s2588_s3 }
 0x23b   : > { %p1802_p3 = scmp.lt.u32.totalorder %s1800_s29, %s1796_s18  ;;  %p1804_p5 = scmp.lt.u32.totalorder %s1796_s18, %s2493_s14 }
 0x23c   : > { %p1798_p9 = pnand %p1797_p8, %p2616_p13 }
 0x23d   : > { %p1803_p2 = por %p1802_p3, %p1801_p1 }
 0x23e   : > { %p1799_p10 = pneg %p1798_p9 }
 0x23f   : > { %p1805_p6 = por %p1804_p5, %p1803_p2 }
 0x241   : > { %p1806_p11 = pnand %p1805_p6, %p1799_p10 }
 0x243   : > { %1809 = shalt.err (!%p1806_p11)
}
 0x244   : > { %1586 = dma.vmem_to_hbm [thread:$0]  (%p2616_p13), %s2486_s26, 1024, %s2493_s14, %s1142_s19, %s1909_s28, %s1909_s28, %s1900_s7   ;;  %v1048_v36 = vsel %vm692_vm2, %v1543_v30, 0.0  ;;  %v1075_v37 = vsel %vm692_vm2, %v1062_v34, 0.0  ;;  %v1077_v40 = vsel %vm692_vm2, %v1063_v32, 0.0 }
 0x245   : > { %v1049_v38 = vadd.f32 %v1048_v36, %v1047_v12  ;;  %v1076_v39 = vadd.f32 %v1075_v37, %v1074_v29  ;;  %s2619_s7 = sshll.u32 %s2098_s20, 1  ;;  %s2537_s11 = scalar_lea.hbm %s2590_s5, %s1494_s27 }
 0x246   : > { %s342_s28 = scalar_lea.vmem [#allocation11], %s2619_s7  ;;  %s1912_s25 = smov [#allocation11]  }
 0x247   : > { %v1050_v42 = vrot.slane %v1049_v38, 4  ;;  %v1078_v43 = vadd.f32 %v1077_v40, %v1076_v39  ;;  %s1202_s26 = sshll.u32 %s342_s28, 4  ;;  %s1814_s17 = sshll.u32 %s1912_s25, 4  ;;  %s2539_s26 = int_to_ptr.vmem [resolvable:$true] %s1202_s26  ;;  %s1815_s17 = int_to_ptr.vmem [resolvable:$false] %s1814_s17 }
 0x248   : > { %s1810_s20 = scalar_lea.vmem %s2539_s26, 32  ;;  %s1816_s13 = scalar_lea.vmem %s1815_s17, 64 }
 0x249   : > { %v1051_v41 = vadd.f32 %v1050_v42, %v1049_v38  ;;  %v1079_v44 = vrot.slane %v1078_v43, 4  ;;  %p1811_p12 = scmp.ne.s32.totalorder %s2539_s26, %s1810_s20  ;;  %p1817_p8 = scmp.lt.s32.totalorder %s2539_s26, %s1815_s17 }
 0x24a   : > { %p1818_p9 = scmp.lt.s32.totalorder %s1816_s13, %s1810_s20 }
 0x24b   : > { %v1052_v45 = vrot.slane %v1051_v41, 2  ;;  %v1080_v46 = vadd.f32 %v1079_v44, %v1078_v43  ;;  %p1812_p0 = pnand %p1811_p12, %p2616_p13 }
 0x24c   : > { %p1819_p10 = por %p1818_p9, %p1817_p8 }
 0x24d   : > { %v1053_v47 = vadd.f32 %v1052_v45, %v1051_v41  ;;  %v1081_v49 = vrot.slane %v1080_v46, 2  ;;  %p1813_p7 = pneg %p1812_p0 }
 0x24f   : > { %v1054_v50 = vrot.slane %v1053_v47, 1  ;;  %v1082_v51 = vadd.f32 %v1081_v49, %v1080_v46  ;;  %p1820_p1 = pnand %p1819_p10, %p1813_p7 }
 0x251   : > { %v1083_v52 = vrot.slane %v1082_v51, 1  ;;  %v1055_v53 = vadd.f32 %v1054_v50, %v1053_v47 }
 0x253   : > { %v1084_v54 = vadd.f32 %v1083_v52, %v1082_v51 }
 0x255   : > { %v1086_v56 = vsel %vm1085_vm10, %v1055_v53, %v1084_v54 }
 0x256   : > { %1088 = vst.msk [vmem:[%s342_s28] sm:$0x3] %vm1087_vm11, %v1086_v56 }
 0x257   : > { %1823 = shalt.err (!%p1820_p1)
}
 0x258   : > { %s1824_s27 = scalar_lea.hbm %s2537_s11, 32  ;;  %s1828_s8 = scalar_lea.hbm %s2590_s5, 64 }
 0x259   : > { %p1825_p3 = scmp.ne.s32.totalorder %s2537_s11, %s1824_s27  ;;  %p1829_p6 = scmp.lt.u32.totalorder %s2537_s11, %s2590_s5 }
 0x25a   : > { %p1830_p11 = scmp.lt.u32.totalorder %s1828_s8, %s1824_s27  ;;  %p1832_p0 = scmp.lt.u32.totalorder %s1824_s27, %s2537_s11 }
 0x25b   : > { %p1826_p2 = pnand %p1825_p3, %p2616_p13 }
 0x25c   : > { %p1831_p12 = por %p1830_p11, %p1829_p6 }
 0x25d   : > { %p1827_p5 = pneg %p1826_p2 }
 0x25e   : > { %p1833_p7 = por %p1832_p0, %p1831_p12 }
 0x260   : > { %p1834_p8 = pnand %p1833_p7, %p1827_p5 }
 0x262   : > { %1837 = shalt.err (!%p1834_p8)
}
 0x263   : > { %1588 = dma.vmem_to_hbm [thread:$0]  (%p2616_p13), %s2539_s26, 32, %s2537_s11, %s2403_s30  }
 0x264 PF: > { %s1227_s16 = sand.u32 1, %s1876_s21   ;;  %p2620_p9 = scmp.ne.s32.totalorder %s2608_s10, 0 }
 0x265   : > { %s1228_s7 = scalar_lea.sflag [#allocation4], %s1227_s16 }
 0x266   : > { %p1602_p10 = pnand %p1401_p4, %p2620_p9 }
 0x268   : > { %1863 = dma.done.wait (!%p1602_p10), %s1228_s7, 1024  }
 0x269   : > { %1865 = vsyncadd (!%p1602_p10), %s1228_s7, 4294966272  ;;  %s2621_s28 = sadd.s32 4294967294, %s1888_s24  }
 0x26a   : > { %s1236_s14 = sand.u32 1, %s2621_s28  }
 0x26b   : > { %s1237_s19 = scalar_lea.sflag [#allocation10], %s1236_s14 }
 0x26c   : > { %1867 = dma.done.wait (!%p1602_p10), %s1237_s19, 1056  }
 0x26d   : > { %1869 = vsyncadd (!%p1602_p10), %s1237_s19, 4294966240  ;;  %s1255_s9 = scalar_lea.sflag [#allocation13], %s1227_s16 }
 0x26e   : > { %1871 = dma.done.wait (!%p1602_p10), %s1255_s9, 32  }
 0x26f   : > { %1873 = vsyncadd (!%p1602_p10), %s1255_s9, 4294967264  ;;  %s2622_s24 = sld [smem:[#allocation22_spill]]  ;;  %s2623_s30 = sld [smem:[#allocation23_spill]] }
 0x270   : > { %s2624_s21 = smov %s1880_s22  ;;  %s2625_s22 = smov %s1884_s23 }
 0x275   : > { %p27_p13 = scmp.ge.s32.totalorder %s2622_s24, 4   ;;  %s2626_s23 = smov %s2623_s30 }
 0x277   :  { %29 = sbr.rel (!%p27_p13) target bundleno = 10 (0xa), region = 144 }
 0x27e   :  { %1260 = vsyncpa [#allocation3], 1 }
 0x27f   :  { %1262 = vsyncpa [#allocation3 + $0x1], 1 }
 0x280   :  { %1263 = vsyncpa [#allocation6], 1 }
 0x281   :  { %1264 = vsyncpa [#allocation4], 1 }
 0x282   :  { %1266 = vsyncpa [#allocation4 + $0x1], 1 }
 0x283   :  { %1267 = vsyncpa [#allocation10], 1 }
 0x284   :  { %1269 = vsyncpa [#allocation10 + $0x1], 1 }
 0x285   :  { %1270 = vsyncpa [#allocation13], 1 }
 0x286   :  { %1272 = vsyncpa [#allocation13 + $0x1], 1 }

// kernel: basic_block_forward.5
= control target key start
LH: loop header
LB: loop body
LE: loop exit
PB: predicated region body
PF: predicated region fallthrough
CT: control target
= control target key end

     0   :  { %s1285_s0 = inlined_call_operand.hbm [shape: f32[2,8,64], index: 0, kind: input, shape index: {}]   ;;  %s1286_s1 = inlined_call_operand.hbm [shape: f32[2,8,64], index: 1, kind: input, shape index: {}]   ;;  %s1287_s2 = inlined_call_operand.hbm [shape: f32[1,64], index: 2, kind: input, shape index: {}]   ;;  %s1288_s3 = inlined_call_operand.hbm [shape: f32[1,64], index: 3, kind: input, shape index: {}]   ;;  %s1289_s4 = inlined_call_operand.hbm [shape: f32[1,64], index: 4, kind: input, shape index: {}]   ;;  %s1290_s5 = inlined_call_operand.hbm [shape: f32[1,64], index: 5, kind: input, shape index: {}]   ;;  %s1291_s6 = inlined_call_operand.hbm [shape: f32[2,8,64], index: 6, kind: output, shape index: {}]  }
   0x1   :  { %1296 = sst [smem:[#allocation20_spill]] %s1287_s2 }
   0x2   :  { %1297 = sst [smem:[#allocation21_spill]] %s1288_s3 }
   0x3   :  { %1298 = sst [smem:[#allocation22_spill]] %s1289_s4 }
   0x4   :  { %11 = vsyncpa [#allocation3], 0 }
   0x5   :  { %13 = vsyncpa [#allocation3 + $0x1], 0 }
   0x6   :  { %14 = vsyncpa [#allocation6], 0 }
   0x7   :  { %16 = vsyncpa [#allocation6 + $0x1], 0 }
   0x8   :  { %17 = vsyncpa [#allocation9], 0 }
   0x9   :  { %18 = vsyncpa [#allocation12], 0 }
   0xa   :  { %19 = vsyncpa [#allocation4], 0 }
   0xb   :  { %21 = vsyncpa [#allocation4 + $0x1], 0  ;;  %s954_s21 = smov 0   ;;  %s956_s22 = smov 0  }
   0xc   :  { %s958_s23 = smov 0   ;;  %s960_s24 = smov 0  }
   0xd LB: > { %s912_s25 = smov [#allocation7]   ;;  %s975_s27 = sadd.s32 4294967295, %s910_s24   ;;  %s910_s24 = sphi %s960_s24, %s1325_s24   ;;  %s906_s23 = sphi %s958_s23, %s1324_s23   ;;  %s902_s22 = sphi %s956_s22, %s1323_s22   ;;  %s898_s21 = sphi %s954_s21, %s1322_s21  }
   0xe   : > { %s207_s26 = sshll.u32 %s912_s25, 4  ;;  %p538_p0 = scmp.ge.s32.totalorder %s910_s24, 1  ;;  %s980_s26 = int_to_ptr.vmem [resolvable:$true] %s207_s26 }
   0xf   : > { %p1292_p1 = scmp.eq.s32.totalorder %s975_s27, 0  ;;  %p194_p2 = scmp.lt.s32.totalorder %s910_s24, 3 }
  0x10   : > { %s913_s29 = smov [#allocation8]   ;;  %s914_s7 = smov [#allocation10]  }
  0x11   : > { %p982_p3 = pnand %p538_p0, %p194_p2  ;;  %s218_s30 = sshll.u32 %s913_s29, 4  ;;  %s989_s30 = int_to_ptr.vmem [resolvable:$true] %s218_s30 }
  0x12   : > { %s229_s8 = sshll.u32 %s914_s7, 4  ;;  %s915_s10 = smov [#allocation11]   ;;  %s997_s8 = int_to_ptr.vmem [resolvable:$true] %s229_s8 }
  0x13   : > { %s1299_s28 = scalar_select %p982_p3, 1, 0 }
  0x14   : > { %p586_p5 = pneg %p982_p3  ;;  %s999_s11 = sshll.u32 %s915_s10, 4  ;;  %s241_s11 = int_to_ptr.vmem [resolvable:$true] %s999_s11 }
  0x15   : > { %s1301_s2 = sld [smem:[#allocation20_spill]] }
  0x16   : > { %p993_p6 = pnand %p586_p5, %p1292_p1 }
  0x18   : > { %p1009_p8 = pneg %p993_p6 }
  0x1b   : > { %s656_s14 = scalar_lea.hbm %s1301_s2, 16 }
  0x1c   : > { %p657_p7 = scmp.ne.s32.totalorder %s1301_s2, %s656_s14  ;;  %p663_p11 = scmp.lt.u32.totalorder %s656_s14, %s1301_s2 }
  0x1e   : > { %p659_p9 = pnand %p1009_p8, %p657_p7 }
  0x20   : > { %p660_p10 = pneg %p659_p9 }
  0x22   : > { %p665_p12 = pnand %p663_p11, %p660_p10 }
  0x24   : > { %668 = shalt.err (!%p665_p12)
}
  0x25   : > { %s669_s20 = scalar_lea.vmem %s980_s26, 16  ;;  %s676_s25 = scalar_lea.vmem %s980_s26, 32 }
  0x26   : > { %p670_p13 = scmp.ne.s32.totalorder %s980_s26, %s669_s20  ;;  %p677_p5 = scmp.lt.s32.totalorder %s980_s26, %s980_s26 }
  0x27   : > { %p678_p7 = scmp.lt.s32.totalorder %s676_s25, %s669_s20 }
  0x28   : > { %p672_p0 = pnand %p670_p13, %p1009_p8 }
  0x29   : > { %p679_p9 = por %p678_p7, %p677_p5 }
  0x2a   : > { %p673_p2 = pneg %p672_p0 }
  0x2c   : > { %p680_p4 = pnand %p679_p9, %p673_p2 }
  0x2e   : > { %683 = shalt.err (!%p680_p4)
}
  0x2f   : > { %589 = dma.hbm_to_vmem [thread:$0]  (!%p993_p6), %s1301_s2, 16, %s980_s26, [#allocation6]  }
  0x30   : > { %s1303_s3 = sld [smem:[#allocation21_spill]] }
  0x36   : > { %s684_s13 = scalar_lea.hbm %s1303_s3, 16 }
  0x37   : > { %p685_p10 = scmp.ne.s32.totalorder %s1303_s3, %s684_s13  ;;  %p691_p4 = scmp.lt.u32.totalorder %s684_s13, %s1303_s3 }
  0x39   : > { %p687_p11 = pnand %p685_p10, %p1009_p8 }
  0x3b   : > { %p688_p12 = pneg %p687_p11 }
  0x3d   : > { %p693_p13 = pnand %p691_p4, %p688_p12 }
  0x3f   : > { %696 = shalt.err (!%p693_p13)
}
  0x40   : > { %s697_s26 = scalar_lea.vmem %s989_s30, 16  ;;  %s704_s19 = scalar_lea.vmem %s989_s30, 32 }
  0x41   : > { %p698_p0 = scmp.ne.s32.totalorder %s989_s30, %s697_s26  ;;  %p705_p7 = scmp.lt.s32.totalorder %s989_s30, %s989_s30 }
  0x42   : > { %p706_p9 = scmp.lt.s32.totalorder %s704_s19, %s697_s26 }
  0x43   : > { %p700_p2 = pnand %p698_p0, %p1009_p8 }
  0x44   : > { %p707_p10 = por %p706_p9, %p705_p7 }
  0x45   : > { %p701_p5 = pneg %p700_p2 }
  0x47   : > { %p708_p11 = pnand %p707_p10, %p701_p5 }
  0x49   : > { %711 = shalt.err (!%p708_p11)
}
  0x4a   : > { %592 = dma.hbm_to_vmem [thread:$0]  (!%p993_p6), %s1303_s3, 16, %s989_s30, [#allocation9]  }
  0x4b   : > { %s1304_s4 = sld [smem:[#allocation22_spill]] }
  0x51   : > { %s712_s10 = scalar_lea.hbm %s1304_s4, 16 }
  0x52   : > { %p713_p12 = scmp.ne.s32.totalorder %s1304_s4, %s712_s10  ;;  %p719_p0 = scmp.lt.u32.totalorder %s712_s10, %s1304_s4 }
  0x54   : > { %p715_p4 = pnand %p713_p12, %p1009_p8 }
  0x56   : > { %p716_p13 = pneg %p715_p4 }
  0x58   : > { %p721_p2 = pnand %p719_p0, %p716_p13 }
  0x5a   : > { %724 = shalt.err (!%p721_p2)
}
  0x5b   : > { %s725_s30 = scalar_lea.vmem %s997_s8, 16  ;;  %s732_s16 = scalar_lea.vmem %s997_s8, 32 }
  0x5c   : > { %p726_p5 = scmp.ne.s32.totalorder %s997_s8, %s725_s30  ;;  %p733_p10 = scmp.lt.s32.totalorder %s997_s8, %s997_s8 }
  0x5d   : > { %p734_p11 = scmp.lt.s32.totalorder %s732_s16, %s725_s30 }
  0x5e   : > { %p728_p7 = pnand %p726_p5, %p1009_p8 }
  0x5f   : > { %p735_p12 = por %p734_p11, %p733_p10 }
  0x60   : > { %p729_p9 = pneg %p728_p7 }
  0x62   : > { %p736_p4 = pnand %p735_p12, %p729_p9 }
  0x64   : > { %739 = shalt.err (!%p736_p4)
}
  0x65   : > { %595 = dma.hbm_to_vmem [thread:$0]  (!%p993_p6), %s1304_s4, 16, %s997_s8, [#allocation9]  }
  0x66   : > { %s740_s25 = scalar_lea.hbm %s1290_s5, 16 }
  0x67   : > { %p741_p13 = scmp.ne.s32.totalorder %s1290_s5, %s740_s25  ;;  %p747_p5 = scmp.lt.u32.totalorder %s740_s25, %s1290_s5 }
  0x69   : > { %p743_p0 = pnand %p741_p13, %p1009_p8 }
  0x6b   : > { %p744_p2 = pneg %p743_p0 }
  0x6d   : > { %p749_p7 = pnand %p747_p5, %p744_p2 }
  0x6f   : > { %752 = shalt.err (!%p749_p7)
}
  0x70   : > { %s753_s13 = scalar_lea.vmem %s241_s11, 16  ;;  %s760_s8 = scalar_lea.vmem %s241_s11, 32 }
  0x71   : > { %p754_p9 = scmp.ne.s32.totalorder %s241_s11, %s753_s13  ;;  %p761_p12 = scmp.lt.s32.totalorder %s241_s11, %s241_s11 }
  0x72   : > { %p762_p4 = scmp.lt.s32.totalorder %s760_s8, %s753_s13 }
  0x73   : > { %p756_p10 = pnand %p754_p9, %p1009_p8 }
  0x74   : > { %p763_p1 = por %p762_p4, %p761_p12 }
  0x75   : > { %p757_p11 = pneg %p756_p10 }
  0x77   : > { %p764_p3 = pnand %p763_p1, %p757_p11 }
  0x79   : > { %767 = shalt.err (!%p764_p3)
}
  0x7a   : > { %598 = dma.hbm_to_vmem [thread:$0]  (!%p993_p6), %s1290_s5, 16, %s241_s11, [#allocation12]  }
  0x7b   : > { %s537_s17 = sadd.s32 4294967294, %s910_s24   ;;  %s1100_s9 = sadd.s32 1, %s910_s24  }
  0x7c   : > { %s31_s30 = ssub.s32 %s910_s24, %s1100_s9  ;;  %s34_s16 = sadd.s32 1, %s906_s23 }
  0x7d   : > { %p32_p1 = scmp.eq.s32.totalorder %s31_s30, 0  ;;  %p41_p3 = scmp.ne.s32.totalorder %s906_s23, %s902_s22 }
  0x7e   : > { %p42_p8 = scmp.eq.s32.totalorder %s910_s24, 0  ;;  %p47_p13 = scmp.ne.s32.totalorder %s902_s22, %s898_s21 }
  0x7f   : > { %s1111_s18 = scalar_select %p32_p1, %s906_s23, %s34_s16  }
  0x80   : > { %p1113_p0 = por %p42_p8, %p41_p3  ;;  %p1306_p2 = scmp.eq.s32.totalorder %s975_s27, 0 }
  0x81   : > { %p181_p5 = scmp.eq.s32.totalorder %s975_s27, 1  ;;  %p187_p7 = scmp.eq.s32.totalorder %s537_s17, 1 }
  0x82   : > { %p1119_p6 = por %p1306_p2, %p47_p13  ;;  %p614_p9 = scmp.lt.s32.totalorder %s910_s24, 2 }
  0x83   : > { %s251_s19 = sand.u32 1, %s906_s23   ;;  %p1126_p10 = por %p181_p5, %p41_p3 }
  0x84   : > { %s1307_s11 = scalar_select %p1119_p6, 1, 0 }
  0x85   : > { %s1308_s20 = scalar_select %p1126_p10, 1, 0 }
  0x86   : > { %p1130_p11 = por %p187_p7, %p47_p13  ;;  %s1134_s29 = sshll.u32 %s251_s19, 3 }
  0x87   : > { %s545_s7 = sshll.u32 %s910_s24, 7  ;;  %s255_s8 = scalar_lea.vmem [#allocation2], %s1134_s29 }
  0x88   : > { %s1309_s25 = scalar_select %p1130_p11, 1, 0 }
  0x89   : > { %s1140_s13 = scalar_lea.hbm %s1285_s0, %s545_s7  ;;  %s262_s14 = sshll.u32 %s255_s8, 4  ;;  %s1143_s14 = int_to_ptr.vmem [resolvable:$true] %s262_s14 }
  0x8a   : > { %p1147_p12 = pnand %p614_p9, %p1113_p0  ;;  %s1154_s16 = scalar_lea.hbm %s1286_s1, %s545_s7 }
  0x8b   : > { %s269_s10 = sand.u32 1, %s910_s24   ;;  %s252_s12 = scalar_lea.sflag [#allocation3], %s251_s19 }
  0x8c   : > { %s768_s2 = scalar_lea.hbm %s1140_s13, 128  ;;  %p770_p1 = pneg %p1147_p12 }
  0x8d   : > { %p769_p4 = scmp.ne.s32.totalorder %s1140_s13, %s768_s2  ;;  %s773_s3 = scalar_lea.hbm %s1285_s0, 256 }
  0x8e   : > { %p774_p13 = scmp.lt.u32.totalorder %s1140_s13, %s1285_s0  ;;  %p775_p0 = scmp.lt.u32.totalorder %s773_s3, %s768_s2 }
  0x8f   : > { %p771_p3 = pnand %p770_p1, %p769_p4  ;;  %p777_p5 = scmp.lt.u32.totalorder %s768_s2, %s1140_s13 }
  0x90   : > { %p776_p2 = por %p775_p0, %p774_p13 }
  0x91   : > { %p772_p8 = pneg %p771_p3 }
  0x92   : > { %p778_p7 = por %p777_p5, %p776_p2 }
  0x94   : > { %p779_p9 = pnand %p778_p7, %p772_p8 }
  0x96   : > { %782 = shalt.err (!%p779_p9)
}
  0x97   : > { %s783_s19 = scalar_lea.vmem %s1143_s14, 128  ;;  %s916_s7 = smov [#allocation2]  }
  0x98   : > { %p784_p4 = scmp.ne.s32.totalorder %s1143_s14, %s783_s19  ;;  %s788_s30 = sshll.u32 %s916_s7, 4  ;;  %s789_s30 = int_to_ptr.vmem [resolvable:$false] %s788_s30 }
  0x99   : > { %s790_s4 = scalar_lea.vmem %s789_s30, 256  ;;  %p791_p10 = scmp.lt.s32.totalorder %s1143_s14, %s789_s30 }
  0x9a   : > { %p786_p3 = pnand %p784_p4, %p770_p1  ;;  %p792_p13 = scmp.lt.s32.totalorder %s790_s4, %s783_s19 }
  0x9c   : > { %p787_p11 = pneg %p786_p3  ;;  %p793_p0 = por %p792_p13, %p791_p10 }
  0x9e   : > { %p794_p2 = pnand %p793_p0, %p787_p11 }
  0xa0   : > { %797 = shalt.err (!%p794_p2)
}
  0xa1   : > { %602 = dma.hbm_to_vmem [thread:$0]  (!%p1147_p12), %s1140_s13, 128, %s1143_s14, %s252_s12  }
  0xa2   : > { %s273_s2 = scalar_lea.vmem [#allocation5], %s1134_s29  ;;  %s270_s26 = scalar_lea.sflag [#allocation6], %s269_s10 }
  0xa3   : > { %s280_s3 = sshll.u32 %s273_s2, 4  ;;  %s798_s8 = scalar_lea.hbm %s1154_s16, 128  ;;  %s281_s3 = int_to_ptr.vmem [resolvable:$true] %s280_s3 }
  0xa4   : > { %p799_p10 = scmp.ne.s32.totalorder %s1154_s16, %s798_s8  ;;  %s803_s7 = scalar_lea.hbm %s1286_s1, 256 }
  0xa5   : > { %p804_p5 = scmp.lt.u32.totalorder %s1154_s16, %s1286_s1  ;;  %p805_p7 = scmp.lt.u32.totalorder %s803_s7, %s798_s8 }
  0xa6   : > { %p801_p11 = pnand %p799_p10, %p770_p1  ;;  %p807_p4 = scmp.lt.u32.totalorder %s798_s8, %s1154_s16 }
  0xa7   : > { %p806_p9 = por %p805_p7, %p804_p5 }
  0xa8   : > { %p802_p8 = pneg %p801_p11 }
  0xa9   : > { %p808_p3 = por %p807_p4, %p806_p9 }
  0xab   : > { %p809_p13 = pnand %p808_p3, %p802_p8 }
  0xad   : > { %812 = shalt.err (!%p809_p13)
}
  0xae   : > { %s813_s29 = scalar_lea.vmem %s281_s3, 128  ;;  %s917_s13 = smov [#allocation5]  }
  0xaf   : > { %p814_p0 = scmp.ne.s32.totalorder %s281_s3, %s813_s29  ;;  %s818_s14 = sshll.u32 %s917_s13, 4  ;;  %s819_s14 = int_to_ptr.vmem [resolvable:$false] %s818_s14 }
  0xb0   : > { %s820_s10 = scalar_lea.vmem %s819_s14, 256  ;;  %p821_p11 = scmp.lt.s32.totalorder %s281_s3, %s819_s14 }
  0xb1   : > { %p816_p2 = pnand %p814_p0, %p770_p1  ;;  %p822_p6 = scmp.lt.s32.totalorder %s820_s10, %s813_s29 }
  0xb3   : > { %p817_p10 = pneg %p816_p2  ;;  %p823_p5 = por %p822_p6, %p821_p11 }
  0xb5   : > { %p824_p7 = pnand %p823_p5, %p817_p10 }
  0xb7   : > { %827 = shalt.err (!%p824_p7)
}
  0xb8   : > { %605 = dma.hbm_to_vmem [thread:$0]  (!%p1147_p12), %s1154_s16, 128, %s281_s3, %s270_s26  }
  0xb9   : > { %p1311_p8 = scmp.ne.s32.totalorder %s1299_s28, 0 }
  0xba   : > { %s1207_s12 = sand.u32 (!%p1311_p8), 1, %s902_s22   ;;  %p1312_p6 = scmp.ne.s32.totalorder (!%p1311_p8), %s1307_s11, 0 }
  0xbb   : > { %289 = sbr.rel (%p1311_p8) target bundleno = 234 (0xea), region = 44  ;;  %s1210_s2 = sshll.u32 (!%p1311_p8), %s1207_s12, 3 }
  0xbc   : > { %s292_s8 = scalar_lea.sflag (!%p1311_p8), [#allocation3], %s1207_s12  ;;  %s295_s17 = scalar_lea.vmem (!%p1311_p8), [#allocation2], %s1210_s2 }
  0xc2   : > { %873 = dma.done.wait (%p1312_p6), %s292_s8, 128  }
  0xc3   : > { %875 = vsyncadd (%p1312_p6), %s292_s8, 4294967168  ;;  %s300_s28 = sand.u32 1, %s975_s27   ;;  %s304_s16 = scalar_lea.vmem [#allocation5], %s1210_s2 }
  0xc4   : > { %s301_s15 = scalar_lea.sflag [#allocation6], %s300_s28 }
  0xc5   : > { %877 = dma.done.wait (%p1312_p6), %s301_s15, 128  }
  0xc6   : > { %879 = vsyncadd (%p1312_p6), %s301_s15, 4294967168  ;;  %p1313_p12 = scmp.eq.s32.totalorder %s975_s27, 0 }
  0xc8   : > { %881 = dma.done.wait (%p1313_p12), [#allocation6], 16   ;;  %p1314_p1 = pmov %p1313_p12 }
  0xca   : > { %883 = vsyncadd (%p1314_p1), [#allocation6], 4294967280  ;;  %p1315_p9 = pmov %p1314_p1 }
  0xcb   : > { %p1316_p4 = pmov %p1314_p1 }
  0xcc   : > { %885 = dma.done.wait (%p1315_p9), [#allocation9], 32  }
  0xcd   : > { %887 = vsyncadd (%p1316_p4), [#allocation9], 4294967264  ;;  %p1317_p3 = pmov %p1314_p1 }
  0xce   : > { %p1318_p13 = pmov %p1314_p1 }
  0xcf   : > { %889 = dma.done.wait (%p1317_p3), [#allocation12], 16  }
  0xd0   : > { %891 = vsyncadd (%p1318_p13), [#allocation12], 4294967280  ;;  %v354_v0 = vld [vmem:[%s295_s17] sm:$0xff]  ;;  %v355_v1 = vld [vmem:[%s304_s16] sm:$0xff]  ;;  %s353_s11 = scalar_lea.vmem [#allocation13], %s1210_s2  ;;  %s561_s26 = sshll.u32 %s975_s27, 7 }
  0xd1   : > { %v556_v2 = vld [vmem:[#allocation7] ss:$0 sm:$0xff]  ;;  %v557_v4 = vld [vmem:[#allocation8] ss:$0 sm:$0xff]  ;;  %v558_v5 = vld [vmem:[#allocation10] ss:$0 sm:$0xff]  ;;  %s1243_s30 = scalar_lea.hbm %s1291_s6, %s561_s26 }
  0xd2   : > { %v363_v3 = vmul.f32 %v556_v2, %v354_v0  ;;  %v379_v6 = vmul.f32 %v558_v5, %v355_v1  ;;  %v559_v8 = vld [vmem:[#allocation11] ss:$0 sm:$0xff]  ;;  %s406_s3 = sshll.u32 %s353_s11, 4  ;;  %vm390_vm0 = vcmask 523264   ;;  %s393_s4 = scalar_lea.sflag [#allocation4], %s1207_s12  ;;  %s1238_s3 = int_to_ptr.vmem [resolvable:$true] %s406_s3 }
  0xd3   : > { %s828_s29 = scalar_lea.vmem %s1238_s3, 128  ;;  %p1319_p2 = scmp.ne.s32.totalorder %s1308_s20, 0 }
  0xd4   : > { %v371_v7 = vadd.f32 %v557_v4, %v363_v3  ;;  %p829_p0 = scmp.ne.s32.totalorder %s1238_s3, %s828_s29  ;;  %s918_s27 = smov [#allocation13]  }
  0xd5   : > { %s832_s13 = sshll.u32 %s918_s27, 4  ;;  %s833_s13 = int_to_ptr.vmem [resolvable:$false] %s832_s13 }
  0xd6   : > { %v380_v9 = vadd.f32 %v379_v6, %v371_v7  ;;  %p830_p10 = pnand %p829_p0, %p1319_p2  ;;  %s834_s14 = scalar_lea.vmem %s833_s13, 256 }
  0xd7   : > { %p835_p5 = scmp.lt.s32.totalorder %s1238_s3, %s833_s13  ;;  %p836_p7 = scmp.lt.s32.totalorder %s834_s14, %s828_s29 }
  0xd8   : > { %v388_v10 = vadd.f32 %v559_v8, %v380_v9  ;;  %p831_p11 = pneg %p830_p10 }
  0xd9   : > { %p837_p8 = por %p836_p7, %p835_p5 }
  0xda   : > { %v389_v11 = vmax.f32 %v388_v10, 0.0 }
  0xdb   : > { %p838_p6 = pnand %p837_p8, %p831_p11 }
  0xdc   : > { %391 = vst.msk [vmem:[%s353_s11] sm:$0xff] %vm390_vm0, %v389_v11 }
  0xdd   : > { %841 = shalt.err (!%p838_p6)
}
  0xde   : > { %s842_s10 = scalar_lea.hbm %s1243_s30, 128  ;;  %s846_s8 = scalar_lea.hbm %s1291_s6, 256 }
  0xdf   : > { %p843_p12 = scmp.ne.s32.totalorder %s1243_s30, %s842_s10  ;;  %p847_p4 = scmp.lt.u32.totalorder %s1243_s30, %s1291_s6 }
  0xe0   : > { %p848_p3 = scmp.lt.u32.totalorder %s846_s8, %s842_s10  ;;  %p850_p0 = scmp.lt.u32.totalorder %s842_s10, %s1243_s30 }
  0xe1   : > { %p844_p1 = pnand %p843_p12, %p1319_p2 }
  0xe2   : > { %p849_p13 = por %p848_p3, %p847_p4 }
  0xe3   : > { %p845_p9 = pneg %p844_p1 }
  0xe4   : > { %p851_p10 = por %p850_p0, %p849_p13 }
  0xe6   : > { %p852_p11 = pnand %p851_p10, %p845_p9 }
  0xe8   : > { %855 = shalt.err (!%p852_p11)
}
  0xe9   : > { %584 = dma.vmem_to_hbm [thread:$0]  (%p1319_p2), %s1238_s3, 128, %s1243_s30, %s393_s4  }
  0xea PF: > { %s418_s15 = sand.u32 1, %s898_s21   ;;  %p1320_p5 = scmp.ne.s32.totalorder %s1309_s25, 0 }
  0xeb   : > { %p1321_p7 = scmp.ge.s32.totalorder %s910_s24, 2  ;;  %s419_s16 = scalar_lea.sflag [#allocation4], %s418_s15 }
  0xed   : > { %p607_p8 = pnand %p1321_p7, %p1320_p5 }
  0xef   : > { %893 = dma.done.wait (!%p607_p8), %s419_s16, 128  }
  0xf0   : > { %895 = vsyncadd (!%p607_p8), %s419_s16, 4294967168  ;;  %p24_p6 = scmp.ge.s32.totalorder %s1100_s9, 4   ;;  %s1322_s21 = smov %s902_s22 }
  0xf1   : > { %s1323_s22 = smov %s906_s23  ;;  %s1324_s23 = smov %s1111_s18 }
  0xf2   : > { %s1325_s24 = smov %s1100_s9  ;;  %26 = sbr.rel (!%p24_p6) target bundleno = 13 (0xd), region = 118 }
  0xf9   :  { %424 = vsyncpa [#allocation3], 1 }
  0xfa   :  { %426 = vsyncpa [#allocation3 + $0x1], 1 }
  0xfb   :  { %427 = vsyncpa [#allocation6], 1 }
  0xfc   :  { %429 = vsyncpa [#allocation6 + $0x1], 1 }
  0xfd   :  { %430 = vsyncpa [#allocation9], 1 }
  0xfe   :  { %431 = vsyncpa [#allocation12], 1 }
  0xff   :  { %432 = vsyncpa [#allocation4], 1 }
 0x100   :  { %434 = vsyncpa [#allocation4 + $0x1], 1 }

</bundles_post_ra>
